<compile_context>
chip_gen: v7x
topology: tpu7x:2x2x1
jax: 0.10.0
libtpu: 0.0.40
codegen_flags: <defaults>
</compile_context>

<pallas_src>
import functools

import jax
import jax.numpy as jnp
from jax.experimental import pallas as pl
from jax.experimental.pallas import tpu as pltpu

D_IN = 768
HIDDEN = 1024
NUM_CLASSES = 128
BN_EPS = 1e-5
_STATS_ROWS = 8          # sublane-aligned rows per tile: row 0 = sum, row 1 = sumsq


def _round_up(x, m):
    return (x + m - 1) // m * m


# ---------------------------------------------------------------------------
# Pass 1: per batch tile, h = x @ W1, plus per-tile column sum / sum-of-squares
# ---------------------------------------------------------------------------
def _linear1_stats_kernel(x_ref, w1_ref, h_ref, stats_ref):
    # f32 MXU accumulation regardless of operand dtype.
    h = jnp.dot(x_ref[...], w1_ref[...], preferred_element_type=jnp.float32)
    h_ref[...] = h.astype(h_ref.dtype)
    col_sum = jnp.sum(h, axis=0, keepdims=True)          # (1, HIDDEN)
    col_sumsq = jnp.sum(h * h, axis=0, keepdims=True)    # (1, HIDDEN)
    pad = jnp.zeros((_STATS_ROWS - 2, HIDDEN), jnp.float32)
    # Single full-block store (no masked partial stores).
    stats_ref[...] = jnp.concatenate([col_sum, col_sumsq, pad], axis=0)


# ---------------------------------------------------------------------------
# Pass 2: per batch tile, fused BN affine -> ReLU -> Linear -> Sigmoid
# ---------------------------------------------------------------------------
def _bn_relu_linear2_kernel(h_ref, scale_ref, shift_ref, w2_ref, b2_ref, o_ref):
    # BN folded into a single per-feature FMA (f32 elementwise math).
    h = h_ref[...].astype(jnp.float32) * scale_ref[...] + shift_ref[...]
    h = jnp.maximum(h, 0.0)                               # ReLU
    logits = jnp.dot(h.astype(w2_ref.dtype), w2_ref[...],
                     preferred_element_type=jnp.float32)
    logits = logits + b2_ref[...]
    o_ref[...] = 1.0 / (1.0 + jnp.exp(-logits))           # exact sigmoid


@functools.partial(jax.jit, static_argnames=("block_rows", "matmul_dtype"))
def mlp_forward(x, w1, b1, gamma, beta, w2, b2, *,
                block_rows=512, matmul_dtype=jnp.float32):
    """x: any shape with trailing dim 768 (flattened to (-1, 768) like PyTorch)."""
    del b1  # absorbed exactly by the training-mode BatchNorm mean subtraction
    xb = x.reshape(-1, D_IN).astype(jnp.float32)
    B = xb.shape[0]

    # Batch tiling: sublane-aligned tile size, batch zero-padded to a multiple.
    tm = min(block_rows, _round_up(B, 8))
    tm = _round_up(tm, 8)
    b_pad = _round_up(B, tm)
    x_mm = xb.astype(matmul_dtype)
    if b_pad != B:
        x_mm = jnp.pad(x_mm, ((0, b_pad - B), (0, 0)))
    num_tiles = b_pad // tm

    cparams = pltpu.CompilerParams(
        dimension_semantics=("parallel",),
        vmem_limit_bytes=32 * 1024 * 1024,
    )

    w1_mm = w1.astype(matmul_dtype)
    w2_mm = w2.astype(matmul_dtype)

    # -------- pass 1: h = x @ W1 (+ per-tile column sum / sumsq) --------
    h, stats = pl.pallas_call(
        _linear1_stats_kernel,
        grid=(num_tiles,),
        in_specs=[
            pl.BlockSpec((tm, D_IN), lambda i: (i, 0)),
            pl.BlockSpec((D_IN, HIDDEN), lambda i: (0, 0)),
        ],
        out_specs=[
            pl.BlockSpec((tm, HIDDEN), lambda i: (i, 0)),
            pl.BlockSpec((_STATS_ROWS, HIDDEN), lambda i: (i, 0)),
        ],
        out_shape=[
            # Storing h in the matmul dtype halves HBM traffic on the bf16 path.
            jax.ShapeDtypeStruct((b_pad, HIDDEN), matmul_dtype),
            jax.ShapeDtypeStruct((num_tiles * _STATS_ROWS, HIDDEN), jnp.float32),
        ],
        compiler_params=cparams,
    )(x_mm, w1_mm)

    # -------- tiny JAX glue: exact full-batch BN stats -> fused scale/shift ---
    stats = stats.reshape(num_tiles, _STATS_ROWS, HIDDEN)
    col_sum = jnp.sum(stats[:, 0, :], axis=0)
    col_sumsq = jnp.sum(stats[:, 1, :], axis=0)
    mean = col_sum / B                                        # real B (pad rows = 0)
    var = jnp.maximum(col_sumsq / B - mean * mean, 0.0)       # biased, training mode
    inv_std = jax.lax.rsqrt(var + BN_EPS)
    scale = (gamma.reshape(1, HIDDEN) * inv_std.reshape(1, HIDDEN)).astype(jnp.float32)
    shift = (beta.reshape(1, HIDDEN) - mean.reshape(1, HIDDEN) * scale).astype(jnp.float32)

    # -------- pass 2: BN affine -> ReLU -> Linear -> Sigmoid --------
    out = pl.pallas_call(
        _bn_relu_linear2_kernel,
        grid=(num_tiles,),
        in_specs=[
            pl.BlockSpec((tm, HIDDEN), lambda i: (i, 0)),
            pl.BlockSpec((1, HIDDEN), lambda i: (0, 0)),
            pl.BlockSpec((1, HIDDEN), lambda i: (0, 0)),
            pl.BlockSpec((HIDDEN, NUM_CLASSES), lambda i: (0, 0)),
            pl.BlockSpec((1, NUM_CLASSES), lambda i: (0, 0)),
        ],
        out_specs=pl.BlockSpec((tm, NUM_CLASSES), lambda i: (i, 0)),
        out_shape=jax.ShapeDtypeStruct((b_pad, NUM_CLASSES), jnp.float32),
        compiler_params=cparams,
    )(h, scale, shift, w2_mm, b2.reshape(1, NUM_CLASSES).astype(jnp.float32))

    return out[:B]


def _reference(x, w1, b1, gamma, beta, w2, b2):
    xb = x.reshape(-1, D_IN).astype(jnp.float32)
    h = xb @ w1 + b1.reshape(1, HIDDEN)
    mean = jnp.mean(h, axis=0, keepdims=True)
    var = jnp.mean((h - mean) ** 2, axis=0, keepdims=True)
    h = (h - mean) / jnp.sqrt(var + BN_EPS) * gamma.reshape(1, HIDDEN) + beta.reshape(1, HIDDEN)
    h = jnp.maximum(h, 0.0)
    return jax.nn.sigmoid(h @ w2 + b2.reshape(1, NUM_CLASSES))


if __name__ == "__main__":
    key = jax.random.PRNGKey(0)
    k_x, k_x2, k_w1, k_b1, k_w2, k_b2 = jax.random.split(key, 6)

    # Deterministic synthetic parameters (shapes per the module __init__;
    # weights stored transposed as (in, out) so kernels do x @ W).
    w1 = jax.random.normal(k_w1, (D_IN, HIDDEN), jnp.float32) / jnp.sqrt(D_IN)
    b1 = jax.random.normal(k_b1, (HIDDEN,), jnp.float32) * 0.01
    gamma = jnp.ones((HIDDEN,), jnp.float32)     # BN weight init
    beta = jnp.zeros((HIDDEN,), jnp.float32)     # BN bias init
    w2 = jax.random.normal(k_w2, (HIDDEN, NUM_CLASSES), jnp.float32) / jnp.sqrt(HIDDEN)
    b2 = jax.random.normal(k_b2, (NUM_CLASSES,), jnp.float32) * 0.01
    params = (w1, b1, gamma, beta, w2, b2)

    # 1) Small batch, single tile (2*4 = 8 rows), f32 matmuls, tight tolerance.
    x_small = jax.random.normal(k_x, (2, 4, D_IN), jnp.float32)
    out = jax.block_until_ready(mlp_forward(x_small, *params))
    ref = _reference(x_small, *params)
    assert out.shape == (8, NUM_CLASSES)
    assert jnp.allclose(out, ref, atol=2e-5, rtol=2e-5), float(jnp.max(jnp.abs(out - ref)))

    # 2) Multi-tile grid + batch padding (B=50 -> 4 tiles of 16, padded to 64), f32.
    x_big = jax.random.normal(k_x2, (50, D_IN), jnp.float32)
    out2 = jax.block_until_ready(mlp_forward(x_big, *params, block_rows=16))
    ref2 = _reference(x_big, *params)
    assert out2.shape == (50, NUM_CLASSES)
    assert jnp.allclose(out2, ref2, atol=2e-5, rtol=2e-5), float(jnp.max(jnp.abs(out2 - ref2)))

    # 3) bf16 matmul operands + bf16 h intermediate, f32 accumulation
    #    (v6e/v7x path), loose tolerance.
    out3 = jax.block_until_ready(
        mlp_forward(x_big, *params, block_rows=16, matmul_dtype=jnp.bfloat16))
    assert out3.shape == (50, NUM_CLASSES)
    assert jnp.allclose(out3, ref2, atol=2e-2, rtol=0), float(jnp.max(jnp.abs(out3 - ref2)))

    print("KERNEL_OK")
</pallas_src>

<mosaic_0001>
module attributes {stable_mosaic.version = 11 : i64} {
  func.func @_linear1_stats_kernel(%arg0: i32, %arg1: memref<8x768xf32, #tpu.memory_space<vmem>>, %arg2: memref<768x1024xf32, #tpu.memory_space<vmem>>, %arg3: memref<8x1024xf32, #tpu.memory_space<vmem>>, %arg4: memref<8x1024xf32, #tpu.memory_space<vmem>>) attributes {dimension_semantics = [#tpu.dimension_semantics<parallel>], iteration_bounds = array<i64: 1>, scalar_prefetch = 0 : i64, scratch_operands = 0 : i64, tpu.core_type = #tpu.core_type<tc>, window_params = [{transform_indices = @transform_0, window_bounds = array<i64: 8, 768>}, {pipeline_mode = #tpu.pipeline_mode<synchronous>, transform_indices = @transform_1, window_bounds = array<i64: 768, 1024>}, {transform_indices = @transform_2, window_bounds = array<i64: 8, 1024>}, {transform_indices = @transform_3, window_bounds = array<i64: 8, 1024>}]} {
    %c0 = arith.constant 0 : index
    %c0_0 = arith.constant 0 : index
    %0 = vector.load %arg1[%c0, %c0_0] : memref<8x768xf32, #tpu.memory_space<vmem>>, vector<8x768xf32>
    %c0_1 = arith.constant 0 : index
    %c0_2 = arith.constant 0 : index
    %1 = vector.load %arg2[%c0_1, %c0_2] : memref<768x1024xf32, #tpu.memory_space<vmem>>, vector<768x1024xf32>
    %cst = arith.constant dense<0.000000e+00> : vector<8x1024xf32>
    %2 = tpu.matmul %0, %1, %cst {dimension_numbers = #tpu.dot_dimension_numbers<[1], [0], [0], [1], [0, 0, 1, 1], [], []>} : vector<8x768xf32>, vector<768x1024xf32>, vector<8x1024xf32> -> vector<8x1024xf32>
    %c0_3 = arith.constant 0 : index
    %c0_4 = arith.constant 0 : index
    %3 = vector.load %arg3[%c0_3, %c0_4] : memref<8x1024xf32, #tpu.memory_space<vmem>>, vector<8x1024xf32>
    tpu.vector_store %arg3[%c0_3, %c0_4], %2 {strides = array<i32>} : memref<8x1024xf32, #tpu.memory_space<vmem>>, vector<8x1024xf32>,
    %cst_5 = arith.constant dense<0.000000e+00> : vector<1024xf32>
    %4 = vector.multi_reduction <add>, %2, %cst_5 [0] : vector<8x1024xf32> to vector<1024xf32>
    %5 = vector.shape_cast %4 : vector<1024xf32> to vector<1x1024xf32>
    %6 = arith.mulf %2, %2 : vector<8x1024xf32>
    %cst_6 = arith.constant dense<0.000000e+00> : vector<1024xf32>
    %7 = vector.multi_reduction <add>, %6, %cst_6 [0] : vector<8x1024xf32> to vector<1024xf32>
    %8 = vector.shape_cast %7 : vector<1024xf32> to vector<1x1024xf32>
    %cst_7 = arith.constant 0.000000e+00 : f32
    %9 = vector.broadcast %cst_7 : f32 to vector<6x1024xf32>
    %10 = tpu.concatenate %5, %8, %9 in 0 : vector<1x1024xf32>, vector<1x1024xf32>, vector<6x1024xf32> -> vector<8x1024xf32>
    %c0_8 = arith.constant 0 : index
    %c0_9 = arith.constant 0 : index
    %11 = vector.load %arg4[%c0_8, %c0_9] : memref<8x1024xf32, #tpu.memory_space<vmem>>, vector<8x1024xf32>
    tpu.vector_store %arg4[%c0_8, %c0_9], %10 {strides = array<i32>} : memref<8x1024xf32, #tpu.memory_space<vmem>>, vector<8x1024xf32>,
    return
  }
  func.func @transform_0(%arg0: i32) -> (i32, i32) {
    %c0_i32 = arith.constant 0 : i32
    %c0_i32_0 = arith.constant 0 : i32
    return %arg0, %c0_i32 : i32, i32
  }
  func.func @transform_1(%arg0: i32) -> (i32, i32) {
    %c0_i32 = arith.constant 0 : i32
    %c0_i32_0 = arith.constant 0 : i32
    %c0_i32_1 = arith.constant 0 : i32
    return %c0_i32, %c0_i32_0 : i32, i32
  }
  func.func @transform_2(%arg0: i32) -> (i32, i32) {
    %c0_i32 = arith.constant 0 : i32
    %c0_i32_0 = arith.constant 0 : i32
    return %arg0, %c0_i32 : i32, i32
  }
  func.func @transform_3(%arg0: i32) -> (i32, i32) {
    %c0_i32 = arith.constant 0 : i32
    %c0_i32_0 = arith.constant 0 : i32
    return %arg0, %c0_i32 : i32, i32
  }
}

module attributes {stable_mosaic.version = 11 : i64} {
  func.func @_bn_relu_linear2_kernel(%arg0: i32, %arg1: memref<8x1024xf32, #tpu.memory_space<vmem>>, %arg2: memref<1x1024xf32, #tpu.memory_space<vmem>>, %arg3: memref<1x1024xf32, #tpu.memory_space<vmem>>, %arg4: memref<1024x128xf32, #tpu.memory_space<vmem>>, %arg5: memref<1x128xf32, #tpu.memory_space<vmem>>, %arg6: memref<8x128xf32, #tpu.memory_space<vmem>>) attributes {dimension_semantics = [#tpu.dimension_semantics<parallel>], iteration_bounds = array<i64: 1>, scalar_prefetch = 0 : i64, scratch_operands = 0 : i64, tpu.core_type = #tpu.core_type<tc>, window_params = [{transform_indices = @transform_0, window_bounds = array<i64: 8, 1024>}, {pipeline_mode = #tpu.pipeline_mode<synchronous>, transform_indices = @transform_1, window_bounds = array<i64: 1, 1024>}, {pipeline_mode = #tpu.pipeline_mode<synchronous>, transform_indices = @transform_2, window_bounds = array<i64: 1, 1024>}, {pipeline_mode = #tpu.pipeline_mode<synchronous>, transform_indices = @transform_3, window_bounds = array<i64: 1024, 128>}, {pipeline_mode = #tpu.pipeline_mode<synchronous>, transform_indices = @transform_4, window_bounds = array<i64: 1, 128>}, {transform_indices = @transform_5, window_bounds = array<i64: 8, 128>}]} {
    %c0 = arith.constant 0 : index
    %c0_0 = arith.constant 0 : index
    %0 = vector.load %arg1[%c0, %c0_0] : memref<8x1024xf32, #tpu.memory_space<vmem>>, vector<8x1024xf32>
    %c0_1 = arith.constant 0 : index
    %c0_2 = arith.constant 0 : index
    %1 = vector.load %arg2[%c0_1, %c0_2] : memref<1x1024xf32, #tpu.memory_space<vmem>>, vector<1x1024xf32>
    %2 = vector.broadcast %1 : vector<1x1024xf32> to vector<8x1024xf32>
    %3 = arith.mulf %0, %2 : vector<8x1024xf32>
    %c0_3 = arith.constant 0 : index
    %c0_4 = arith.constant 0 : index
    %4 = vector.load %arg3[%c0_3, %c0_4] : memref<1x1024xf32, #tpu.memory_space<vmem>>, vector<1x1024xf32>
    %5 = vector.broadcast %4 : vector<1x1024xf32> to vector<8x1024xf32>
    %6 = arith.addf %3, %5 : vector<8x1024xf32>
    %cst = arith.constant 0.000000e+00 : f32
    %7 = vector.broadcast %cst : f32 to vector<8x1024xf32>
    %8 = arith.maximumf %6, %7 : vector<8x1024xf32>
    %c0_5 = arith.constant 0 : index
    %c0_6 = arith.constant 0 : index
    %9 = vector.load %arg4[%c0_5, %c0_6] : memref<1024x128xf32, #tpu.memory_space<vmem>>, vector<1024x128xf32>
    %cst_7 = arith.constant dense<0.000000e+00> : vector<8x128xf32>
    %10 = tpu.matmul %8, %9, %cst_7 {dimension_numbers = #tpu.dot_dimension_numbers<[1], [0], [0], [1], [0, 0, 1, 1], [], []>} : vector<8x1024xf32>, vector<1024x128xf32>, vector<8x128xf32> -> vector<8x128xf32>
    %c0_8 = arith.constant 0 : index
    %c0_9 = arith.constant 0 : index
    %11 = vector.load %arg5[%c0_8, %c0_9] : memref<1x128xf32, #tpu.memory_space<vmem>>, vector<1x128xf32>
    %12 = vector.broadcast %11 : vector<1x128xf32> to vector<8x128xf32>
    %13 = arith.addf %10, %12 : vector<8x128xf32>
    %cst_10 = arith.constant 0.000000e+00 : f32
    %14 = vector.broadcast %cst_10 : f32 to vector<8x128xf32>
    %15 = arith.subf %14, %13 : vector<8x128xf32>
    %16 = math.exp %15 : vector<8x128xf32>
    %cst_11 = arith.constant 1.000000e+00 : f32
    %17 = vector.broadcast %cst_11 : f32 to vector<8x128xf32>
    %18 = arith.addf %17, %16 : vector<8x128xf32>
    %cst_12 = arith.constant 1.000000e+00 : f32
    %19 = vector.broadcast %cst_12 : f32 to vector<8x128xf32>
    %20 = arith.divf %19, %18 : vector<8x128xf32>
    %c0_13 = arith.constant 0 : index
    %c0_14 = arith.constant 0 : index
    %21 = vector.load %arg6[%c0_13, %c0_14] : memref<8x128xf32, #tpu.memory_space<vmem>>, vector<8x128xf32>
    tpu.vector_store %arg6[%c0_13, %c0_14], %20 {strides = array<i32>} : memref<8x128xf32, #tpu.memory_space<vmem>>, vector<8x128xf32>,
    return
  }
  func.func @transform_0(%arg0: i32) -> (i32, i32) {
    %c0_i32 = arith.constant 0 : i32
    %c0_i32_0 = arith.constant 0 : i32
    return %arg0, %c0_i32 : i32, i32
  }
  func.func @transform_1(%arg0: i32) -> (i32, i32) {
    %c0_i32 = arith.constant 0 : i32
    %c0_i32_0 = arith.constant 0 : i32
    %c0_i32_1 = arith.constant 0 : i32
    return %c0_i32, %c0_i32_0 : i32, i32
  }
  func.func @transform_2(%arg0: i32) -> (i32, i32) {
    %c0_i32 = arith.constant 0 : i32
    %c0_i32_0 = arith.constant 0 : i32
    %c0_i32_1 = arith.constant 0 : i32
    return %c0_i32, %c0_i32_0 : i32, i32
  }
  func.func @transform_3(%arg0: i32) -> (i32, i32) {
    %c0_i32 = arith.constant 0 : i32
    %c0_i32_0 = arith.constant 0 : i32
    %c0_i32_1 = arith.constant 0 : i32
    return %c0_i32, %c0_i32_0 : i32, i32
  }
  func.func @transform_4(%arg0: i32) -> (i32, i32) {
    %c0_i32 = arith.constant 0 : i32
    %c0_i32_0 = arith.constant 0 : i32
    %c0_i32_1 = arith.constant 0 : i32
    return %c0_i32, %c0_i32_0 : i32, i32
  }
  func.func @transform_5(%arg0: i32) -> (i32, i32) {
    %c0_i32 = arith.constant 0 : i32
    %c0_i32_0 = arith.constant 0 : i32
    return %arg0, %c0_i32 : i32, i32
  }
}

</mosaic_0001>

<bundles_post_ra>
// kernel: mlp_forward.3
= control target key start
LH: loop header
LB: loop body
LE: loop exit
PB: predicated region body
PF: predicated region fallthrough
CT: control target
= control target key end

     0   :  { %v31_v47 = vlaneseq  ;;  %s1361_s0 = inlined_call_operand.vmem [shape: f32[8,1024], index: 0, kind: input, shape index: {}]   ;;  %s1362_s1 = inlined_call_operand.vmem [shape: f32[1,1024], index: 1, kind: input, shape index: {}]   ;;  %s1363_s2 = inlined_call_operand.vmem [shape: f32[1,1024], index: 2, kind: input, shape index: {}]   ;;  %s1364_s3 = inlined_call_operand.vmem [shape: f32[1024,128], index: 3, kind: input, shape index: {}]   ;;  %s1365_s4 = inlined_call_operand.vmem [shape: f32[1,128], index: 4, kind: input, shape index: {}]   ;;  %s1366_s5 = inlined_call_operand.hbm [shape: f32[8,128], index: 5, kind: output, shape index: {}]  }
   0x1   :  { %v153_v0 = vld [vmem:[%s1364_s3 + $0x80] sm:$0xff]  ;;  %v154_v1 = vld [vmem:[%s1364_s3 + $0x88] sm:$0xff]  ;;  %v155_v11 = vld [vmem:[%s1364_s3 + $0x90] sm:$0xff] }
   0x2   :  { %v137_v2 = vld [vmem:[%s1364_s3] sm:$0xff]  ;;  %v714_v3 = vpack.c.bf16 %v154_v1, %v153_v0  ;;  %v138_v4 = vld [vmem:[%s1364_s3 + $0x8] sm:$0xff]  ;;  %v156_v13 = vld [vmem:[%s1364_s3 + $0x98] sm:$0xff]  ;;  %v1028_v61 = vshrl.u32 %v31_v47, 7 }
   0x3   :  { %v185_v5 = vld [vmem:[%s1364_s3 + $0x180] sm:$0xff]  ;;  %v186_v6 = vld [vmem:[%s1364_s3 + $0x188] sm:$0xff]  ;;  %v716_v7 = vpack.c.bf16 %v138_v4, %v137_v2  ;;  %v139_v14 = vld [vmem:[%s1364_s3 + $0x10] sm:$0xff]  ;;  %v718_v16 = vpack.c.bf16 %v156_v13, %v155_v11 }
   0x4   :  { %v746_v8 = vpack.c.bf16 %v186_v6, %v185_v5  ;;  %v169_v9 = vld [vmem:[%s1364_s3 + $0x100] sm:$0xff]  ;;  %v170_v10 = vld [vmem:[%s1364_s3 + $0x108] sm:$0xff]  ;;  %715 = vmatprep.subr.bf16.mxu0 %v714_v3  ;;  %v140_v15 = vld [vmem:[%s1364_s3 + $0x18] sm:$0xff]  ;;  %v33_v11 = vsub.s32 0, %v1028_v61 }
   0x5   :  { %v748_v12 = vpack.c.bf16 %v170_v10, %v169_v9  ;;  %717 = vmatpush3.bf16.msra.mxu0 %v716_v7  ;;  %v720_v17 = vpack.c.bf16 %v140_v15, %v139_v14  ;;  %v187_v18 = vld [vmem:[%s1364_s3 + $0x190] sm:$0xff]  ;;  %v188_v19 = vld [vmem:[%s1364_s3 + $0x198] sm:$0xff]  ;;  %v157_v23 = vld [vmem:[%s1364_s3 + $0xa0] sm:$0xff]  ;;  %v37_v10 = vsub.s32 1, %v1028_v61 }
   0x6   :  { %747 = vmatprep.subr.bf16.mxu1 %v746_v8  ;;  %v171_v20 = vld [vmem:[%s1364_s3 + $0x110] sm:$0xff]  ;;  %v750_v21 = vpack.c.bf16 %v188_v19, %v187_v18  ;;  %v172_v22 = vld [vmem:[%s1364_s3 + $0x118] sm:$0xff]  ;;  %v158_v24 = vld [vmem:[%s1364_s3 + $0xa8] sm:$0xff]  ;;  %719 = vmatprep.subr.bf16.mxu0 %v718_v16  ;;  %v41_v16 = vsub.s32 2, %v1028_v61 }
   0x7   :  { %749 = vmatpush3.bf16.msra.mxu1 %v748_v12  ;;  %v752_v25 = vpack.c.bf16 %v172_v22, %v171_v20  ;;  %v722_v26 = vpack.c.bf16 %v158_v24, %v157_v23  ;;  %v141_v27 = vld [vmem:[%s1364_s3 + $0x20] sm:$0xff]  ;;  %v142_v28 = vld [vmem:[%s1364_s3 + $0x28] sm:$0xff]  ;;  %v159_v35 = vld [vmem:[%s1364_s3 + $0xb0] sm:$0xff]  ;;  %v45_v12 = vsub.s32 3, %v1028_v61 }
   0x8   :  { %v189_v29 = vld [vmem:[%s1364_s3 + $0x1a0] sm:$0xff]  ;;  %751 = vmatprep.subr.bf16.mxu1 %v750_v21  ;;  %v190_v30 = vld [vmem:[%s1364_s3 + $0x1a8] sm:$0xff]  ;;  %v724_v33 = vpack.c.bf16 %v142_v28, %v141_v27  ;;  %v160_v36 = vld [vmem:[%s1364_s3 + $0xb8] sm:$0xff] }
   0x9   :  { %v173_v31 = vld [vmem:[%s1364_s3 + $0x120] sm:$0xff]  ;;  %v174_v32 = vld [vmem:[%s1364_s3 + $0x128] sm:$0xff]  ;;  %721 = vmatpush3.bf16.msra.mxu0 %v720_v17  ;;  %v754_v34 = vpack.c.bf16 %v190_v30, %v189_v29  ;;  %v143_v37 = vld [vmem:[%s1364_s3 + $0x30] sm:$0xff]  ;;  %v726_v39 = vpack.c.bf16 %v160_v36, %v159_v35 }
   0xa   :  { %723 = vmatprep.subr.bf16.mxu0 %v722_v26  ;;  %v756_v38 = vpack.c.bf16 %v174_v32, %v173_v31  ;;  %v144_v40 = vld [vmem:[%s1364_s3 + $0x38] sm:$0xff]  ;;  %v191_v41 = vld [vmem:[%s1364_s3 + $0x1b0] sm:$0xff]  ;;  %v161_v46 = vld [vmem:[%s1364_s3 + $0xc0] sm:$0xff] }
   0xb   :  { %753 = vmatpush3.bf16.msra.mxu1 %v752_v25  ;;  %v192_v42 = vld [vmem:[%s1364_s3 + $0x1b8] sm:$0xff]  ;;  %v175_v44 = vld [vmem:[%s1364_s3 + $0x130] sm:$0xff]  ;;  %v162_v48 = vld [vmem:[%s1364_s3 + $0xc8] sm:$0xff]  ;;  %v728_v49 = vpack.c.bf16 %v144_v40, %v143_v37 }
   0xc   :  { %755 = vmatprep.subr.bf16.mxu1 %v754_v34  ;;  %v758_v43 = vpack.c.bf16 %v192_v42, %v191_v41  ;;  %v176_v45 = vld [vmem:[%s1364_s3 + $0x138] sm:$0xff]  ;;  %v193_v50 = vld [vmem:[%s1364_s3 + $0x1c0] sm:$0xff]  ;;  %v194_v51 = vld [vmem:[%s1364_s3 + $0x1c8] sm:$0xff]  ;;  %v730_v53 = vpack.c.bf16 %v162_v48, %v161_v46 }
   0xd   :  { %725 = vmatpush3.bf16.msra.mxu0 %v724_v33  ;;  %v760_v52 = vpack.c.bf16 %v176_v45, %v175_v44  ;;  %v145_v54 = vld [vmem:[%s1364_s3 + $0x40] sm:$0xff]  ;;  %v146_v55 = vld [vmem:[%s1364_s3 + $0x48] sm:$0xff]  ;;  %v762_v57 = vpack.c.bf16 %v194_v51, %v193_v50  ;;  %v163_v59 = vld [vmem:[%s1364_s3 + $0xd0] sm:$0xff] }
   0xe   :  { %727 = vmatprep.subr.bf16.mxu0 %v726_v39  ;;  %v177_v56 = vld [vmem:[%s1364_s3 + $0x140] sm:$0xff]  ;;  %v178_v58 = vld [vmem:[%s1364_s3 + $0x148] sm:$0xff]  ;;  %v164_v60 = vld [vmem:[%s1364_s3 + $0xd8] sm:$0xff]  ;;  %v732_v0 = vpack.c.bf16 %v146_v55, %v145_v54 }
   0xf   :  { %757 = vmatpush3.bf16.msra.mxu1 %v756_v38  ;;  %v195_v62 = vld [vmem:[%s1364_s3 + $0x1d0] sm:$0xff]  ;;  %v196_v63 = vld [vmem:[%s1364_s3 + $0x1d8] sm:$0xff]  ;;  %v764_v1 = vpack.c.bf16 %v178_v58, %v177_v56  ;;  %v734_v2 = vpack.c.bf16 %v164_v60, %v163_v59  ;;  %v165_v8 = vld [vmem:[%s1364_s3 + $0xe0] sm:$0xff] }
  0x10   :  { %759 = vmatprep.subr.bf16.mxu1 %v758_v43  ;;  %v147_v3 = vld [vmem:[%s1364_s3 + $0x50] sm:$0xff]  ;;  %v148_v4 = vld [vmem:[%s1364_s3 + $0x58] sm:$0xff]  ;;  %v766_v6 = vpack.c.bf16 %v196_v63, %v195_v62  ;;  %v166_v9 = vld [vmem:[%s1364_s3 + $0xe8] sm:$0xff] }
  0x11   :  { %729 = vmatpush3.bf16.msra.mxu0 %v728_v49  ;;  %v179_v5 = vld [vmem:[%s1364_s3 + $0x150] sm:$0xff]  ;;  %v180_v7 = vld [vmem:[%s1364_s3 + $0x158] sm:$0xff]  ;;  %v149_v13 = vld [vmem:[%s1364_s3 + $0x60] sm:$0xff]  ;;  %v736_v17 = vpack.c.bf16 %v148_v4, %v147_v3  ;;  %v738_v22 = vpack.c.bf16 %v166_v9, %v165_v8 }
  0x12   :  { %731 = vmatprep.subr.bf16.mxu0 %v730_v53  ;;  %v197_v14 = vld [vmem:[%s1364_s3 + $0x1e0] sm:$0xff]  ;;  %v198_v15 = vld [vmem:[%s1364_s3 + $0x1e8] sm:$0xff]  ;;  %v768_v21 = vpack.c.bf16 %v180_v7, %v179_v5  ;;  %v167_v23 = vld [vmem:[%s1364_s3 + $0xf0] sm:$0xff] }
  0x13   :  { %761 = vmatpush3.bf16.msra.mxu1 %v760_v52  ;;  %v150_v18 = vld [vmem:[%s1364_s3 + $0x68] sm:$0xff]  ;;  %v181_v19 = vld [vmem:[%s1364_s3 + $0x160] sm:$0xff]  ;;  %v770_v26 = vpack.c.bf16 %v198_v15, %v197_v14  ;;  %v168_v27 = vld [vmem:[%s1364_s3 + $0xf8] sm:$0xff] }
  0x14   :  { %763 = vmatprep.subr.bf16.mxu1 %v762_v57  ;;  %v182_v20 = vld [vmem:[%s1364_s3 + $0x168] sm:$0xff]  ;;  %v1085_v25 = vld [vmem:[%s1362_s1] sm:$0xff]  ;;  %v199_v33 = vld [vmem:[%s1364_s3 + $0x1f0] sm:$0xff]  ;;  %v740_v40 = vpack.c.bf16 %v150_v18, %v149_v13  ;;  %v742_v46 = vpack.c.bf16 %v168_v27, %v167_v23 }
  0x15   :  { %733 = vmatpush3.bf16.msra.mxu0 %v732_v0  ;;  %v22_v24 = vld [vmem:[%s1361_s0 + $0x8] sm:$0xff]  ;;  %v38_v28 = vrot.slane %v1085_v25, %v37_v10  ;;  %v1094_v29 = vld [vmem:[%s1363_s2] sm:$0xff]  ;;  %v34_v31 = vrot.slane %v1085_v25, %v33_v11  ;;  %v46_v32 = vrot.slane %v1085_v25, %v45_v12  ;;  %v200_v34 = vld [vmem:[%s1364_s3 + $0x1f8] sm:$0xff]  ;;  %v42_v39 = vrot.slane %v1085_v25, %v41_v16 }
  0x16   :  { %735 = vmatprep.subr.bf16.mxu0 %v734_v2  ;;  %v21_v30 = vld [vmem:[%s1361_s0] sm:$0xff]  ;;  %v88_v35 = vrot.slane %v1094_v29, %v37_v10  ;;  %v84_v36 = vrot.slane %v1094_v29, %v33_v11  ;;  %v24_v37 = vld [vmem:[%s1361_s0 + $0x18] sm:$0xff]  ;;  %v96_v38 = vrot.slane %v1094_v29, %v45_v12  ;;  %v151_v41 = vld [vmem:[%s1364_s3 + $0x70] sm:$0xff]  ;;  %v772_v45 = vpack.c.bf16 %v182_v20, %v181_v19 }
  0x17   :  { %765 = vmatpush3.bf16.msra.mxu1 %v764_v1  ;;  %v72_v42 = vmul.f32 %v38_v28, %v22_v24  ;;  %v71_v43 = vmul.f32 %v34_v31, %v21_v30  ;;  %v74_v44 = vmul.f32 %v46_v32, %v24_v37  ;;  %v152_v47 = vld [vmem:[%s1364_s3 + $0x78] sm:$0xff]  ;;  %v183_v48 = vld [vmem:[%s1364_s3 + $0x170] sm:$0xff]  ;;  %v92_v50 = vrot.slane %v1094_v29, %v41_v16  ;;  %v217_v54 = vld [vmem:[%s1364_s3 + $0x280] sm:$0xff] }
  0x18   :  { %767 = vmatprep.subr.bf16.mxu1 %v766_v6  ;;  %v23_v49 = vld [vmem:[%s1361_s0 + $0x10] sm:$0xff]  ;;  %v774_v51 = vpack.c.bf16 %v200_v34, %v199_v33  ;;  %v184_v52 = vld [vmem:[%s1364_s3 + $0x178] sm:$0xff]  ;;  %v218_v55 = vld [vmem:[%s1364_s3 + $0x288] sm:$0xff]  ;;  %v744_v62 = vpack.c.bf16 %v152_v47, %v151_v41 }
  0x19   :  { %737 = vmatpush3.bf16.msra.mxu0 %v736_v17  ;;  %v122_v53 = vadd.f32 %v88_v35, %v72_v42  ;;  %v124_v56 = vadd.f32 %v96_v38, %v74_v44  ;;  %v73_v57 = vmul.f32 %v42_v39, %v23_v49  ;;  %v121_v58 = vadd.f32 %v84_v36, %v71_v43  ;;  %v249_v59 = vld [vmem:[%s1364_s3 + $0x380] sm:$0xff]  ;;  %v250_v60 = vld [vmem:[%s1364_s3 + $0x388] sm:$0xff]  ;;  %v219_v9 = vld [vmem:[%s1364_s3 + $0x290] sm:$0xff] }
  0x1a   :  { %739 = vmatprep.subr.bf16.mxu0 %v738_v22  ;;  %v776_v2 = vpack.c.bf16 %v184_v52, %v183_v48  ;;  %v778_v3 = vpack.c.bf16 %v218_v55, %v217_v54  ;;  %v201_v4 = vld [vmem:[%s1364_s3 + $0x200] sm:$0xff]  ;;  %v202_v5 = vld [vmem:[%s1364_s3 + $0x208] sm:$0xff]  ;;  %v810_v7 = vpack.c.bf16 %v250_v60, %v249_v59  ;;  %v220_v10 = vld [vmem:[%s1364_s3 + $0x298] sm:$0xff]  ;;  %v53_v35 = vsub.s32 5, %v1028_v61 }
  0x1b   :  { %769 = vmatpush3.bf16.msra.mxu1 %v768_v21  ;;  %v130_v63 = vmax.f32 %v122_v53, 0.0  ;;  %v132_v0 = vmax.f32 %v124_v56, 0.0  ;;  %v123_v1 = vadd.f32 %v92_v50, %v73_v57  ;;  %v233_v6 = vld [vmem:[%s1364_s3 + $0x300] sm:$0xff]  ;;  %v234_v8 = vld [vmem:[%s1364_s3 + $0x308] sm:$0xff]  ;;  %v129_v11 = vmax.f32 %v121_v58, 0.0  ;;  %v251_v12 = vld [vmem:[%s1364_s3 + $0x390] sm:$0xff] }
  0x1c   :  { %771 = vmatprep.subr.bf16.mxu1 %v770_v26  ;;  %v252_v13 = vld [vmem:[%s1364_s3 + $0x398] sm:$0xff]  ;;  %v780_v14 = vpack.c.bf16 %v202_v5, %v201_v4  ;;  %v812_v16 = vpack.c.bf16 %v234_v8, %v233_v6  ;;  %v782_v17 = vpack.c.bf16 %v220_v10, %v219_v9  ;;  %v203_v18 = vld [vmem:[%s1364_s3 + $0x210] sm:$0xff]  ;;  %v221_v23 = vld [vmem:[%s1364_s3 + $0x2a0] sm:$0xff]  ;;  %v54_v49 = vrot.slane %v1085_v25, %v53_v35 }
  0x1d   :  { %741 = vmatpush3.bf16.msra.mxu0 %v740_v40  ;;  %336 = vmatprep.mubr.f32.mxu0 %v130_v63  ;;  %v131_v15 = vmax.f32 %v123_v1, 0.0  ;;  %v204_v19 = vld [vmem:[%s1364_s3 + $0x218] sm:$0xff]  ;;  %v235_v20 = vld [vmem:[%s1364_s3 + $0x310] sm:$0xff]  ;;  %v814_v21 = vpack.c.bf16 %v252_v13, %v251_v12  ;;  %v222_v24 = vld [vmem:[%s1364_s3 + $0x2a8] sm:$0xff]  ;;  %v61_v40 = vsub.s32 7, %v1028_v61  ;;  %v104_v57 = vrot.slane %v1094_v29, %v53_v35 }
  0x1e   :  { %743 = vmatprep.subr.bf16.mxu0 %v742_v46  ;;  %406 = vmatprep.mubr.f32.mxu1 %v132_v0  ;;  %v236_v22 = vld [vmem:[%s1364_s3 + $0x318] sm:$0xff]  ;;  %v253_v26 = vld [vmem:[%s1364_s3 + $0x3a0] sm:$0xff]  ;;  %v254_v27 = vld [vmem:[%s1364_s3 + $0x3a8] sm:$0xff]  ;;  %v784_v28 = vpack.c.bf16 %v204_v19, %v203_v18  ;;  %v786_v31 = vpack.c.bf16 %v222_v24, %v221_v23 }
  0x1f   :  { %773 = vmatpush3.bf16.msra.mxu1 %v772_v45  ;;  %v816_v30 = vpack.c.bf16 %v236_v22, %v235_v20  ;;  %v205_v32 = vld [vmem:[%s1364_s3 + $0x220] sm:$0xff]  ;;  %v206_v33 = vld [vmem:[%s1364_s3 + $0x228] sm:$0xff]  ;;  %v818_v36 = vpack.c.bf16 %v254_v27, %v253_v26  ;;  %v223_v38 = vld [vmem:[%s1364_s3 + $0x2b0] sm:$0xff]  ;;  %v62_v54 = vrot.slane %v1085_v25, %v61_v40  ;;  %v112_v63 = vrot.slane %v1094_v29, %v61_v40 }
  0x20   :  { %775 = vmatprep.subr.bf16.mxu1 %v774_v51  ;;  %v237_v34 = vld [vmem:[%s1364_s3 + $0x320] sm:$0xff]  ;;  %v238_v37 = vld [vmem:[%s1364_s3 + $0x328] sm:$0xff]  ;;  %v224_v39 = vld [vmem:[%s1364_s3 + $0x2b8] sm:$0xff]  ;;  %v788_v43 = vpack.c.bf16 %v206_v33, %v205_v32 }
  0x21   :  { %745 = vmatpush3.bf16.msra.mxu0 %v744_v62  ;;  %v255_v41 = vld [vmem:[%s1364_s3 + $0x3b0] sm:$0xff]  ;;  %v256_v42 = vld [vmem:[%s1364_s3 + $0x3b8] sm:$0xff]  ;;  %v820_v44 = vpack.c.bf16 %v238_v37, %v237_v34  ;;  %v790_v45 = vpack.c.bf16 %v224_v39, %v223_v38  ;;  %v225_v52 = vld [vmem:[%s1364_s3 + $0x2c0] sm:$0xff] }
  0x22   :  { %779 = vmatprep.subr.bf16.mxu0 %v778_v3  ;;  %v207_v46 = vld [vmem:[%s1364_s3 + $0x230] sm:$0xff]  ;;  %v208_v47 = vld [vmem:[%s1364_s3 + $0x238] sm:$0xff]  ;;  %v822_v50 = vpack.c.bf16 %v256_v42, %v255_v41  ;;  %v226_v53 = vld [vmem:[%s1364_s3 + $0x2c8] sm:$0xff] }
  0x23   :  { %777 = vmatpush3.bf16.msra.mxu1 %v776_v2  ;;  %v239_v48 = vld [vmem:[%s1364_s3 + $0x330] sm:$0xff]  ;;  %v240_v51 = vld [vmem:[%s1364_s3 + $0x338] sm:$0xff]  ;;  %v257_v55 = vld [vmem:[%s1364_s3 + $0x3c0] sm:$0xff]  ;;  %v792_v58 = vpack.c.bf16 %v208_v47, %v207_v46  ;;  %v794_v1 = vpack.c.bf16 %v226_v53, %v225_v52 }
  0x24   :  { %811 = vmatprep.subr.bf16.mxu1 %v810_v7  ;;  %337 = vmatmul.mubr.f32.vlgmr.msra.gmra.mrb[0].mxu0 %v129_v11  ;;  %v258_v56 = vld [vmem:[%s1364_s3 + $0x3c8] sm:$0xff]  ;;  %v209_v59 = vld [vmem:[%s1364_s3 + $0x240] sm:$0xff]  ;;  %v824_v0 = vpack.c.bf16 %v240_v51, %v239_v48  ;;  %v28_v5 = vld [vmem:[%s1361_s0 + $0x38] sm:$0xff] }
  0x25   :  { %781 = vmatpush3.bf16.msra.mxu0 %v780_v14  ;;  %v210_v60 = vld [vmem:[%s1364_s3 + $0x248] sm:$0xff]  ;;  %v241_v2 = vld [vmem:[%s1364_s3 + $0x340] sm:$0xff]  ;;  %v826_v6 = vpack.c.bf16 %v258_v56, %v257_v55  ;;  %v227_v7 = vld [vmem:[%s1364_s3 + $0x2d0] sm:$0xff]  ;;  %v78_v9 = vmul.f32 %v62_v54, %v28_v5 }
  0x26   :  { %407 = vmatmul.mubr.f32.vlgmr.msra.gmra.mrb[0].mxu1 %v131_v15  ;;  %783 = vmatprep.subr.bf16.mxu0 %v782_v17  ;;  %v26_v62 = vld [vmem:[%s1361_s0 + $0x28] sm:$0xff]  ;;  %v228_v8 = vld [vmem:[%s1364_s3 + $0x2d8] sm:$0xff] }
  0x27   :  { %813 = vmatpush3.bf16.msra.mxu1 %v812_v16  ;;  %v242_v3 = vld [vmem:[%s1364_s3 + $0x348] sm:$0xff]  ;;  %v76_v4 = vmul.f32 %v54_v49, %v26_v62 }
  0x28   :  { %815 = vmatprep.subr.bf16.mxu1 %v814_v21 }
  0x29   :  { %785 = vmatpush3.bf16.msra.mxu0 %v784_v28 }
  0x2a   :  { %787 = vmatprep.subr.bf16.mxu0 %v786_v31 }
  0x2b   :  { %817 = vmatpush3.bf16.msra.mxu1 %v816_v30 }
  0x2c   :  { %819 = vmatprep.subr.bf16.mxu1 %v818_v36 }
  0x2d   :  { %789 = vmatpush3.bf16.msra.mxu0 %v788_v43 }
  0x2e   :  { %791 = vmatprep.subr.bf16.mxu0 %v790_v45 }
  0x2f   :  { %821 = vmatpush3.bf16.msra.mxu1 %v820_v44 }
  0x30   :  { %823 = vmatprep.subr.bf16.mxu1 %v822_v50 }
  0x31   :  { %10 = vsyncpa [#allocation3], 0  ;;  %v259_v10 = vld [vmem:[%s1364_s3 + $0x3d0] sm:$0xff]  ;;  %v260_v11 = vld [vmem:[%s1364_s3 + $0x3d8] sm:$0xff]  ;;  %v126_v12 = vadd.f32 %v104_v57, %v76_v4  ;;  %v49_v13 = vsub.s32 4, %v1028_v61  ;;  %793 = vmatpush3.bf16.msra.mxu0 %v792_v58  ;;  %v796_v14 = vpack.c.bf16 %v210_v60, %v209_v59  ;;  %v128_v15 = vadd.f32 %v112_v63, %v78_v9 }
  0x32   :  { %v57_v16 = vsub.s32 6, %v1028_v61  ;;  %795 = vmatprep.subr.bf16.mxu0 %v794_v1  ;;  %v828_v17 = vpack.c.bf16 %v242_v3, %v241_v2  ;;  %v798_v18 = vpack.c.bf16 %v228_v8, %v227_v7  ;;  %v211_v19 = vld [vmem:[%s1364_s3 + $0x250] sm:$0xff]  ;;  %v212_v20 = vld [vmem:[%s1364_s3 + $0x258] sm:$0xff]  ;;  %v830_v23 = vpack.c.bf16 %v260_v11, %v259_v10  ;;  %v229_v24 = vld [vmem:[%s1364_s3 + $0x2e0] sm:$0xff] }
  0x33   :  { %825 = vmatpush3.bf16.msra.mxu1 %v824_v0  ;;  %v243_v21 = vld [vmem:[%s1364_s3 + $0x350] sm:$0xff]  ;;  %v134_v22 = vmax.f32 %v126_v12, 0.0  ;;  %v244_v61 = vld [vmem:[%s1364_s3 + $0x358] sm:$0xff]  ;;  %v230_v26 = vld [vmem:[%s1364_s3 + $0x2e8] sm:$0xff]  ;;  %v136_v27 = vmax.f32 %v128_v15, 0.0  ;;  %v50_v31 = vrot.slane %v1085_v25, %v49_v13  ;;  %v800_v32 = vpack.c.bf16 %v212_v20, %v211_v19 }
  0x34   :  { %827 = vmatprep.subr.bf16.mxu1 %v826_v6  ;;  %v261_v28 = vld [vmem:[%s1364_s3 + $0x3e0] sm:$0xff]  ;;  %v262_v30 = vld [vmem:[%s1364_s3 + $0x3e8] sm:$0xff]  ;;  %v58_v35 = vrot.slane %v1085_v25, %v57_v16  ;;  %v832_v36 = vpack.c.bf16 %v244_v61, %v243_v21  ;;  %v802_v37 = vpack.c.bf16 %v230_v26, %v229_v24  ;;  %v27_v40 = vld [vmem:[%s1361_s0 + $0x30] sm:$0xff]  ;;  %v100_v47 = vrot.slane %v1094_v29, %v49_v13 }
  0x35   :  { %476 = vmatprep.mubr.f32.mxu0 %v134_v22  ;;  %797 = vmatpush3.bf16.msra.mxu0 %v796_v14  ;;  %v213_v33 = vld [vmem:[%s1364_s3 + $0x260] sm:$0xff]  ;;  %v214_v38 = vld [vmem:[%s1364_s3 + $0x268] sm:$0xff]  ;;  %v834_v41 = vpack.c.bf16 %v262_v30, %v261_v28  ;;  %v231_v42 = vld [vmem:[%s1364_s3 + $0x2f0] sm:$0xff]  ;;  %v108_v50 = vrot.slane %v1094_v29, %v57_v16 }
  0x36   :  { %v25_v34 = vld [vmem:[%s1361_s0 + $0x20] sm:$0xff]  ;;  %546 = vmatprep.mubr.f32.mxu1 %v136_v27  ;;  %799 = vmatprep.subr.bf16.mxu0 %v798_v18  ;;  %v246_v25 = vld [vmem:[%s1364_s3 + $0x368] sm:$0xff]  ;;  %v232_v43 = vld [vmem:[%s1364_s3 + $0x2f8] sm:$0xff]  ;;  %v804_v48 = vpack.c.bf16 %v214_v38, %v213_v33  ;;  %v77_v49 = vmul.f32 %v58_v35, %v27_v40 }
  0x37   :  { %829 = vmatpush3.bf16.msra.mxu1 %v828_v17  ;;  %v245_v39 = vld [vmem:[%s1364_s3 + $0x360] sm:$0xff]  ;;  %v263_v44 = vld [vmem:[%s1364_s3 + $0x3f0] sm:$0xff]  ;;  %v264_v45 = vld [vmem:[%s1364_s3 + $0x3f8] sm:$0xff]  ;;  %v75_v46 = vmul.f32 %v50_v31, %v25_v34  ;;  %v806_v52 = vpack.c.bf16 %v232_v43, %v231_v42 }
  0x38   :  { %831 = vmatprep.subr.bf16.mxu1 %v830_v23  ;;  %v836_v51 = vpack.c.bf16 %v246_v25, %v245_v39  ;;  %v215_v53 = vld [vmem:[%s1364_s3 + $0x270] sm:$0xff]  ;;  %v216_v54 = vld [vmem:[%s1364_s3 + $0x278] sm:$0xff]  ;;  %v838_v55 = vpack.c.bf16 %v264_v45, %v263_v44  ;;  %v127_v59 = vadd.f32 %v108_v50, %v77_v49  ;;  %v573_v1 = vld [vmem:[%s1365_s4] ss:$0 sm:$0xff] }
  0x39   :  { %801 = vmatpush3.bf16.msra.mxu0 %v800_v32  ;;  %v247_v56 = vld [vmem:[%s1364_s3 + $0x370] sm:$0xff]  ;;  %v248_v29 = vld [vmem:[%s1364_s3 + $0x378] sm:$0xff]  ;;  %v125_v57 = vadd.f32 %v100_v47, %v75_v46  ;;  %v808_v58 = vpack.c.bf16 %v216_v54, %v215_v53  ;;  %s871_s3 = smov [#allocation2]  }
  0x3a   :  { %803 = vmatprep.subr.bf16.mxu0 %v802_v37  ;;  %v840_v60 = vpack.c.bf16 %v248_v29, %v247_v56  ;;  %v135_v63 = vmax.f32 %v127_v59, 0.0  ;;  %s565_s4 = sshll.u32 %s871_s3, 4  ;;  %s566_s4 = int_to_ptr.vmem [resolvable:$true] %s565_s4 }
  0x3b   :  { %833 = vmatpush3.bf16.msra.mxu1 %v832_v36  ;;  %v133_v62 = vmax.f32 %v125_v57, 0.0  ;;  %s847_s8 = scalar_lea.vmem %s566_s4, 128  ;;  %p852_p1 = scmp.lt.s32.totalorder %s566_s4, %s566_s4 }
  0x3c   :  { %835 = vmatprep.subr.bf16.mxu1 %v834_v41  ;;  %p848_p0 = scmp.ne.s32.totalorder %s566_s4, %s847_s8  ;;  %p853_p2 = scmp.lt.s32.totalorder %s847_s8, %s847_s8 }
  0x3d   :  { %805 = vmatpush3.bf16.msra.mxu0 %v804_v48 }
  0x3e   :  { %807 = vmatprep.subr.bf16.mxu0 %v806_v52  ;;  %p854_p3 = por %p853_p2, %p852_p1 }
  0x3f   :  { %837 = vmatpush3.bf16.msra.mxu1 %v836_v51 }
  0x40   :  { %839 = vmatprep.subr.bf16.mxu1 %v838_v55  ;;  %p855_p4 = pnand %p854_p3, %p848_p0 }
  0x41   :  { %809 = vmatpush3.bf16.msra.mxu0 %v808_v58 }
  0x43   :  { %841 = vmatpush3.bf16.msra.mxu1 %v840_v60 }
  0x44   :  { %477 = vmatmul.mubr.f32.vlgmr.msra.gmra.mrb[2].mxu0 %v133_v62 }
  0x46   :  { %547 = vmatmul.mubr.f32.vlgmr.msra.gmra.mrb[2].mxu1 %v135_v63 }
  0xf7   :  { %v606_v0 = vpop.f32.mrb[0].mxu0 }
  0xf8   :  { %v607_v2 = vpop.f32.mrb[1].mxu0 }
  0xf9   :  { %v641_v3 = vpop.f32.mrb[0].mxu1  ;;  %v608_v4 = vadd.f32 %v607_v2, %v606_v0 }
  0xfa   :  { %v642_v5 = vpop.f32.mrb[1].mxu1 }
  0xfb   :  { %v643_v6 = vadd.f32 %v642_v5, %v641_v3  ;;  %v339_v7 = vadd.f32 %v608_v4, %v573_v1 }
  0xfd   :  { %v409_v8 = vadd.f32 %v643_v6, %v339_v7 }
 0x117   :  { %v676_v9 = vpop.f32.mrb[2].mxu0 }
 0x118   :  { %v677_v10 = vpop.f32.mrb[3].mxu0 }
 0x119   :  { %v711_v11 = vpop.f32.mrb[2].mxu1  ;;  %v678_v12 = vadd.f32 %v677_v10, %v676_v9 }
 0x11a   :  { %v712_v13 = vpop.f32.mrb[3].mxu1 }
 0x11b   :  { %v713_v14 = vadd.f32 %v712_v13, %v711_v11  ;;  %v479_v15 = vadd.f32 %v678_v12, %v409_v8 }
 0x11d   :  { %v549_v16 = vadd.f32 %v713_v14, %v479_v15 }
 0x11f   :  { %v552_v17 = vsub.f32 0.0, %v549_v16 }
 0x121   :  { %v553_v18 = vmul.f32 1.442695, %v552_v17 }
 0x123   :  { %843 = vpow2.f32 %v553_v18 }
 0x12d   :  { %v844_v19 = vpop.eup %843 }
 0x12e   :  { %v555_v20 = vadd.f32 1.0, %v844_v19 }
 0x130   :  { %845 = vrcp.f32 %v555_v20 }
 0x13a   :  { %v846_v21 = vpop.eup %845 }
 0x13b   :  { %558 = vst [vmem:[#allocation2] sm:$0xff] %v846_v21 }
 0x13c   :  { %858 = shalt.err (!%p855_p4)
}
 0x13d   :  { %s859_s11 = scalar_lea.hbm %s1366_s5, 128 }
 0x13e   :  { %p860_p5 = scmp.ne.s32.totalorder %s1366_s5, %s859_s11  ;;  %p863_p6 = scmp.lt.u32.totalorder %s859_s11, %s1366_s5 }
 0x140   :  { %p865_p7 = pnand %p863_p6, %p860_p5 }
 0x142   :  { %868 = shalt.err (!%p865_p7)
}
 0x143   :  { %568 = dma.vmem_to_hbm [thread:$0]  %s566_s4, 128, %s1366_s5, [#allocation3]  }
 0x144   :  { %869 = dma.done.wait [#allocation3], 128  }
 0x145   :  { %870 = vsyncadd [#allocation3], 4294967168 }
 0x146   :  { %572 = vsyncpa [#allocation3], 1 }

// kernel: mlp_forward.2
= control target key start
LH: loop header
LB: loop body
LE: loop exit
PB: predicated region body
PF: predicated region fallthrough
CT: control target
= control target key end

     0   :  { %9 = vsyncpa [#allocation3], 0  ;;  %s2617_s12 = smov [#allocation2]   ;;  %s2752_s0 = inlined_call_operand.vmem [shape: f32[8,768], index: 0, kind: input, shape index: {}]   ;;  %s2753_s1 = inlined_call_operand.hbm [shape: f32[768,1024], index: 1, kind: input, shape index: {}]   ;;  %s2754_s2 = inlined_call_operand.vmem [shape: f32[8,1024], index: 2, kind: output, shape index: {0}]   ;;  %s2755_s3 = inlined_call_operand.vmem [shape: f32[8,1024], index: 3, kind: output, shape index: {1}]  }
   0x1   :  { %s17_s13 = sshll.u32 %s2617_s12, 4  ;;  %s2593_s16 = scalar_lea.hbm %s2753_s1, 98304  ;;  %s18_s13 = int_to_ptr.vmem [resolvable:$true] %s17_s13 }
   0x2   :  { %p2594_p0 = scmp.ne.s32.totalorder %s2753_s1, %s2593_s16  ;;  %p2597_p1 = scmp.lt.u32.totalorder %s2593_s16, %s2753_s1 }
   0x4   :  { %p2599_p2 = pnand %p2597_p1, %p2594_p0 }
   0x6   :  { %2602 = shalt.err (!%p2599_p2)
}
   0x7   :  { %s2603_s21 = scalar_lea.vmem %s18_s13, 98304  ;;  %p2608_p4 = scmp.lt.s32.totalorder %s18_s13, %s18_s13 }
   0x8   :  { %p2604_p3 = scmp.ne.s32.totalorder %s18_s13, %s2603_s21  ;;  %p2609_p5 = scmp.lt.s32.totalorder %s2603_s21, %s2603_s21 }
   0xa   :  { %p2610_p6 = por %p2609_p5, %p2608_p4 }
   0xc   :  { %p2611_p7 = pnand %p2610_p6, %p2604_p3 }
   0xe   :  { %2614 = shalt.err (!%p2611_p7)
}
   0xf   :  { %s2618_s22 = smov 1024   ;;  %s2619_s23 = smov 64  }
  0x10   :  { %23 = dma.hbm_to_vmem [thread:$0]  %s2753_s1, 98304, %s18_s13, [#allocation3], %s2618_s22, %s2618_s22, %s2619_s23  }
  0x11   :  { %2615 = dma.done.wait [#allocation3], 98304  }
  0x12   :  { %2616 = vsyncadd [#allocation3], 4294868992  ;;  %v34_v0 = vld [vmem:[#allocation2 + $0x8] sm:$0xff]  ;;  %v36_v2 = vld [vmem:[#allocation2 + $0x18] sm:$0xff]  ;;  %vm1765_vm0 = vcmask 1040384   ;;  %vm1774_vm1 = vcmask 1041408  }
  0x13   :  { %v42_v1 = vld [vmem:[#allocation2 + $0x48] sm:$0xff]  ;;  %v44_v4 = vld [vmem:[#allocation2 + $0x58] sm:$0xff]  ;;  %v33_v5 = vld [vmem:[#allocation2] sm:$0xff] }
  0x14   :  { %v1800_v3 = vpack.c.bf16 %v42_v1, %v34_v0  ;;  %v41_v6 = vld [vmem:[#allocation2 + $0x40] sm:$0xff]  ;;  %v1992_v7 = vpack.c.bf16 %v44_v4, %v36_v2  ;;  %v35_v9 = vld [vmem:[#allocation2 + $0x10] sm:$0xff]  ;;  %v50_v11 = vld [vmem:[#allocation2 + $0x88] sm:$0xff] }
  0x15   :  { %v1802_v8 = vpack.c.bf16 %v41_v6, %v33_v5  ;;  %v43_v10 = vld [vmem:[#allocation2 + $0x50] sm:$0xff]  ;;  %v58_v13 = vld [vmem:[#allocation2 + $0xc8] sm:$0xff]  ;;  %v52_v14 = vld [vmem:[#allocation2 + $0x98] sm:$0xff] }
  0x16   :  { %1801 = vmatprep.subr.bf16.mxu0 %v1800_v3  ;;  %v1994_v12 = vpack.c.bf16 %v43_v10, %v35_v9  ;;  %v60_v15 = vld [vmem:[#allocation2 + $0xd8] sm:$0xff]  ;;  %1993 = vmatprep.subr.bf16.mxu1 %v1992_v7  ;;  %v1804_v16 = vpack.c.bf16 %v58_v13, %v50_v11  ;;  %v49_v18 = vld [vmem:[#allocation2 + $0x80] sm:$0xff]  ;;  %v51_v20 = vld [vmem:[#allocation2 + $0x90] sm:$0xff] }
  0x17   :  { %1803 = vmatpush1.bf16.msra.mxu0 %v1802_v8  ;;  %v1996_v17 = vpack.c.bf16 %v60_v15, %v52_v14  ;;  %v57_v19 = vld [vmem:[#allocation2 + $0xc0] sm:$0xff]  ;;  %v59_v22 = vld [vmem:[#allocation2 + $0xd0] sm:$0xff]  ;;  %v66_v23 = vld [vmem:[#allocation2 + $0x108] sm:$0xff] }
  0x18   :  { %1995 = vmatpush1.bf16.msra.mxu1 %v1994_v12  ;;  %v1806_v21 = vpack.c.bf16 %v57_v19, %v49_v18  ;;  %v74_v24 = vld [vmem:[#allocation2 + $0x148] sm:$0xff]  ;;  %1805 = vmatprep.subr.bf16.mxu0 %v1804_v16  ;;  %v1998_v25 = vpack.c.bf16 %v59_v22, %v51_v20  ;;  %v68_v27 = vld [vmem:[#allocation2 + $0x118] sm:$0xff]  ;;  %v65_v29 = vld [vmem:[#allocation2 + $0x100] sm:$0xff] }
  0x19   :  { %1997 = vmatprep.subr.bf16.mxu1 %v1996_v17  ;;  %v1808_v26 = vpack.c.bf16 %v74_v24, %v66_v23  ;;  %v76_v28 = vld [vmem:[#allocation2 + $0x158] sm:$0xff]  ;;  %v73_v31 = vld [vmem:[#allocation2 + $0x140] sm:$0xff]  ;;  %v67_v32 = vld [vmem:[#allocation2 + $0x110] sm:$0xff] }
  0x1a   :  { %v2000_v30 = vpack.c.bf16 %v76_v28, %v68_v27  ;;  %v75_v33 = vld [vmem:[#allocation2 + $0x150] sm:$0xff]  ;;  %v1810_v34 = vpack.c.bf16 %v73_v31, %v65_v29  ;;  %v82_v35 = vld [vmem:[#allocation2 + $0x188] sm:$0xff]  ;;  %v84_v37 = vld [vmem:[#allocation2 + $0x198] sm:$0xff] }
  0x1b   :  { %1807 = vmatpush1.bf16.msra.mxu0 %v1806_v21  ;;  %v90_v36 = vld [vmem:[#allocation2 + $0x1c8] sm:$0xff]  ;;  %v2002_v38 = vpack.c.bf16 %v75_v33, %v67_v32  ;;  %v92_v40 = vld [vmem:[#allocation2 + $0x1d8] sm:$0xff]  ;;  %v81_v41 = vld [vmem:[#allocation2 + $0x180] sm:$0xff] }
  0x1c   :  { %1999 = vmatpush1.bf16.msra.mxu1 %v1998_v25  ;;  %1809 = vmatprep.subr.bf16.mxu0 %v1808_v26  ;;  %v1812_v39 = vpack.c.bf16 %v90_v36, %v82_v35  ;;  %v89_v42 = vld [vmem:[#allocation2 + $0x1c0] sm:$0xff]  ;;  %v2004_v43 = vpack.c.bf16 %v92_v40, %v84_v37  ;;  %v83_v44 = vld [vmem:[#allocation2 + $0x190] sm:$0xff]  ;;  %v98_v46 = vld [vmem:[#allocation2 + $0x208] sm:$0xff] }
  0x1d   :  { %2001 = vmatprep.subr.bf16.mxu1 %v2000_v30  ;;  %v91_v45 = vld [vmem:[#allocation2 + $0x1d0] sm:$0xff]  ;;  %v106_v47 = vld [vmem:[#allocation2 + $0x248] sm:$0xff]  ;;  %v100_v48 = vld [vmem:[#allocation2 + $0x218] sm:$0xff]  ;;  %v1814_v50 = vpack.c.bf16 %v89_v42, %v81_v41 }
  0x1e   :  { %v108_v49 = vld [vmem:[#allocation2 + $0x258] sm:$0xff]  ;;  %v2006_v51 = vpack.c.bf16 %v91_v45, %v83_v44  ;;  %v1816_v52 = vpack.c.bf16 %v106_v47, %v98_v46  ;;  %v97_v53 = vld [vmem:[#allocation2 + $0x200] sm:$0xff]  ;;  %v99_v55 = vld [vmem:[#allocation2 + $0x210] sm:$0xff] }
  0x1f   :  { %1811 = vmatpush1.bf16.msra.mxu0 %v1810_v34  ;;  %v105_v54 = vld [vmem:[#allocation2 + $0x240] sm:$0xff]  ;;  %v2008_v56 = vpack.c.bf16 %v108_v49, %v100_v48  ;;  %v107_v57 = vld [vmem:[#allocation2 + $0x250] sm:$0xff]  ;;  %v114_v58 = vld [vmem:[#allocation2 + $0x288] sm:$0xff] }
  0x20   :  { %2003 = vmatpush1.bf16.msra.mxu1 %v2002_v38  ;;  %1813 = vmatprep.subr.bf16.mxu0 %v1812_v39  ;;  %v122_v59 = vld [vmem:[#allocation2 + $0x2c8] sm:$0xff]  ;;  %v116_v60 = vld [vmem:[#allocation2 + $0x298] sm:$0xff]  ;;  %v1818_v62 = vpack.c.bf16 %v105_v54, %v97_v53  ;;  %v2010_v63 = vpack.c.bf16 %v107_v57, %v99_v55  ;;  %v113_v1 = vld [vmem:[#allocation2 + $0x280] sm:$0xff] }
  0x21   :  { %2005 = vmatprep.subr.bf16.mxu1 %v2004_v43  ;;  %v124_v61 = vld [vmem:[#allocation2 + $0x2d8] sm:$0xff]  ;;  %v1820_v0 = vpack.c.bf16 %v122_v59, %v114_v58  ;;  %v121_v2 = vld [vmem:[#allocation2 + $0x2c0] sm:$0xff]  ;;  %v115_v3 = vld [vmem:[#allocation2 + $0x290] sm:$0xff] }
  0x22   :  { %v2012_v4 = vpack.c.bf16 %v124_v61, %v116_v60  ;;  %v123_v5 = vld [vmem:[#allocation2 + $0x2d0] sm:$0xff]  ;;  %v130_v6 = vld [vmem:[#allocation2 + $0x308] sm:$0xff]  ;;  %v132_v8 = vld [vmem:[#allocation2 + $0x318] sm:$0xff]  ;;  %v1822_v10 = vpack.c.bf16 %v121_v2, %v113_v1 }
  0x23   :  { %1815 = vmatpush1.bf16.msra.mxu0 %v1814_v50  ;;  %v138_v7 = vld [vmem:[#allocation2 + $0x348] sm:$0xff]  ;;  %v140_v9 = vld [vmem:[#allocation2 + $0x358] sm:$0xff]  ;;  %v2014_v11 = vpack.c.bf16 %v123_v5, %v115_v3  ;;  %v129_v13 = vld [vmem:[#allocation2 + $0x300] sm:$0xff] }
  0x24   :  { %2007 = vmatpush1.bf16.msra.mxu1 %v2006_v51  ;;  %1817 = vmatprep.subr.bf16.mxu0 %v1816_v52  ;;  %v1824_v12 = vpack.c.bf16 %v138_v7, %v130_v6  ;;  %v137_v14 = vld [vmem:[#allocation2 + $0x340] sm:$0xff]  ;;  %v131_v15 = vld [vmem:[#allocation2 + $0x310] sm:$0xff]  ;;  %v2016_v16 = vpack.c.bf16 %v140_v9, %v132_v8  ;;  %v146_v18 = vld [vmem:[#allocation2 + $0x388] sm:$0xff] }
  0x25   :  { %2009 = vmatprep.subr.bf16.mxu1 %v2008_v56  ;;  %v139_v17 = vld [vmem:[#allocation2 + $0x350] sm:$0xff]  ;;  %v154_v19 = vld [vmem:[#allocation2 + $0x3c8] sm:$0xff]  ;;  %v148_v20 = vld [vmem:[#allocation2 + $0x398] sm:$0xff]  ;;  %v1826_v22 = vpack.c.bf16 %v137_v14, %v129_v13 }
  0x26   :  { %v156_v21 = vld [vmem:[#allocation2 + $0x3d8] sm:$0xff]  ;;  %v2018_v23 = vpack.c.bf16 %v139_v17, %v131_v15  ;;  %v1828_v24 = vpack.c.bf16 %v154_v19, %v146_v18  ;;  %v145_v25 = vld [vmem:[#allocation2 + $0x380] sm:$0xff]  ;;  %v147_v27 = vld [vmem:[#allocation2 + $0x390] sm:$0xff] }
  0x27   :  { %1819 = vmatpush1.bf16.msra.mxu0 %v1818_v62  ;;  %v153_v26 = vld [vmem:[#allocation2 + $0x3c0] sm:$0xff]  ;;  %v2020_v28 = vpack.c.bf16 %v156_v21, %v148_v20  ;;  %v155_v29 = vld [vmem:[#allocation2 + $0x3d0] sm:$0xff]  ;;  %v162_v30 = vld [vmem:[#allocation2 + $0x408] sm:$0xff] }
  0x28   :  { %2011 = vmatpush1.bf16.msra.mxu1 %v2010_v63  ;;  %1821 = vmatprep.subr.bf16.mxu0 %v1820_v0  ;;  %v170_v31 = vld [vmem:[#allocation2 + $0x448] sm:$0xff]  ;;  %v164_v32 = vld [vmem:[#allocation2 + $0x418] sm:$0xff]  ;;  %v1830_v34 = vpack.c.bf16 %v153_v26, %v145_v25  ;;  %v2022_v35 = vpack.c.bf16 %v155_v29, %v147_v27  ;;  %v161_v37 = vld [vmem:[#allocation2 + $0x400] sm:$0xff] }
  0x29   :  { %2013 = vmatprep.subr.bf16.mxu1 %v2012_v4  ;;  %v172_v33 = vld [vmem:[#allocation2 + $0x458] sm:$0xff]  ;;  %v1832_v36 = vpack.c.bf16 %v170_v31, %v162_v30  ;;  %v169_v38 = vld [vmem:[#allocation2 + $0x440] sm:$0xff]  ;;  %v163_v39 = vld [vmem:[#allocation2 + $0x410] sm:$0xff] }
  0x2a   :  { %v2024_v40 = vpack.c.bf16 %v172_v33, %v164_v32  ;;  %v171_v41 = vld [vmem:[#allocation2 + $0x450] sm:$0xff]  ;;  %v178_v42 = vld [vmem:[#allocation2 + $0x488] sm:$0xff]  ;;  %v180_v44 = vld [vmem:[#allocation2 + $0x498] sm:$0xff]  ;;  %v1834_v46 = vpack.c.bf16 %v169_v38, %v161_v37 }
  0x2b   :  { %1823 = vmatpush1.bf16.msra.mxu0 %v1822_v10  ;;  %v186_v43 = vld [vmem:[#allocation2 + $0x4c8] sm:$0xff]  ;;  %v188_v45 = vld [vmem:[#allocation2 + $0x4d8] sm:$0xff]  ;;  %v2026_v47 = vpack.c.bf16 %v171_v41, %v163_v39  ;;  %v177_v49 = vld [vmem:[#allocation2 + $0x480] sm:$0xff] }
  0x2c   :  { %2015 = vmatpush1.bf16.msra.mxu1 %v2014_v11  ;;  %1825 = vmatprep.subr.bf16.mxu0 %v1824_v12  ;;  %v1836_v48 = vpack.c.bf16 %v186_v43, %v178_v42  ;;  %v185_v50 = vld [vmem:[#allocation2 + $0x4c0] sm:$0xff]  ;;  %v179_v51 = vld [vmem:[#allocation2 + $0x490] sm:$0xff]  ;;  %v2028_v52 = vpack.c.bf16 %v188_v45, %v180_v44  ;;  %v194_v54 = vld [vmem:[#allocation2 + $0x508] sm:$0xff] }
  0x2d   :  { %2017 = vmatprep.subr.bf16.mxu1 %v2016_v16  ;;  %v187_v53 = vld [vmem:[#allocation2 + $0x4d0] sm:$0xff]  ;;  %v202_v55 = vld [vmem:[#allocation2 + $0x548] sm:$0xff]  ;;  %v196_v56 = vld [vmem:[#allocation2 + $0x518] sm:$0xff]  ;;  %v1838_v58 = vpack.c.bf16 %v185_v50, %v177_v49 }
  0x2e   :  { %v204_v57 = vld [vmem:[#allocation2 + $0x558] sm:$0xff]  ;;  %v2030_v59 = vpack.c.bf16 %v187_v53, %v179_v51  ;;  %v1840_v60 = vpack.c.bf16 %v202_v55, %v194_v54  ;;  %v193_v61 = vld [vmem:[#allocation2 + $0x500] sm:$0xff]  ;;  %v195_v63 = vld [vmem:[#allocation2 + $0x510] sm:$0xff] }
  0x2f   :  { %1827 = vmatpush1.bf16.msra.mxu0 %v1826_v22  ;;  %v201_v62 = vld [vmem:[#allocation2 + $0x540] sm:$0xff]  ;;  %v2032_v0 = vpack.c.bf16 %v204_v57, %v196_v56  ;;  %v203_v1 = vld [vmem:[#allocation2 + $0x550] sm:$0xff]  ;;  %v210_v2 = vld [vmem:[#allocation2 + $0x588] sm:$0xff] }
  0x30   :  { %2019 = vmatpush1.bf16.msra.mxu1 %v2018_v23  ;;  %1829 = vmatprep.subr.bf16.mxu0 %v1828_v24  ;;  %v218_v3 = vld [vmem:[#allocation2 + $0x5c8] sm:$0xff]  ;;  %v212_v4 = vld [vmem:[#allocation2 + $0x598] sm:$0xff]  ;;  %v1842_v6 = vpack.c.bf16 %v201_v62, %v193_v61  ;;  %v209_v7 = vld [vmem:[#allocation2 + $0x580] sm:$0xff]  ;;  %v2034_v8 = vpack.c.bf16 %v203_v1, %v195_v63 }
  0x31   :  { %2021 = vmatprep.subr.bf16.mxu1 %v2020_v28  ;;  %v220_v5 = vld [vmem:[#allocation2 + $0x5d8] sm:$0xff]  ;;  %v1844_v9 = vpack.c.bf16 %v218_v3, %v210_v2  ;;  %v217_v10 = vld [vmem:[#allocation2 + $0x5c0] sm:$0xff]  ;;  %v211_v11 = vld [vmem:[#allocation2 + $0x590] sm:$0xff] }
  0x32   :  { %v219_v12 = vld [vmem:[#allocation2 + $0x5d0] sm:$0xff]  ;;  %v2036_v13 = vpack.c.bf16 %v220_v5, %v212_v4  ;;  %v226_v14 = vld [vmem:[#allocation2 + $0x608] sm:$0xff]  ;;  %v228_v17 = vld [vmem:[#allocation2 + $0x618] sm:$0xff]  ;;  %v1846_v19 = vpack.c.bf16 %v217_v10, %v209_v7 }
  0x33   :  { %1831 = vmatpush1.bf16.msra.mxu0 %v1830_v34  ;;  %v234_v15 = vld [vmem:[#allocation2 + $0x648] sm:$0xff]  ;;  %v236_v18 = vld [vmem:[#allocation2 + $0x658] sm:$0xff]  ;;  %v2038_v20 = vpack.c.bf16 %v219_v12, %v211_v11  ;;  %v225_v22 = vld [vmem:[#allocation2 + $0x600] sm:$0xff] }
  0x34   :  { %2023 = vmatpush1.bf16.msra.mxu1 %v2022_v35  ;;  %1833 = vmatprep.subr.bf16.mxu0 %v1832_v36  ;;  %v28_v16 = vld [vmem:[%s2752_s0 + $0x8] sm:$0xff]  ;;  %v1848_v21 = vpack.c.bf16 %v234_v15, %v226_v14  ;;  %v233_v23 = vld [vmem:[#allocation2 + $0x640] sm:$0xff]  ;;  %v227_v24 = vld [vmem:[#allocation2 + $0x610] sm:$0xff]  ;;  %v2040_v25 = vpack.c.bf16 %v236_v18, %v228_v17 }
  0x35   :  { %2025 = vmatprep.subr.bf16.mxu1 %v2024_v40  ;;  %865 = vmatprep.mubr.f32.mxu0 %v28_v16  ;;  %v235_v26 = vld [vmem:[#allocation2 + $0x650] sm:$0xff]  ;;  %v242_v27 = vld [vmem:[#allocation2 + $0x688] sm:$0xff]  ;;  %v244_v29 = vld [vmem:[#allocation2 + $0x698] sm:$0xff]  ;;  %v1850_v31 = vpack.c.bf16 %v233_v23, %v225_v22 }
  0x36   :  { %1078 = vmatprep.mubr.f32.mxu1 %v28_v16  ;;  %v250_v28 = vld [vmem:[#allocation2 + $0x6c8] sm:$0xff]  ;;  %v252_v30 = vld [vmem:[#allocation2 + $0x6d8] sm:$0xff]  ;;  %v2042_v32 = vpack.c.bf16 %v235_v26, %v227_v24  ;;  %v241_v34 = vld [vmem:[#allocation2 + $0x680] sm:$0xff] }
  0x37   :  { %1835 = vmatpush1.bf16.msra.mxu0 %v1834_v46  ;;  %v1852_v33 = vpack.c.bf16 %v250_v28, %v242_v27  ;;  %v249_v35 = vld [vmem:[#allocation2 + $0x6c0] sm:$0xff]  ;;  %v243_v36 = vld [vmem:[#allocation2 + $0x690] sm:$0xff]  ;;  %v2044_v37 = vpack.c.bf16 %v252_v30, %v244_v29  ;;  %v258_v39 = vld [vmem:[#allocation2 + $0x708] sm:$0xff] }
  0x38   :  { %2027 = vmatpush1.bf16.msra.mxu1 %v2026_v47  ;;  %1837 = vmatprep.subr.bf16.mxu0 %v1836_v48  ;;  %v251_v38 = vld [vmem:[#allocation2 + $0x6d0] sm:$0xff]  ;;  %v266_v40 = vld [vmem:[#allocation2 + $0x748] sm:$0xff]  ;;  %v260_v41 = vld [vmem:[#allocation2 + $0x718] sm:$0xff]  ;;  %v1854_v43 = vpack.c.bf16 %v249_v35, %v241_v34 }
  0x39   :  { %2029 = vmatprep.subr.bf16.mxu1 %v2028_v52  ;;  %v268_v42 = vld [vmem:[#allocation2 + $0x758] sm:$0xff]  ;;  %v2046_v44 = vpack.c.bf16 %v251_v38, %v243_v36  ;;  %v1856_v45 = vpack.c.bf16 %v266_v40, %v258_v39  ;;  %v257_v46 = vld [vmem:[#allocation2 + $0x700] sm:$0xff]  ;;  %v259_v48 = vld [vmem:[#allocation2 + $0x710] sm:$0xff] }
  0x3a   :  { %v265_v47 = vld [vmem:[#allocation2 + $0x740] sm:$0xff]  ;;  %v2048_v49 = vpack.c.bf16 %v268_v42, %v260_v41  ;;  %v267_v50 = vld [vmem:[#allocation2 + $0x750] sm:$0xff]  ;;  %v274_v51 = vld [vmem:[#allocation2 + $0x788] sm:$0xff] }
  0x3b   :  { %1839 = vmatpush1.bf16.msra.mxu0 %v1838_v58  ;;  %v282_v52 = vld [vmem:[#allocation2 + $0x7c8] sm:$0xff]  ;;  %v276_v53 = vld [vmem:[#allocation2 + $0x798] sm:$0xff]  ;;  %v1858_v55 = vpack.c.bf16 %v265_v47, %v257_v46  ;;  %v2050_v56 = vpack.c.bf16 %v267_v50, %v259_v48  ;;  %v273_v58 = vld [vmem:[#allocation2 + $0x780] sm:$0xff] }
  0x3c   :  { %2031 = vmatpush1.bf16.msra.mxu1 %v2030_v59  ;;  %1841 = vmatprep.subr.bf16.mxu0 %v1840_v60  ;;  %v284_v54 = vld [vmem:[#allocation2 + $0x7d8] sm:$0xff]  ;;  %v1860_v57 = vpack.c.bf16 %v282_v52, %v274_v51  ;;  %v281_v59 = vld [vmem:[#allocation2 + $0x7c0] sm:$0xff]  ;;  %v275_v60 = vld [vmem:[#allocation2 + $0x790] sm:$0xff] }
  0x3d   :  { %2033 = vmatprep.subr.bf16.mxu1 %v2032_v0  ;;  %v2052_v61 = vpack.c.bf16 %v284_v54, %v276_v53  ;;  %v283_v62 = vld [vmem:[#allocation2 + $0x7d0] sm:$0xff]  ;;  %v290_v63 = vld [vmem:[#allocation2 + $0x808] sm:$0xff]  ;;  %v292_v1 = vld [vmem:[#allocation2 + $0x818] sm:$0xff]  ;;  %v1862_v3 = vpack.c.bf16 %v281_v59, %v273_v58 }
  0x3e   :  { %v298_v0 = vld [vmem:[#allocation2 + $0x848] sm:$0xff]  ;;  %v300_v2 = vld [vmem:[#allocation2 + $0x858] sm:$0xff]  ;;  %v2054_v4 = vpack.c.bf16 %v283_v62, %v275_v60  ;;  %v297_v7 = vld [vmem:[#allocation2 + $0x840] sm:$0xff] }
  0x3f   :  { %1843 = vmatpush1.bf16.msra.mxu0 %v1842_v6  ;;  %v1864_v5 = vpack.c.bf16 %v298_v0, %v290_v63  ;;  %v289_v6 = vld [vmem:[#allocation2 + $0x800] sm:$0xff]  ;;  %v299_v10 = vld [vmem:[#allocation2 + $0x850] sm:$0xff]  ;;  %v306_v11 = vld [vmem:[#allocation2 + $0x888] sm:$0xff] }
  0x40   :  { %2035 = vmatpush1.bf16.msra.mxu1 %v2034_v8  ;;  %1845 = vmatprep.subr.bf16.mxu0 %v1844_v9  ;;  %v291_v8 = vld [vmem:[#allocation2 + $0x810] sm:$0xff]  ;;  %v2056_v9 = vpack.c.bf16 %v300_v2, %v292_v1  ;;  %v314_v12 = vld [vmem:[#allocation2 + $0x8c8] sm:$0xff]  ;;  %v316_v14 = vld [vmem:[#allocation2 + $0x8d8] sm:$0xff]  ;;  %v1866_v16 = vpack.c.bf16 %v297_v7, %v289_v6 }
  0x41   :  { %2037 = vmatprep.subr.bf16.mxu1 %v2036_v13  ;;  %v308_v13 = vld [vmem:[#allocation2 + $0x898] sm:$0xff]  ;;  %v27_v15 = vld [vmem:[%s2752_s0] sm:$0xff]  ;;  %v2058_v17 = vpack.c.bf16 %v299_v10, %v291_v8  ;;  %v1868_v18 = vpack.c.bf16 %v314_v12, %v306_v11  ;;  %v315_v23 = vld [vmem:[#allocation2 + $0x8d0] sm:$0xff] }
  0x42   :  { %v2060_v22 = vpack.c.bf16 %v316_v14, %v308_v13  ;;  %v322_v24 = vld [vmem:[#allocation2 + $0x908] sm:$0xff]  ;;  %v324_v26 = vld [vmem:[#allocation2 + $0x918] sm:$0xff]  ;;  %v331_v35 = vld [vmem:[#allocation2 + $0x950] sm:$0xff] }
  0x43   :  { %1847 = vmatpush1.bf16.msra.mxu0 %v1846_v19  ;;  %v305_v19 = vld [vmem:[#allocation2 + $0x880] sm:$0xff]  ;;  %v332_v27 = vld [vmem:[#allocation2 + $0x958] sm:$0xff]  ;;  %v338_v36 = vld [vmem:[#allocation2 + $0x988] sm:$0xff] }
  0x44   :  { %2039 = vmatpush1.bf16.msra.mxu1 %v2038_v20  ;;  %1849 = vmatprep.subr.bf16.mxu0 %v1848_v21  ;;  %v313_v20 = vld [vmem:[#allocation2 + $0x8c0] sm:$0xff]  ;;  %v307_v21 = vld [vmem:[#allocation2 + $0x890] sm:$0xff]  ;;  %v2064_v34 = vpack.c.bf16 %v332_v27, %v324_v26  ;;  %v340_v38 = vld [vmem:[#allocation2 + $0x998] sm:$0xff] }
  0x45   :  { %2041 = vmatprep.subr.bf16.mxu1 %v2040_v25  ;;  %v330_v25 = vld [vmem:[#allocation2 + $0x948] sm:$0xff]  ;;  %v1870_v28 = vpack.c.bf16 %v313_v20, %v305_v19  ;;  %v2062_v29 = vpack.c.bf16 %v315_v23, %v307_v21  ;;  %v348_v39 = vld [vmem:[#allocation2 + $0x9d8] sm:$0xff]  ;;  %v347_v47 = vld [vmem:[#allocation2 + $0x9d0] sm:$0xff] }
  0x46   :  { %v1872_v30 = vpack.c.bf16 %v330_v25, %v322_v24  ;;  %v2068_v46 = vpack.c.bf16 %v348_v39, %v340_v38  ;;  %v354_v48 = vld [vmem:[#allocation2 + $0xa08] sm:$0xff]  ;;  %v356_v50 = vld [vmem:[#allocation2 + $0xa18] sm:$0xff]  ;;  %v363_v59 = vld [vmem:[#allocation2 + $0xa50] sm:$0xff] }
  0x47   :  { %1851 = vmatpush1.bf16.msra.mxu0 %v1850_v31  ;;  %v321_v31 = vld [vmem:[#allocation2 + $0x900] sm:$0xff]  ;;  %v364_v51 = vld [vmem:[#allocation2 + $0xa58] sm:$0xff]  ;;  %v370_v60 = vld [vmem:[#allocation2 + $0xa88] sm:$0xff] }
  0x48   :  { %2043 = vmatpush1.bf16.msra.mxu1 %v2042_v32  ;;  %1853 = vmatprep.subr.bf16.mxu0 %v1852_v33  ;;  %v329_v32 = vld [vmem:[#allocation2 + $0x940] sm:$0xff]  ;;  %v323_v33 = vld [vmem:[#allocation2 + $0x910] sm:$0xff]  ;;  %v2072_v58 = vpack.c.bf16 %v364_v51, %v356_v50  ;;  %v372_v62 = vld [vmem:[#allocation2 + $0xa98] sm:$0xff] }
  0x49   :  { %2045 = vmatprep.subr.bf16.mxu1 %v2044_v37  ;;  %v346_v37 = vld [vmem:[#allocation2 + $0x9c8] sm:$0xff]  ;;  %v1874_v40 = vpack.c.bf16 %v329_v32, %v321_v31  ;;  %v2066_v41 = vpack.c.bf16 %v331_v35, %v323_v33  ;;  %v380_v63 = vld [vmem:[#allocation2 + $0xad8] sm:$0xff]  ;;  %v379_v7 = vld [vmem:[#allocation2 + $0xad0] sm:$0xff] }
  0x4a   :  { %v1876_v42 = vpack.c.bf16 %v346_v37, %v338_v36  ;;  %v2076_v6 = vpack.c.bf16 %v380_v63, %v372_v62  ;;  %v386_v8 = vld [vmem:[#allocation2 + $0xb08] sm:$0xff]  ;;  %v388_v10 = vld [vmem:[#allocation2 + $0xb18] sm:$0xff]  ;;  %v385_v13 = vld [vmem:[#allocation2 + $0xb00] sm:$0xff] }
  0x4b   :  { %1855 = vmatpush1.bf16.msra.mxu0 %v1854_v43  ;;  %v337_v43 = vld [vmem:[#allocation2 + $0x980] sm:$0xff]  ;;  %v396_v11 = vld [vmem:[#allocation2 + $0xb58] sm:$0xff]  ;;  %v402_v20 = vld [vmem:[#allocation2 + $0xb88] sm:$0xff] }
  0x4c   :  { %2047 = vmatpush1.bf16.msra.mxu1 %v2046_v44  ;;  %1857 = vmatprep.subr.bf16.mxu0 %v1856_v45  ;;  %v345_v44 = vld [vmem:[#allocation2 + $0x9c0] sm:$0xff]  ;;  %v339_v45 = vld [vmem:[#allocation2 + $0x990] sm:$0xff]  ;;  %v2080_v19 = vpack.c.bf16 %v396_v11, %v388_v10  ;;  %v410_v21 = vld [vmem:[#allocation2 + $0xbc8] sm:$0xff] }
  0x4d   :  { %2049 = vmatprep.subr.bf16.mxu1 %v2048_v49  ;;  %v362_v49 = vld [vmem:[#allocation2 + $0xa48] sm:$0xff]  ;;  %v1878_v52 = vpack.c.bf16 %v345_v44, %v337_v43  ;;  %v2070_v53 = vpack.c.bf16 %v347_v47, %v339_v45  ;;  %v404_v23 = vld [vmem:[#allocation2 + $0xb98] sm:$0xff]  ;;  %v1892_v27 = vpack.c.bf16 %v410_v21, %v402_v20  ;;  %v411_v32 = vld [vmem:[#allocation2 + $0xbd0] sm:$0xff] }
  0x4e   :  { %v1880_v54 = vpack.c.bf16 %v362_v49, %v354_v48  ;;  %v412_v24 = vld [vmem:[#allocation2 + $0xbd8] sm:$0xff]  ;;  %v418_v33 = vld [vmem:[#allocation2 + $0xc08] sm:$0xff]  ;;  %v427_v44 = vld [vmem:[#allocation2 + $0xc50] sm:$0xff] }
  0x4f   :  { %1859 = vmatpush1.bf16.msra.mxu0 %v1858_v55  ;;  %v353_v55 = vld [vmem:[#allocation2 + $0xa00] sm:$0xff]  ;;  %v2084_v31 = vpack.c.bf16 %v412_v24, %v404_v23  ;;  %v420_v35 = vld [vmem:[#allocation2 + $0xc18] sm:$0xff]  ;;  %v434_v45 = vld [vmem:[#allocation2 + $0xc88] sm:$0xff] }
  0x50   :  { %2051 = vmatpush1.bf16.msra.mxu1 %v2050_v56  ;;  %1861 = vmatprep.subr.bf16.mxu0 %v1860_v57  ;;  %v361_v56 = vld [vmem:[#allocation2 + $0xa40] sm:$0xff]  ;;  %v355_v57 = vld [vmem:[#allocation2 + $0xa10] sm:$0xff]  ;;  %v428_v36 = vld [vmem:[#allocation2 + $0xc58] sm:$0xff] }
  0x51   :  { %2053 = vmatprep.subr.bf16.mxu1 %v2052_v61  ;;  %v378_v61 = vld [vmem:[#allocation2 + $0xac8] sm:$0xff]  ;;  %v1882_v0 = vpack.c.bf16 %v361_v56, %v353_v55  ;;  %v2074_v1 = vpack.c.bf16 %v363_v59, %v355_v57  ;;  %v2088_v43 = vpack.c.bf16 %v428_v36, %v420_v35  ;;  %v436_v47 = vld [vmem:[#allocation2 + $0xc98] sm:$0xff]  ;;  %v443_v56 = vld [vmem:[#allocation2 + $0xcd0] sm:$0xff] }
  0x52   :  { %v1884_v2 = vpack.c.bf16 %v378_v61, %v370_v60  ;;  %v444_v48 = vld [vmem:[#allocation2 + $0xcd8] sm:$0xff]  ;;  %v450_v57 = vld [vmem:[#allocation2 + $0xd08] sm:$0xff]  ;;  %v481_v24 = vld [vmem:[#allocation2 + $0xe00] sm:$0xff] }
  0x53   :  { %1863 = vmatpush1.bf16.msra.mxu0 %v1862_v3  ;;  %v369_v3 = vld [vmem:[#allocation2 + $0xa80] sm:$0xff]  ;;  %v2092_v55 = vpack.c.bf16 %v444_v48, %v436_v47  ;;  %v452_v59 = vld [vmem:[#allocation2 + $0xd18] sm:$0xff] }
  0x54   :  { %2055 = vmatpush1.bf16.msra.mxu1 %v2054_v4  ;;  %1865 = vmatprep.subr.bf16.mxu0 %v1864_v5  ;;  %v377_v4 = vld [vmem:[#allocation2 + $0xac0] sm:$0xff]  ;;  %v371_v5 = vld [vmem:[#allocation2 + $0xa90] sm:$0xff]  ;;  %v460_v60 = vld [vmem:[#allocation2 + $0xd58] sm:$0xff] }
  0x55   :  { %2057 = vmatprep.subr.bf16.mxu1 %v2056_v9  ;;  %v394_v9 = vld [vmem:[#allocation2 + $0xb48] sm:$0xff]  ;;  %v1886_v12 = vpack.c.bf16 %v377_v4, %v369_v3  ;;  %v2078_v14 = vpack.c.bf16 %v379_v7, %v371_v5  ;;  %v2096_v3 = vpack.c.bf16 %v460_v60, %v452_v59  ;;  %v459_v4 = vld [vmem:[#allocation2 + $0xd50] sm:$0xff]  ;;  %v468_v7 = vld [vmem:[#allocation2 + $0xd98] sm:$0xff] }
  0x56   :  { %866 = vmatmul.mubr.f32.vlgmr.msra.gmra.mrb[0].mxu0 %v27_v15  ;;  %v466_v5 = vld [vmem:[#allocation2 + $0xd88] sm:$0xff]  ;;  %v492_v20 = vld [vmem:[#allocation2 + $0xe58] sm:$0xff]  ;;  %v497_v36 = vld [vmem:[#allocation2 + $0xe80] sm:$0xff] }
  0x57   :  { %1867 = vmatpush1.bf16.msra.mxu0 %v1866_v16  ;;  %1079 = vmatmul.mubr.f32.vlgmr.msra.gmra.mrb[0].mxu1 %v27_v15  ;;  %v1888_v15 = vpack.c.bf16 %v394_v9, %v386_v8  ;;  %v393_v16 = vld [vmem:[#allocation2 + $0xb40] sm:$0xff]  ;;  %v476_v8 = vld [vmem:[#allocation2 + $0xdd8] sm:$0xff] }
  0x58   :  { %2059 = vmatpush1.bf16.msra.mxu1 %v2058_v17  ;;  %1869 = vmatprep.subr.bf16.mxu0 %v1868_v18  ;;  %v387_v17 = vld [vmem:[#allocation2 + $0xb10] sm:$0xff]  ;;  %v1890_v25 = vpack.c.bf16 %v393_v16, %v385_v13  ;;  %v473_v13 = vld [vmem:[#allocation2 + $0xdc0] sm:$0xff] }
  0x59   :  { %2061 = vmatprep.subr.bf16.mxu1 %v2060_v22  ;;  %v395_v18 = vld [vmem:[#allocation2 + $0xb50] sm:$0xff]  ;;  %v30_v22 = vld [vmem:[%s2752_s0 + $0x18] sm:$0xff]  ;;  %v513_v48 = vld [vmem:[#allocation2 + $0xf00] sm:$0xff] }
  0x5a   :  { %936 = vmatprep.mubr.f32.mxu0 %v30_v22  ;;  %1149 = vmatprep.mubr.f32.mxu1 %v30_v22  ;;  %v2082_v26 = vpack.c.bf16 %v395_v18, %v387_v17  ;;  %v475_v16 = vld [vmem:[#allocation2 + $0xdd0] sm:$0xff]  ;;  %v482_v17 = vld [vmem:[#allocation2 + $0xe08] sm:$0xff]  ;;  %v529_v60 = vld [vmem:[#allocation2 + $0xf80] sm:$0xff] }
  0x5b   :  { %1871 = vmatpush1.bf16.msra.mxu0 %v1870_v28  ;;  %v401_v28 = vld [vmem:[#allocation2 + $0xb80] sm:$0xff]  ;;  %v490_v18 = vld [vmem:[#allocation2 + $0xe48] sm:$0xff] }
  0x5c   :  { %2063 = vmatpush1.bf16.msra.mxu1 %v2062_v29  ;;  %1873 = vmatprep.subr.bf16.mxu0 %v1872_v30  ;;  %v409_v29 = vld [vmem:[#allocation2 + $0xbc0] sm:$0xff]  ;;  %v403_v30 = vld [vmem:[#allocation2 + $0xb90] sm:$0xff]  ;;  %v1912_v23 = vpack.c.bf16 %v490_v18, %v482_v17 }
  0x5d   :  { %2065 = vmatprep.subr.bf16.mxu1 %v2064_v34  ;;  %v426_v34 = vld [vmem:[#allocation2 + $0xc48] sm:$0xff]  ;;  %v1894_v37 = vpack.c.bf16 %v409_v29, %v401_v28  ;;  %v2086_v38 = vpack.c.bf16 %v411_v32, %v403_v30  ;;  %v491_v28 = vld [vmem:[#allocation2 + $0xe50] sm:$0xff]  ;;  %v508_v32 = vld [vmem:[#allocation2 + $0xed8] sm:$0xff] }
  0x5e   :  { %v1896_v39 = vpack.c.bf16 %v426_v34, %v418_v33  ;;  %v498_v29 = vld [vmem:[#allocation2 + $0xe88] sm:$0xff]  ;;  %v29_v17 = vld [vmem:[%s2752_s0 + $0x10] sm:$0xff] }
  0x5f   :  { %1875 = vmatpush1.bf16.msra.mxu0 %v1874_v40  ;;  %v417_v40 = vld [vmem:[#allocation2 + $0xc00] sm:$0xff]  ;;  %v506_v30 = vld [vmem:[#allocation2 + $0xec8] sm:$0xff] }
  0x60   :  { %2067 = vmatpush1.bf16.msra.mxu1 %v2066_v41  ;;  %1877 = vmatprep.subr.bf16.mxu0 %v1876_v42  ;;  %v425_v41 = vld [vmem:[#allocation2 + $0xc40] sm:$0xff]  ;;  %v419_v42 = vld [vmem:[#allocation2 + $0xc10] sm:$0xff]  ;;  %v1916_v35 = vpack.c.bf16 %v506_v30, %v498_v29  ;;  %v588_v29 = vld [vmem:[#allocation2 + $0x1158] sm:$0xff] }
  0x61   :  { %2069 = vmatprep.subr.bf16.mxu1 %v2068_v46  ;;  %v442_v46 = vld [vmem:[#allocation2 + $0xcc8] sm:$0xff]  ;;  %v1898_v49 = vpack.c.bf16 %v425_v41, %v417_v40  ;;  %v2090_v50 = vpack.c.bf16 %v427_v44, %v419_v42  ;;  %v507_v40 = vld [vmem:[#allocation2 + $0xed0] sm:$0xff]  ;;  %v524_v44 = vld [vmem:[#allocation2 + $0xf58] sm:$0xff] }
  0x62   :  { %v1900_v51 = vpack.c.bf16 %v442_v46, %v434_v45  ;;  %v514_v41 = vld [vmem:[#allocation2 + $0xf08] sm:$0xff] }
  0x63   :  { %1879 = vmatpush1.bf16.msra.mxu0 %v1878_v52  ;;  %v433_v52 = vld [vmem:[#allocation2 + $0xc80] sm:$0xff]  ;;  %v522_v42 = vld [vmem:[#allocation2 + $0xf48] sm:$0xff] }
  0x64   :  { %2071 = vmatpush1.bf16.msra.mxu1 %v2070_v53  ;;  %1881 = vmatprep.subr.bf16.mxu0 %v1880_v54  ;;  %v441_v53 = vld [vmem:[#allocation2 + $0xcc0] sm:$0xff]  ;;  %v435_v54 = vld [vmem:[#allocation2 + $0xc90] sm:$0xff]  ;;  %v1920_v47 = vpack.c.bf16 %v522_v42, %v514_v41  ;;  %v32_v30 = vld [vmem:[%s2752_s0 + $0x28] sm:$0xff] }
  0x65   :  { %2073 = vmatprep.subr.bf16.mxu1 %v2072_v58  ;;  %v458_v58 = vld [vmem:[#allocation2 + $0xd48] sm:$0xff]  ;;  %v1902_v61 = vpack.c.bf16 %v441_v53, %v433_v52  ;;  %v2094_v62 = vpack.c.bf16 %v443_v56, %v435_v54  ;;  %v523_v52 = vld [vmem:[#allocation2 + $0xf50] sm:$0xff]  ;;  %v540_v56 = vld [vmem:[#allocation2 + $0xfd8] sm:$0xff] }
  0x66   :  { %v1904_v63 = vpack.c.bf16 %v458_v58, %v450_v57  ;;  %v530_v53 = vld [vmem:[#allocation2 + $0xf88] sm:$0xff]  ;;  %v596_v41 = vld [vmem:[#allocation2 + $0x1198] sm:$0xff] }
  0x67   :  { %1883 = vmatpush1.bf16.msra.mxu0 %v1882_v0  ;;  %v449_v0 = vld [vmem:[#allocation2 + $0xd00] sm:$0xff]  ;;  %v538_v54 = vld [vmem:[#allocation2 + $0xfc8] sm:$0xff]  ;;  %v604_v42 = vld [vmem:[#allocation2 + $0x11d8] sm:$0xff] }
  0x68   :  { %2075 = vmatpush1.bf16.msra.mxu1 %v2074_v1  ;;  %1885 = vmatprep.subr.bf16.mxu0 %v1884_v2  ;;  %v457_v1 = vld [vmem:[#allocation2 + $0xd40] sm:$0xff]  ;;  %v451_v2 = vld [vmem:[#allocation2 + $0xd10] sm:$0xff]  ;;  %v1924_v59 = vpack.c.bf16 %v538_v54, %v530_v53  ;;  %v612_v53 = vld [vmem:[#allocation2 + $0x1218] sm:$0xff] }
  0x69   :  { %2077 = vmatprep.subr.bf16.mxu1 %v2076_v6  ;;  %v474_v6 = vld [vmem:[#allocation2 + $0xdc8] sm:$0xff]  ;;  %v1906_v9 = vpack.c.bf16 %v457_v1, %v449_v0  ;;  %v2098_v10 = vpack.c.bf16 %v459_v4, %v451_v2  ;;  %v539_v0 = vld [vmem:[#allocation2 + $0xfd0] sm:$0xff]  ;;  %v556_v4 = vld [vmem:[#allocation2 + $0x1058] sm:$0xff] }
  0x6a   :  { %v1908_v11 = vpack.c.bf16 %v474_v6, %v466_v5  ;;  %v546_v1 = vld [vmem:[#allocation2 + $0x1008] sm:$0xff]  ;;  %v620_v54 = vld [vmem:[#allocation2 + $0x1258] sm:$0xff] }
  0x6b   :  { %1887 = vmatpush1.bf16.msra.mxu0 %v1886_v12  ;;  %v465_v12 = vld [vmem:[#allocation2 + $0xd80] sm:$0xff]  ;;  %v554_v2 = vld [vmem:[#allocation2 + $0x1048] sm:$0xff] }
  0x6c   :  { %2079 = vmatpush1.bf16.msra.mxu1 %v2078_v14  ;;  %1889 = vmatprep.subr.bf16.mxu0 %v1888_v15  ;;  %v467_v14 = vld [vmem:[#allocation2 + $0xd90] sm:$0xff]  ;;  %v2100_v15 = vpack.c.bf16 %v476_v8, %v468_v7  ;;  %v1910_v21 = vpack.c.bf16 %v473_v13, %v465_v12  ;;  %v1928_v7 = vpack.c.bf16 %v554_v2, %v546_v1  ;;  %v545_v8 = vld [vmem:[#allocation2 + $0x1000] sm:$0xff]  ;;  %v562_v13 = vld [vmem:[#allocation2 + $0x1088] sm:$0xff] }
  0x6d   :  { %2081 = vmatprep.subr.bf16.mxu1 %v2080_v19  ;;  %v484_v19 = vld [vmem:[#allocation2 + $0xe18] sm:$0xff]  ;;  %v2102_v22 = vpack.c.bf16 %v475_v16, %v467_v14  ;;  %v555_v12 = vld [vmem:[#allocation2 + $0x1050] sm:$0xff]  ;;  %v570_v14 = vld [vmem:[#allocation2 + $0x10c8] sm:$0xff] }
  0x6e   :  { %v572_v16 = vld [vmem:[#allocation2 + $0x10d8] sm:$0xff] }
  0x6f   :  { %1891 = vmatpush1.bf16.msra.mxu0 %v1890_v25  ;;  %v489_v25 = vld [vmem:[#allocation2 + $0xe40] sm:$0xff]  ;;  %v628_v1 = vld [vmem:[#allocation2 + $0x1298] sm:$0xff] }
  0x70   :  { %2083 = vmatpush1.bf16.msra.mxu1 %v2082_v26  ;;  %1893 = vmatprep.subr.bf16.mxu0 %v1892_v27  ;;  %v483_v26 = vld [vmem:[#allocation2 + $0xe10] sm:$0xff]  ;;  %v2104_v27 = vpack.c.bf16 %v492_v20, %v484_v19  ;;  %v1914_v33 = vpack.c.bf16 %v489_v25, %v481_v24  ;;  %v1932_v20 = vpack.c.bf16 %v570_v14, %v562_v13  ;;  %v636_v2 = vld [vmem:[#allocation2 + $0x12d8] sm:$0xff] }
  0x71   :  { %2085 = vmatprep.subr.bf16.mxu1 %v2084_v31  ;;  %v500_v31 = vld [vmem:[#allocation2 + $0xe98] sm:$0xff]  ;;  %v2106_v34 = vpack.c.bf16 %v491_v28, %v483_v26  ;;  %v571_v25 = vld [vmem:[#allocation2 + $0x10d0] sm:$0xff]  ;;  %v578_v26 = vld [vmem:[#allocation2 + $0x1108] sm:$0xff] }
  0x72   :  { %v580_v28 = vld [vmem:[#allocation2 + $0x1118] sm:$0xff] }
  0x73   :  { %1895 = vmatpush1.bf16.msra.mxu0 %v1894_v37  ;;  %v505_v37 = vld [vmem:[#allocation2 + $0xec0] sm:$0xff]  ;;  %v644_v13 = vld [vmem:[#allocation2 + $0x1318] sm:$0xff] }
  0x74   :  { %2087 = vmatpush1.bf16.msra.mxu1 %v2086_v38  ;;  %1897 = vmatprep.subr.bf16.mxu0 %v1896_v39  ;;  %v499_v38 = vld [vmem:[#allocation2 + $0xe90] sm:$0xff]  ;;  %v2108_v39 = vpack.c.bf16 %v508_v32, %v500_v31  ;;  %v1918_v45 = vpack.c.bf16 %v505_v37, %v497_v36  ;;  %v2128_v37 = vpack.c.bf16 %v588_v29, %v580_v28  ;;  %v652_v14 = vld [vmem:[#allocation2 + $0x1358] sm:$0xff] }
  0x75   :  { %2089 = vmatprep.subr.bf16.mxu1 %v2088_v43  ;;  %v516_v43 = vld [vmem:[#allocation2 + $0xf18] sm:$0xff]  ;;  %v2110_v46 = vpack.c.bf16 %v507_v40, %v499_v38  ;;  %v579_v36 = vld [vmem:[#allocation2 + $0x1110] sm:$0xff]  ;;  %v602_v40 = vld [vmem:[#allocation2 + $0x11c8] sm:$0xff] }
  0x76   :  { %v587_v38 = vld [vmem:[#allocation2 + $0x1150] sm:$0xff] }
  0x77   :  { %1899 = vmatpush1.bf16.msra.mxu0 %v1898_v49  ;;  %v521_v49 = vld [vmem:[#allocation2 + $0xf40] sm:$0xff] }
  0x78   :  { %2091 = vmatpush1.bf16.msra.mxu1 %v2090_v50  ;;  %1901 = vmatprep.subr.bf16.mxu0 %v1900_v51  ;;  %v515_v50 = vld [vmem:[#allocation2 + $0xf10] sm:$0xff]  ;;  %v2112_v51 = vpack.c.bf16 %v524_v44, %v516_v43  ;;  %v1922_v57 = vpack.c.bf16 %v521_v49, %v513_v48  ;;  %v2130_v44 = vpack.c.bf16 %v587_v38, %v579_v36  ;;  %v682_v36 = vld [vmem:[#allocation2 + $0x1448] sm:$0xff]  ;;  %v684_v38 = vld [vmem:[#allocation2 + $0x1458] sm:$0xff] }
  0x79   :  { %2093 = vmatprep.subr.bf16.mxu1 %v2092_v55  ;;  %v532_v55 = vld [vmem:[#allocation2 + $0xf98] sm:$0xff]  ;;  %v2114_v58 = vpack.c.bf16 %v523_v52, %v515_v50  ;;  %v595_v48 = vld [vmem:[#allocation2 + $0x1190] sm:$0xff]  ;;  %v2132_v49 = vpack.c.bf16 %v604_v42, %v596_v41  ;;  %v618_v52 = vld [vmem:[#allocation2 + $0x1248] sm:$0xff] }
  0x7a   :  { %v603_v50 = vld [vmem:[#allocation2 + $0x11d0] sm:$0xff]  ;;  %v673_v42 = vld [vmem:[#allocation2 + $0x1400] sm:$0xff] }
  0x7b   :  { %1903 = vmatpush1.bf16.msra.mxu0 %v1902_v61  ;;  %v537_v61 = vld [vmem:[#allocation2 + $0xfc0] sm:$0xff] }
  0x7c   :  { %2095 = vmatpush1.bf16.msra.mxu1 %v2094_v62  ;;  %1905 = vmatprep.subr.bf16.mxu0 %v1904_v63  ;;  %v531_v62 = vld [vmem:[#allocation2 + $0xf90] sm:$0xff]  ;;  %v2116_v63 = vpack.c.bf16 %v540_v56, %v532_v55  ;;  %v1926_v5 = vpack.c.bf16 %v537_v61, %v529_v60  ;;  %v2134_v56 = vpack.c.bf16 %v603_v50, %v595_v48  ;;  %v698_v48 = vld [vmem:[#allocation2 + $0x14c8] sm:$0xff]  ;;  %v700_v50 = vld [vmem:[#allocation2 + $0x14d8] sm:$0xff] }
  0x7d   :  { %2097 = vmatprep.subr.bf16.mxu1 %v2096_v3  ;;  %v548_v3 = vld [vmem:[#allocation2 + $0x1018] sm:$0xff]  ;;  %v2118_v6 = vpack.c.bf16 %v539_v0, %v531_v62  ;;  %v611_v60 = vld [vmem:[#allocation2 + $0x1210] sm:$0xff]  ;;  %v2136_v61 = vpack.c.bf16 %v620_v54, %v612_v53  ;;  %v634_v0 = vld [vmem:[#allocation2 + $0x12c8] sm:$0xff] }
  0x7e   :  { %v619_v62 = vld [vmem:[#allocation2 + $0x1250] sm:$0xff]  ;;  %v689_v54 = vld [vmem:[#allocation2 + $0x1480] sm:$0xff] }
  0x7f   :  { %1907 = vmatpush1.bf16.msra.mxu0 %v1906_v9  ;;  %v553_v9 = vld [vmem:[#allocation2 + $0x1040] sm:$0xff] }
  0x80   :  { %2099 = vmatpush1.bf16.msra.mxu1 %v2098_v10  ;;  %1909 = vmatprep.subr.bf16.mxu0 %v1908_v11  ;;  %v547_v10 = vld [vmem:[#allocation2 + $0x1010] sm:$0xff]  ;;  %v2120_v11 = vpack.c.bf16 %v556_v4, %v548_v3  ;;  %v1930_v18 = vpack.c.bf16 %v553_v9, %v545_v8  ;;  %v2138_v4 = vpack.c.bf16 %v619_v62, %v611_v60  ;;  %v714_v60 = vld [vmem:[#allocation2 + $0x1548] sm:$0xff]  ;;  %v716_v62 = vld [vmem:[#allocation2 + $0x1558] sm:$0xff] }
  0x81   :  { %2101 = vmatprep.subr.bf16.mxu1 %v2100_v15  ;;  %v564_v15 = vld [vmem:[#allocation2 + $0x1098] sm:$0xff]  ;;  %v2122_v19 = vpack.c.bf16 %v555_v12, %v547_v10  ;;  %v627_v8 = vld [vmem:[#allocation2 + $0x1290] sm:$0xff]  ;;  %v2140_v9 = vpack.c.bf16 %v636_v2, %v628_v1  ;;  %v650_v12 = vld [vmem:[#allocation2 + $0x1348] sm:$0xff] }
  0x82   :  { %v2124_v24 = vpack.c.bf16 %v572_v16, %v564_v15  ;;  %v635_v10 = vld [vmem:[#allocation2 + $0x12d0] sm:$0xff]  ;;  %v705_v2 = vld [vmem:[#allocation2 + $0x1500] sm:$0xff] }
  0x83   :  { %1911 = vmatpush1.bf16.msra.mxu0 %v1910_v21  ;;  %v561_v21 = vld [vmem:[#allocation2 + $0x1080] sm:$0xff]  ;;  %v2142_v16 = vpack.c.bf16 %v635_v10, %v627_v8  ;;  %v730_v8 = vld [vmem:[#allocation2 + $0x15c8] sm:$0xff]  ;;  %v732_v10 = vld [vmem:[#allocation2 + $0x15d8] sm:$0xff] }
  0x84   :  { %2103 = vmatpush1.bf16.msra.mxu1 %v2102_v22  ;;  %1913 = vmatprep.subr.bf16.mxu0 %v1912_v23  ;;  %v569_v22 = vld [vmem:[#allocation2 + $0x10c0] sm:$0xff]  ;;  %v563_v23 = vld [vmem:[#allocation2 + $0x1090] sm:$0xff] }
  0x85   :  { %2105 = vmatprep.subr.bf16.mxu1 %v2104_v27  ;;  %v586_v27 = vld [vmem:[#allocation2 + $0x1148] sm:$0xff]  ;;  %v1934_v31 = vpack.c.bf16 %v569_v22, %v561_v21  ;;  %v2126_v32 = vpack.c.bf16 %v571_v25, %v563_v23  ;;  %v2144_v21 = vpack.c.bf16 %v652_v14, %v644_v13  ;;  %v651_v22 = vld [vmem:[#allocation2 + $0x1350] sm:$0xff]  ;;  %v660_v25 = vld [vmem:[#allocation2 + $0x1398] sm:$0xff] }
  0x86   :  { %v658_v23 = vld [vmem:[#allocation2 + $0x1388] sm:$0xff]  ;;  %v721_v14 = vld [vmem:[#allocation2 + $0x1580] sm:$0xff] }
  0x87   :  { %1915 = vmatpush1.bf16.msra.mxu0 %v1914_v33  ;;  %v1936_v33 = vpack.c.bf16 %v586_v27, %v578_v26  ;;  %v668_v26 = vld [vmem:[#allocation2 + $0x13d8] sm:$0xff] }
  0x88   :  { %2107 = vmatpush1.bf16.msra.mxu1 %v2106_v34  ;;  %1917 = vmatprep.subr.bf16.mxu0 %v1916_v35  ;;  %v577_v34 = vld [vmem:[#allocation2 + $0x1100] sm:$0xff] }
  0x89   :  { %2109 = vmatprep.subr.bf16.mxu1 %v2108_v39  ;;  %v585_v35 = vld [vmem:[#allocation2 + $0x1140] sm:$0xff]  ;;  %v594_v39 = vld [vmem:[#allocation2 + $0x1188] sm:$0xff] }
  0x8a   :  { %v1938_v43 = vpack.c.bf16 %v585_v35, %v577_v34  ;;  %v667_v34 = vld [vmem:[#allocation2 + $0x13d0] sm:$0xff]  ;;  %v674_v35 = vld [vmem:[#allocation2 + $0x1408] sm:$0xff] }
  0x8b   :  { %1919 = vmatpush1.bf16.msra.mxu0 %v1918_v45  ;;  %v1940_v45 = vpack.c.bf16 %v602_v40, %v594_v39  ;;  %v1960_v41 = vpack.c.bf16 %v682_v36, %v674_v35 }
  0x8c   :  { %2111 = vmatpush1.bf16.msra.mxu1 %v2110_v46  ;;  %1921 = vmatprep.subr.bf16.mxu0 %v1920_v47  ;;  %v593_v46 = vld [vmem:[#allocation2 + $0x1180] sm:$0xff] }
  0x8d   :  { %2113 = vmatprep.subr.bf16.mxu1 %v2112_v51  ;;  %v601_v47 = vld [vmem:[#allocation2 + $0x11c0] sm:$0xff]  ;;  %v610_v51 = vld [vmem:[#allocation2 + $0x1208] sm:$0xff] }
  0x8e   :  { %v1942_v55 = vpack.c.bf16 %v601_v47, %v593_v46  ;;  %v683_v46 = vld [vmem:[#allocation2 + $0x1450] sm:$0xff]  ;;  %v690_v47 = vld [vmem:[#allocation2 + $0x1488] sm:$0xff] }
  0x8f   :  { %1923 = vmatpush1.bf16.msra.mxu0 %v1922_v57  ;;  %v1944_v57 = vpack.c.bf16 %v618_v52, %v610_v51  ;;  %v1964_v53 = vpack.c.bf16 %v698_v48, %v690_v47 }
  0x90   :  { %2115 = vmatpush1.bf16.msra.mxu1 %v2114_v58  ;;  %1925 = vmatprep.subr.bf16.mxu0 %v1924_v59  ;;  %v609_v58 = vld [vmem:[#allocation2 + $0x1200] sm:$0xff] }
  0x91   :  { %2117 = vmatprep.subr.bf16.mxu1 %v2116_v63  ;;  %v617_v59 = vld [vmem:[#allocation2 + $0x1240] sm:$0xff]  ;;  %v626_v63 = vld [vmem:[#allocation2 + $0x1288] sm:$0xff] }
  0x92   :  { %v1946_v3 = vpack.c.bf16 %v617_v59, %v609_v58  ;;  %v699_v58 = vld [vmem:[#allocation2 + $0x14d0] sm:$0xff]  ;;  %v706_v59 = vld [vmem:[#allocation2 + $0x1508] sm:$0xff] }
  0x93   :  { %1927 = vmatpush1.bf16.msra.mxu0 %v1926_v5  ;;  %v1948_v5 = vpack.c.bf16 %v634_v0, %v626_v63  ;;  %v1968_v1 = vpack.c.bf16 %v714_v60, %v706_v59 }
  0x94   :  { %2119 = vmatpush1.bf16.msra.mxu1 %v2118_v6  ;;  %1929 = vmatprep.subr.bf16.mxu0 %v1928_v7  ;;  %v625_v6 = vld [vmem:[#allocation2 + $0x1280] sm:$0xff] }
  0x95   :  { %2121 = vmatprep.subr.bf16.mxu1 %v2120_v11  ;;  %v633_v7 = vld [vmem:[#allocation2 + $0x12c0] sm:$0xff]  ;;  %v642_v11 = vld [vmem:[#allocation2 + $0x1308] sm:$0xff] }
  0x96   :  { %937 = vmatmul.mubr.f32.vlgmr.msra.gmra.mrb[0].mxu0 %v29_v17  ;;  %v1950_v15 = vpack.c.bf16 %v633_v7, %v625_v6  ;;  %v715_v6 = vld [vmem:[#allocation2 + $0x1550] sm:$0xff]  ;;  %v722_v7 = vld [vmem:[#allocation2 + $0x1588] sm:$0xff] }
  0x97   :  { %1931 = vmatpush1.bf16.msra.mxu0 %v1930_v18  ;;  %1150 = vmatmul.mubr.f32.vlgmr.msra.gmra.mrb[0].mxu1 %v29_v17  ;;  %v1952_v17 = vpack.c.bf16 %v650_v12, %v642_v11  ;;  %v641_v18 = vld [vmem:[#allocation2 + $0x1300] sm:$0xff]  ;;  %v1972_v13 = vpack.c.bf16 %v730_v8, %v722_v7 }
  0x98   :  { %2123 = vmatpush1.bf16.msra.mxu1 %v2122_v19  ;;  %1933 = vmatprep.subr.bf16.mxu0 %v1932_v20  ;;  %v649_v19 = vld [vmem:[#allocation2 + $0x1340] sm:$0xff]  ;;  %v643_v20 = vld [vmem:[#allocation2 + $0x1310] sm:$0xff] }
  0x99   :  { %2125 = vmatprep.subr.bf16.mxu1 %v2124_v24  ;;  %1007 = vmatprep.mubr.f32.mxu0 %v32_v30  ;;  %v666_v24 = vld [vmem:[#allocation2 + $0x13c8] sm:$0xff]  ;;  %v1954_v27 = vpack.c.bf16 %v649_v19, %v641_v18  ;;  %v2146_v28 = vpack.c.bf16 %v651_v22, %v643_v20  ;;  %v731_v18 = vld [vmem:[#allocation2 + $0x15d0] sm:$0xff]  ;;  %v748_v22 = vld [vmem:[#allocation2 + $0x1658] sm:$0xff] }
  0x9a   :  { %1220 = vmatprep.mubr.f32.mxu1 %v32_v30  ;;  %v1956_v29 = vpack.c.bf16 %v666_v24, %v658_v23  ;;  %v657_v30 = vld [vmem:[#allocation2 + $0x1380] sm:$0xff]  ;;  %v738_v19 = vld [vmem:[#allocation2 + $0x1608] sm:$0xff] }
  0x9b   :  { %1935 = vmatpush1.bf16.msra.mxu0 %v1934_v31  ;;  %v665_v31 = vld [vmem:[#allocation2 + $0x13c0] sm:$0xff]  ;;  %v746_v20 = vld [vmem:[#allocation2 + $0x1648] sm:$0xff] }
  0x9c   :  { %2127 = vmatpush1.bf16.msra.mxu1 %v2126_v32  ;;  %1937 = vmatprep.subr.bf16.mxu0 %v1936_v33  ;;  %v659_v32 = vld [vmem:[#allocation2 + $0x1390] sm:$0xff]  ;;  %v2148_v33 = vpack.c.bf16 %v668_v26, %v660_v25  ;;  %v1958_v39 = vpack.c.bf16 %v665_v31, %v657_v30  ;;  %v1976_v25 = vpack.c.bf16 %v746_v20, %v738_v19  ;;  %v737_v26 = vld [vmem:[#allocation2 + $0x1600] sm:$0xff]  ;;  %v754_v31 = vld [vmem:[#allocation2 + $0x1688] sm:$0xff] }
  0x9d   :  { %2129 = vmatprep.subr.bf16.mxu1 %v2128_v37  ;;  %v676_v37 = vld [vmem:[#allocation2 + $0x1418] sm:$0xff]  ;;  %v2150_v40 = vpack.c.bf16 %v667_v34, %v659_v32  ;;  %v747_v30 = vld [vmem:[#allocation2 + $0x1650] sm:$0xff]  ;;  %v762_v32 = vld [vmem:[#allocation2 + $0x16c8] sm:$0xff] }
  0x9e   :  { %v764_v34 = vld [vmem:[#allocation2 + $0x16d8] sm:$0xff]  ;;  %v31_v19 = vld [vmem:[%s2752_s0 + $0x20] sm:$0xff] }
  0x9f   :  { %1939 = vmatpush1.bf16.msra.mxu0 %v1938_v43  ;;  %v681_v43 = vld [vmem:[#allocation2 + $0x1440] sm:$0xff] }
  0xa0   :  { %2131 = vmatpush1.bf16.msra.mxu1 %v2130_v44  ;;  %1941 = vmatprep.subr.bf16.mxu0 %v1940_v45  ;;  %v675_v44 = vld [vmem:[#allocation2 + $0x1410] sm:$0xff]  ;;  %v2152_v45 = vpack.c.bf16 %v684_v38, %v676_v37  ;;  %v1962_v51 = vpack.c.bf16 %v681_v43, %v673_v42  ;;  %v1980_v37 = vpack.c.bf16 %v762_v32, %v754_v31  ;;  %v753_v38 = vld [vmem:[#allocation2 + $0x1680] sm:$0xff]  ;;  %v770_v43 = vld [vmem:[#allocation2 + $0x1708] sm:$0xff] }
  0xa1   :  { %2133 = vmatprep.subr.bf16.mxu1 %v2132_v49  ;;  %v692_v49 = vld [vmem:[#allocation2 + $0x1498] sm:$0xff]  ;;  %v2154_v52 = vpack.c.bf16 %v683_v46, %v675_v44  ;;  %v763_v42 = vld [vmem:[#allocation2 + $0x16d0] sm:$0xff]  ;;  %v778_v44 = vld [vmem:[#allocation2 + $0x1748] sm:$0xff] }
  0xa2   :  { %v780_v46 = vld [vmem:[#allocation2 + $0x1758] sm:$0xff] }
  0xa3   :  { %1943 = vmatpush1.bf16.msra.mxu0 %v1942_v55  ;;  %v697_v55 = vld [vmem:[#allocation2 + $0x14c0] sm:$0xff]  ;;  %v80_v31 = vld [vmem:[#allocation2 + $0x178] sm:$0xff] }
  0xa4   :  { %2135 = vmatpush1.bf16.msra.mxu1 %v2134_v56  ;;  %1945 = vmatprep.subr.bf16.mxu0 %v1944_v57  ;;  %v691_v56 = vld [vmem:[#allocation2 + $0x1490] sm:$0xff]  ;;  %v2156_v57 = vpack.c.bf16 %v700_v50, %v692_v49  ;;  %v1966_v63 = vpack.c.bf16 %v697_v55, %v689_v54  ;;  %v1984_v49 = vpack.c.bf16 %v778_v44, %v770_v43  ;;  %v769_v50 = vld [vmem:[#allocation2 + $0x1700] sm:$0xff]  ;;  %v786_v55 = vld [vmem:[#allocation2 + $0x1788] sm:$0xff] }
  0xa5   :  { %2137 = vmatprep.subr.bf16.mxu1 %v2136_v61  ;;  %v708_v61 = vld [vmem:[#allocation2 + $0x1518] sm:$0xff]  ;;  %v2158_v0 = vpack.c.bf16 %v699_v58, %v691_v56  ;;  %v779_v54 = vld [vmem:[#allocation2 + $0x1750] sm:$0xff]  ;;  %v794_v56 = vld [vmem:[#allocation2 + $0x17c8] sm:$0xff] }
  0xa6   :  { %v796_v58 = vld [vmem:[#allocation2 + $0x17d8] sm:$0xff] }
  0xa7   :  { %1947 = vmatpush1.bf16.msra.mxu0 %v1946_v3  ;;  %v713_v3 = vld [vmem:[#allocation2 + $0x1540] sm:$0xff]  ;;  %v88_v43 = vld [vmem:[#allocation2 + $0x1b8] sm:$0xff] }
  0xa8   :  { %2139 = vmatpush1.bf16.msra.mxu1 %v2138_v4  ;;  %1949 = vmatprep.subr.bf16.mxu0 %v1948_v5  ;;  %v707_v4 = vld [vmem:[#allocation2 + $0x1510] sm:$0xff]  ;;  %v2160_v5 = vpack.c.bf16 %v716_v62, %v708_v61  ;;  %v1970_v11 = vpack.c.bf16 %v713_v3, %v705_v2  ;;  %v1988_v61 = vpack.c.bf16 %v794_v56, %v786_v55  ;;  %v785_v62 = vld [vmem:[#allocation2 + $0x1780] sm:$0xff]  ;;  %v38_v3 = vld [vmem:[#allocation2 + $0x28] sm:$0xff] }
  0xa9   :  { %2141 = vmatprep.subr.bf16.mxu1 %v2140_v9  ;;  %v724_v9 = vld [vmem:[#allocation2 + $0x1598] sm:$0xff]  ;;  %v2162_v12 = vpack.c.bf16 %v715_v6, %v707_v4  ;;  %v795_v2 = vld [vmem:[#allocation2 + $0x17d0] sm:$0xff]  ;;  %v46_v4 = vld [vmem:[#allocation2 + $0x68] sm:$0xff] }
  0xaa   :  { %v48_v6 = vld [vmem:[#allocation2 + $0x78] sm:$0xff] }
  0xab   :  { %1951 = vmatpush1.bf16.msra.mxu0 %v1950_v15  ;;  %v729_v15 = vld [vmem:[#allocation2 + $0x15c0] sm:$0xff]  ;;  %v96_v44 = vld [vmem:[#allocation2 + $0x1f8] sm:$0xff] }
  0xac   :  { %2143 = vmatpush1.bf16.msra.mxu1 %v2142_v16  ;;  %1953 = vmatprep.subr.bf16.mxu0 %v1952_v17  ;;  %v723_v16 = vld [vmem:[#allocation2 + $0x1590] sm:$0xff]  ;;  %v2164_v17 = vpack.c.bf16 %v732_v10, %v724_v9  ;;  %v1974_v23 = vpack.c.bf16 %v729_v15, %v721_v14  ;;  %v2184_v9 = vpack.c.bf16 %v46_v4, %v38_v3  ;;  %v37_v10 = vld [vmem:[#allocation2 + $0x20] sm:$0xff]  ;;  %v54_v15 = vld [vmem:[#allocation2 + $0xa8] sm:$0xff] }
  0xad   :  { %2145 = vmatprep.subr.bf16.mxu1 %v2144_v21  ;;  %v740_v21 = vld [vmem:[#allocation2 + $0x1618] sm:$0xff]  ;;  %v2166_v24 = vpack.c.bf16 %v731_v18, %v723_v16  ;;  %v47_v14 = vld [vmem:[#allocation2 + $0x70] sm:$0xff]  ;;  %v62_v16 = vld [vmem:[#allocation2 + $0xe8] sm:$0xff] }
  0xae   :  { %v64_v18 = vld [vmem:[#allocation2 + $0xf8] sm:$0xff] }
  0xaf   :  { %1955 = vmatpush1.bf16.msra.mxu0 %v1954_v27  ;;  %v745_v27 = vld [vmem:[#allocation2 + $0x1640] sm:$0xff]  ;;  %v104_v55 = vld [vmem:[#allocation2 + $0x238] sm:$0xff] }
  0xb0   :  { %2147 = vmatpush1.bf16.msra.mxu1 %v2146_v28  ;;  %1957 = vmatprep.subr.bf16.mxu0 %v1956_v29  ;;  %v739_v28 = vld [vmem:[#allocation2 + $0x1610] sm:$0xff]  ;;  %v2168_v29 = vpack.c.bf16 %v748_v22, %v740_v21  ;;  %v1978_v35 = vpack.c.bf16 %v745_v27, %v737_v26  ;;  %v2188_v22 = vpack.c.bf16 %v62_v16, %v54_v15  ;;  %v112_v56 = vld [vmem:[#allocation2 + $0x278] sm:$0xff] }
  0xb1   :  { %2149 = vmatprep.subr.bf16.mxu1 %v2148_v33  ;;  %v756_v33 = vld [vmem:[#allocation2 + $0x1698] sm:$0xff]  ;;  %v2170_v36 = vpack.c.bf16 %v747_v30, %v739_v28  ;;  %v63_v27 = vld [vmem:[#allocation2 + $0xf0] sm:$0xff]  ;;  %v70_v28 = vld [vmem:[#allocation2 + $0x128] sm:$0xff] }
  0xb2   :  { %v72_v30 = vld [vmem:[#allocation2 + $0x138] sm:$0xff] }
  0xb3   :  { %1959 = vmatpush1.bf16.msra.mxu0 %v1958_v39  ;;  %v761_v39 = vld [vmem:[#allocation2 + $0x16c0] sm:$0xff]  ;;  %v120_v3 = vld [vmem:[#allocation2 + $0x2b8] sm:$0xff] }
  0xb4   :  { %2151 = vmatpush1.bf16.msra.mxu1 %v2150_v40  ;;  %1961 = vmatprep.subr.bf16.mxu0 %v1960_v41  ;;  %v755_v40 = vld [vmem:[#allocation2 + $0x1690] sm:$0xff]  ;;  %v2172_v41 = vpack.c.bf16 %v764_v34, %v756_v33  ;;  %v1982_v47 = vpack.c.bf16 %v761_v39, %v753_v38  ;;  %v2384_v38 = vpack.c.bf16 %v80_v31, %v72_v30  ;;  %v128_v4 = vld [vmem:[#allocation2 + $0x2f8] sm:$0xff] }
  0xb5   :  { %2153 = vmatprep.subr.bf16.mxu1 %v2152_v45  ;;  %v772_v45 = vld [vmem:[#allocation2 + $0x1718] sm:$0xff]  ;;  %v2174_v48 = vpack.c.bf16 %v763_v42, %v755_v40  ;;  %v79_v39 = vld [vmem:[#allocation2 + $0x170] sm:$0xff]  ;;  %v86_v40 = vld [vmem:[#allocation2 + $0x1a8] sm:$0xff] }
  0xb6   :  { %v2587_v42 = vld [vmem:[%s2752_s0 + $0x8] sm:$0xff]  ;;  %v136_v15 = vld [vmem:[#allocation2 + $0x338] sm:$0xff] }
  0xb7   :  { %1963 = vmatpush1.bf16.msra.mxu0 %v1962_v51  ;;  %v777_v51 = vld [vmem:[#allocation2 + $0x1740] sm:$0xff]  ;;  %v144_v16 = vld [vmem:[#allocation2 + $0x378] sm:$0xff] }
  0xb8   :  { %2155 = vmatpush1.bf16.msra.mxu1 %v2154_v52  ;;  %1965 = vmatprep.subr.bf16.mxu0 %v1964_v53  ;;  %v771_v52 = vld [vmem:[#allocation2 + $0x1710] sm:$0xff]  ;;  %v2176_v53 = vpack.c.bf16 %v780_v46, %v772_v45  ;;  %v1986_v59 = vpack.c.bf16 %v777_v51, %v769_v50  ;;  %v2388_v51 = vpack.c.bf16 %v96_v44, %v88_v43  ;;  %v165_v44 = vld [vmem:[#allocation2 + $0x420] sm:$0xff] }
  0xb9   :  { %2157 = vmatprep.subr.bf16.mxu1 %v2156_v57  ;;  %v788_v57 = vld [vmem:[#allocation2 + $0x1798] sm:$0xff]  ;;  %v2178_v60 = vpack.c.bf16 %v779_v54, %v771_v52  ;;  %v87_v50 = vld [vmem:[#allocation2 + $0x1b0] sm:$0xff]  ;;  %v110_v54 = vld [vmem:[#allocation2 + $0x268] sm:$0xff] }
  0xba   :  { %v95_v52 = vld [vmem:[#allocation2 + $0x1f0] sm:$0xff] }
  0xbb   :  { %1967 = vmatpush1.bf16.msra.mxu0 %v1966_v63  ;;  %v793_v63 = vld [vmem:[#allocation2 + $0x17c0] sm:$0xff] }
  0xbc   :  { %2159 = vmatpush1.bf16.msra.mxu1 %v2158_v0  ;;  %1969 = vmatprep.subr.bf16.mxu0 %v1968_v1  ;;  %v787_v0 = vld [vmem:[#allocation2 + $0x1790] sm:$0xff]  ;;  %v2180_v1 = vpack.c.bf16 %v796_v58, %v788_v57  ;;  %v1990_v7 = vpack.c.bf16 %v793_v63, %v785_v62  ;;  %v2390_v58 = vpack.c.bf16 %v95_v52, %v87_v50  ;;  %v190_v50 = vld [vmem:[#allocation2 + $0x4e8] sm:$0xff]  ;;  %v192_v52 = vld [vmem:[#allocation2 + $0x4f8] sm:$0xff] }
  0xbd   :  { %2161 = vmatprep.subr.bf16.mxu1 %v2160_v5  ;;  %v40_v5 = vld [vmem:[#allocation2 + $0x38] sm:$0xff]  ;;  %v2182_v8 = vpack.c.bf16 %v795_v2, %v787_v0  ;;  %v103_v62 = vld [vmem:[#allocation2 + $0x230] sm:$0xff]  ;;  %v2392_v63 = vpack.c.bf16 %v112_v56, %v104_v55  ;;  %v126_v2 = vld [vmem:[#allocation2 + $0x2e8] sm:$0xff] }
  0xbe   :  { %v111_v0 = vld [vmem:[#allocation2 + $0x270] sm:$0xff]  ;;  %v181_v56 = vld [vmem:[#allocation2 + $0x4a0] sm:$0xff] }
  0xbf   :  { %1971 = vmatpush1.bf16.msra.mxu0 %v1970_v11  ;;  %v45_v11 = vld [vmem:[#allocation2 + $0x60] sm:$0xff] }
  0xc0   :  { %2163 = vmatpush1.bf16.msra.mxu1 %v2162_v12  ;;  %1973 = vmatprep.subr.bf16.mxu0 %v1972_v13  ;;  %v39_v12 = vld [vmem:[#allocation2 + $0x30] sm:$0xff]  ;;  %v2376_v13 = vpack.c.bf16 %v48_v6, %v40_v5  ;;  %v2186_v20 = vpack.c.bf16 %v45_v11, %v37_v10  ;;  %v2394_v6 = vpack.c.bf16 %v111_v0, %v103_v62  ;;  %v206_v62 = vld [vmem:[#allocation2 + $0x568] sm:$0xff]  ;;  %v208_v0 = vld [vmem:[#allocation2 + $0x578] sm:$0xff] }
  0xc1   :  { %2165 = vmatprep.subr.bf16.mxu1 %v2164_v17  ;;  %v56_v17 = vld [vmem:[#allocation2 + $0xb8] sm:$0xff]  ;;  %v2378_v21 = vpack.c.bf16 %v47_v14, %v39_v12  ;;  %v119_v10 = vld [vmem:[#allocation2 + $0x2b0] sm:$0xff]  ;;  %v2396_v11 = vpack.c.bf16 %v128_v4, %v120_v3  ;;  %v142_v14 = vld [vmem:[#allocation2 + $0x368] sm:$0xff] }
  0xc2   :  { %v2380_v26 = vpack.c.bf16 %v64_v18, %v56_v17  ;;  %v127_v12 = vld [vmem:[#allocation2 + $0x2f0] sm:$0xff]  ;;  %v197_v4 = vld [vmem:[#allocation2 + $0x520] sm:$0xff] }
  0xc3   :  { %1975 = vmatpush1.bf16.msra.mxu0 %v1974_v23  ;;  %v53_v23 = vld [vmem:[#allocation2 + $0xa0] sm:$0xff]  ;;  %v2398_v18 = vpack.c.bf16 %v127_v12, %v119_v10  ;;  %v222_v10 = vld [vmem:[#allocation2 + $0x5e8] sm:$0xff]  ;;  %v224_v12 = vld [vmem:[#allocation2 + $0x5f8] sm:$0xff] }
  0xc4   :  { %2167 = vmatpush1.bf16.msra.mxu1 %v2166_v24  ;;  %1977 = vmatprep.subr.bf16.mxu0 %v1976_v25  ;;  %v61_v24 = vld [vmem:[#allocation2 + $0xe0] sm:$0xff]  ;;  %v55_v25 = vld [vmem:[#allocation2 + $0xb0] sm:$0xff] }
  0xc5   :  { %2169 = vmatprep.subr.bf16.mxu1 %v2168_v29  ;;  %v78_v29 = vld [vmem:[#allocation2 + $0x168] sm:$0xff]  ;;  %v2190_v32 = vpack.c.bf16 %v61_v24, %v53_v23  ;;  %v2382_v33 = vpack.c.bf16 %v63_v27, %v55_v25  ;;  %v2400_v23 = vpack.c.bf16 %v144_v16, %v136_v15  ;;  %v143_v24 = vld [vmem:[#allocation2 + $0x370] sm:$0xff]  ;;  %v152_v27 = vld [vmem:[#allocation2 + $0x3b8] sm:$0xff] }
  0xc6   :  { %v2192_v34 = vpack.c.bf16 %v78_v29, %v70_v28  ;;  %v150_v25 = vld [vmem:[#allocation2 + $0x3a8] sm:$0xff]  ;;  %v160_v28 = vld [vmem:[#allocation2 + $0x3f8] sm:$0xff]  ;;  %v213_v16 = vld [vmem:[#allocation2 + $0x5a0] sm:$0xff] }
  0xc7   :  { %1979 = vmatpush1.bf16.msra.mxu0 %v1978_v35  ;;  %v69_v35 = vld [vmem:[#allocation2 + $0x120] sm:$0xff] }
  0xc8   :  { %2171 = vmatpush1.bf16.msra.mxu1 %v2170_v36  ;;  %1981 = vmatprep.subr.bf16.mxu0 %v1980_v37  ;;  %v77_v36 = vld [vmem:[#allocation2 + $0x160] sm:$0xff]  ;;  %v71_v37 = vld [vmem:[#allocation2 + $0x130] sm:$0xff] }
  0xc9   :  { %2173 = vmatprep.subr.bf16.mxu1 %v2172_v41  ;;  %v94_v41 = vld [vmem:[#allocation2 + $0x1e8] sm:$0xff]  ;;  %v2194_v45 = vpack.c.bf16 %v77_v36, %v69_v35  ;;  %v2386_v46 = vpack.c.bf16 %v79_v39, %v71_v37  ;;  %v2404_v35 = vpack.c.bf16 %v160_v28, %v152_v27  ;;  %v159_v36 = vld [vmem:[#allocation2 + $0x3f0] sm:$0xff]  ;;  %v168_v39 = vld [vmem:[#allocation2 + $0x438] sm:$0xff] }
  0xca   :  { %v166_v37 = vld [vmem:[#allocation2 + $0x428] sm:$0xff]  ;;  %v229_v28 = vld [vmem:[#allocation2 + $0x620] sm:$0xff] }
  0xcb   :  { %1983 = vmatpush1.bf16.msra.mxu0 %v1982_v47  ;;  %v2196_v47 = vpack.c.bf16 %v94_v41, %v86_v40  ;;  %v176_v40 = vld [vmem:[#allocation2 + $0x478] sm:$0xff] }
  0xcc   :  { %2175 = vmatpush1.bf16.msra.mxu1 %v2174_v48  ;;  %1985 = vmatprep.subr.bf16.mxu0 %v1984_v49  ;;  %v85_v48 = vld [vmem:[#allocation2 + $0x1a0] sm:$0xff] }
  0xcd   :  { %2177 = vmatprep.subr.bf16.mxu1 %v2176_v53  ;;  %v93_v49 = vld [vmem:[#allocation2 + $0x1e0] sm:$0xff]  ;;  %v102_v53 = vld [vmem:[#allocation2 + $0x228] sm:$0xff] }
  0xce   :  { %v2198_v57 = vpack.c.bf16 %v93_v49, %v85_v48  ;;  %v175_v48 = vld [vmem:[#allocation2 + $0x470] sm:$0xff]  ;;  %v182_v49 = vld [vmem:[#allocation2 + $0x4a8] sm:$0xff] }
  0xcf   :  { %1987 = vmatpush1.bf16.msra.mxu0 %v1986_v59  ;;  %v2200_v59 = vpack.c.bf16 %v110_v54, %v102_v53  ;;  %v2220_v55 = vpack.c.bf16 %v190_v50, %v182_v49 }
  0xd0   :  { %2179 = vmatpush1.bf16.msra.mxu1 %v2178_v60  ;;  %1989 = vmatprep.subr.bf16.mxu0 %v1988_v61  ;;  %v101_v60 = vld [vmem:[#allocation2 + $0x220] sm:$0xff] }
  0xd1   :  { %2181 = vmatprep.subr.bf16.mxu1 %v2180_v1  ;;  %v109_v61 = vld [vmem:[#allocation2 + $0x260] sm:$0xff]  ;;  %v118_v1 = vld [vmem:[#allocation2 + $0x2a8] sm:$0xff] }
  0xd2   :  { %v2202_v5 = vpack.c.bf16 %v109_v61, %v101_v60  ;;  %v191_v60 = vld [vmem:[#allocation2 + $0x4f0] sm:$0xff]  ;;  %v198_v61 = vld [vmem:[#allocation2 + $0x528] sm:$0xff] }
  0xd3   :  { %1991 = vmatpush1.bf16.msra.mxu0 %v1990_v7  ;;  %v2204_v7 = vpack.c.bf16 %v126_v2, %v118_v1  ;;  %v2224_v3 = vpack.c.bf16 %v206_v62, %v198_v61 }
  0xd4   :  { %2183 = vmatpush1.bf16.msra.mxu1 %v2182_v8  ;;  %2185 = vmatprep.subr.bf16.mxu0 %v2184_v9  ;;  %v117_v8 = vld [vmem:[#allocation2 + $0x2a0] sm:$0xff] }
  0xd5   :  { %2377 = vmatprep.subr.bf16.mxu1 %v2376_v13  ;;  %v125_v9 = vld [vmem:[#allocation2 + $0x2e0] sm:$0xff]  ;;  %v134_v13 = vld [vmem:[#allocation2 + $0x328] sm:$0xff] }
  0xd6   :  { %1008 = vmatmul.mubr.f32.vlgmr.msra.gmra.mrb[0].mxu0 %v31_v19  ;;  %v2206_v17 = vpack.c.bf16 %v125_v9, %v117_v8  ;;  %v207_v8 = vld [vmem:[#allocation2 + $0x570] sm:$0xff]  ;;  %v214_v9 = vld [vmem:[#allocation2 + $0x5a8] sm:$0xff] }
  0xd7   :  { %1221 = vmatmul.mubr.f32.vlgmr.msra.gmra.mrb[0].mxu1 %v31_v19  ;;  %2187 = vmatpush1.bf16.msra.mxu0 %v2186_v20  ;;  %v2208_v19 = vpack.c.bf16 %v142_v14, %v134_v13  ;;  %v133_v20 = vld [vmem:[#allocation2 + $0x320] sm:$0xff]  ;;  %v2228_v15 = vpack.c.bf16 %v222_v10, %v214_v9 }
  0xd8   :  { %2379 = vmatpush1.bf16.msra.mxu1 %v2378_v21  ;;  %2189 = vmatprep.subr.bf16.mxu0 %v2188_v22  ;;  %v141_v21 = vld [vmem:[#allocation2 + $0x360] sm:$0xff]  ;;  %v135_v22 = vld [vmem:[#allocation2 + $0x330] sm:$0xff] }
  0xd9   :  { %2381 = vmatprep.subr.bf16.mxu1 %v2380_v26  ;;  %1291 = vmatprep.mubr.f32.mxu0 %v2587_v42  ;;  %v158_v26 = vld [vmem:[#allocation2 + $0x3e8] sm:$0xff]  ;;  %v2210_v29 = vpack.c.bf16 %v141_v21, %v133_v20  ;;  %v2402_v30 = vpack.c.bf16 %v143_v24, %v135_v22  ;;  %v223_v20 = vld [vmem:[#allocation2 + $0x5f0] sm:$0xff]  ;;  %v240_v24 = vld [vmem:[#allocation2 + $0x678] sm:$0xff] }
  0xda   :  { %1504 = vmatprep.mubr.f32.mxu1 %v2587_v42  ;;  %v2212_v31 = vpack.c.bf16 %v158_v26, %v150_v25  ;;  %v230_v21 = vld [vmem:[#allocation2 + $0x628] sm:$0xff] }
  0xdb   :  { %2191 = vmatpush1.bf16.msra.mxu0 %v2190_v32  ;;  %v149_v32 = vld [vmem:[#allocation2 + $0x3a0] sm:$0xff]  ;;  %v238_v22 = vld [vmem:[#allocation2 + $0x668] sm:$0xff] }
  0xdc   :  { %2383 = vmatpush1.bf16.msra.mxu1 %v2382_v33  ;;  %2193 = vmatprep.subr.bf16.mxu0 %v2192_v34  ;;  %v157_v33 = vld [vmem:[#allocation2 + $0x3e0] sm:$0xff]  ;;  %v151_v34 = vld [vmem:[#allocation2 + $0x3b0] sm:$0xff]  ;;  %v2232_v27 = vpack.c.bf16 %v238_v22, %v230_v21 }
  0xdd   :  { %2385 = vmatprep.subr.bf16.mxu1 %v2384_v38  ;;  %v174_v38 = vld [vmem:[#allocation2 + $0x468] sm:$0xff]  ;;  %v2214_v41 = vpack.c.bf16 %v157_v33, %v149_v32  ;;  %v2406_v42 = vpack.c.bf16 %v159_v36, %v151_v34  ;;  %v239_v32 = vld [vmem:[#allocation2 + $0x670] sm:$0xff]  ;;  %v256_v36 = vld [vmem:[#allocation2 + $0x6f8] sm:$0xff] }
  0xde   :  { %v2216_v43 = vpack.c.bf16 %v174_v38, %v166_v37  ;;  %v246_v33 = vld [vmem:[#allocation2 + $0x6a8] sm:$0xff] }
  0xdf   :  { %2195 = vmatpush1.bf16.msra.mxu0 %v2194_v45  ;;  %v173_v45 = vld [vmem:[#allocation2 + $0x460] sm:$0xff]  ;;  %v254_v34 = vld [vmem:[#allocation2 + $0x6e8] sm:$0xff] }
  0xe0   :  { %2387 = vmatpush1.bf16.msra.mxu1 %v2386_v46  ;;  %2197 = vmatprep.subr.bf16.mxu0 %v2196_v47  ;;  %v167_v46 = vld [vmem:[#allocation2 + $0x430] sm:$0xff]  ;;  %v2408_v47 = vpack.c.bf16 %v176_v40, %v168_v39  ;;  %v2218_v53 = vpack.c.bf16 %v173_v45, %v165_v44  ;;  %v2236_v39 = vpack.c.bf16 %v254_v34, %v246_v33  ;;  %v245_v40 = vld [vmem:[#allocation2 + $0x6a0] sm:$0xff]  ;;  %v262_v45 = vld [vmem:[#allocation2 + $0x728] sm:$0xff] }
  0xe1   :  { %2389 = vmatprep.subr.bf16.mxu1 %v2388_v51  ;;  %v184_v51 = vld [vmem:[#allocation2 + $0x4b8] sm:$0xff]  ;;  %v2410_v54 = vpack.c.bf16 %v175_v48, %v167_v46  ;;  %v255_v44 = vld [vmem:[#allocation2 + $0x6f0] sm:$0xff]  ;;  %v270_v46 = vld [vmem:[#allocation2 + $0x768] sm:$0xff] }
  0xe2   :  { %v272_v48 = vld [vmem:[#allocation2 + $0x778] sm:$0xff] }
  0xe3   :  { %2199 = vmatpush1.bf16.msra.mxu0 %v2198_v57  ;;  %v189_v57 = vld [vmem:[#allocation2 + $0x4e0] sm:$0xff]  ;;  %v336_v33 = vld [vmem:[#allocation2 + $0x978] sm:$0xff] }
  0xe4   :  { %2391 = vmatpush1.bf16.msra.mxu1 %v2390_v58  ;;  %2201 = vmatprep.subr.bf16.mxu0 %v2200_v59  ;;  %v183_v58 = vld [vmem:[#allocation2 + $0x4b0] sm:$0xff]  ;;  %v2412_v59 = vpack.c.bf16 %v192_v52, %v184_v51  ;;  %v2222_v1 = vpack.c.bf16 %v189_v57, %v181_v56  ;;  %v2240_v51 = vpack.c.bf16 %v270_v46, %v262_v45  ;;  %v261_v52 = vld [vmem:[#allocation2 + $0x720] sm:$0xff]  ;;  %v278_v57 = vld [vmem:[#allocation2 + $0x7a8] sm:$0xff] }
  0xe5   :  { %2393 = vmatprep.subr.bf16.mxu1 %v2392_v63  ;;  %v200_v63 = vld [vmem:[#allocation2 + $0x538] sm:$0xff]  ;;  %v2414_v2 = vpack.c.bf16 %v191_v60, %v183_v58  ;;  %v271_v56 = vld [vmem:[#allocation2 + $0x770] sm:$0xff]  ;;  %v286_v58 = vld [vmem:[#allocation2 + $0x7e8] sm:$0xff] }
  0xe6   :  { %v288_v60 = vld [vmem:[#allocation2 + $0x7f8] sm:$0xff] }
  0xe7   :  { %2203 = vmatpush1.bf16.msra.mxu0 %v2202_v5  ;;  %v205_v5 = vld [vmem:[#allocation2 + $0x560] sm:$0xff]  ;;  %v344_v45 = vld [vmem:[#allocation2 + $0x9b8] sm:$0xff] }
  0xe8   :  { %2395 = vmatpush1.bf16.msra.mxu1 %v2394_v6  ;;  %2205 = vmatprep.subr.bf16.mxu0 %v2204_v7  ;;  %v199_v6 = vld [vmem:[#allocation2 + $0x530] sm:$0xff]  ;;  %v2416_v7 = vpack.c.bf16 %v208_v0, %v200_v63  ;;  %v2226_v13 = vpack.c.bf16 %v205_v5, %v197_v4  ;;  %v2244_v63 = vpack.c.bf16 %v286_v58, %v278_v57  ;;  %v277_v0 = vld [vmem:[#allocation2 + $0x7a0] sm:$0xff]  ;;  %v294_v5 = vld [vmem:[#allocation2 + $0x828] sm:$0xff] }
  0xe9   :  { %2397 = vmatprep.subr.bf16.mxu1 %v2396_v11  ;;  %v216_v11 = vld [vmem:[#allocation2 + $0x5b8] sm:$0xff]  ;;  %v2418_v14 = vpack.c.bf16 %v207_v8, %v199_v6  ;;  %v287_v4 = vld [vmem:[#allocation2 + $0x7f0] sm:$0xff]  ;;  %v302_v6 = vld [vmem:[#allocation2 + $0x868] sm:$0xff] }
  0xea   :  { %v304_v8 = vld [vmem:[#allocation2 + $0x878] sm:$0xff] }
  0xeb   :  { %2207 = vmatpush1.bf16.msra.mxu0 %v2206_v17  ;;  %v221_v17 = vld [vmem:[#allocation2 + $0x5e0] sm:$0xff]  ;;  %v352_v46 = vld [vmem:[#allocation2 + $0x9f8] sm:$0xff] }
  0xec   :  { %2399 = vmatpush1.bf16.msra.mxu1 %v2398_v18  ;;  %2209 = vmatprep.subr.bf16.mxu0 %v2208_v19  ;;  %v215_v18 = vld [vmem:[#allocation2 + $0x5b0] sm:$0xff]  ;;  %v2420_v19 = vpack.c.bf16 %v224_v12, %v216_v11  ;;  %v2230_v25 = vpack.c.bf16 %v221_v17, %v213_v16  ;;  %v2248_v11 = vpack.c.bf16 %v302_v6, %v294_v5  ;;  %v293_v12 = vld [vmem:[#allocation2 + $0x820] sm:$0xff]  ;;  %v310_v17 = vld [vmem:[#allocation2 + $0x8a8] sm:$0xff] }
  0xed   :  { %2401 = vmatprep.subr.bf16.mxu1 %v2400_v23  ;;  %v232_v23 = vld [vmem:[#allocation2 + $0x638] sm:$0xff]  ;;  %v2422_v26 = vpack.c.bf16 %v223_v20, %v215_v18  ;;  %v303_v16 = vld [vmem:[#allocation2 + $0x870] sm:$0xff]  ;;  %v318_v18 = vld [vmem:[#allocation2 + $0x8e8] sm:$0xff] }
  0xee   :  { %v320_v20 = vld [vmem:[#allocation2 + $0x8f8] sm:$0xff] }
  0xef   :  { %2211 = vmatpush1.bf16.msra.mxu0 %v2210_v29  ;;  %v237_v29 = vld [vmem:[#allocation2 + $0x660] sm:$0xff]  ;;  %v360_v57 = vld [vmem:[#allocation2 + $0xa38] sm:$0xff] }
  0xf0   :  { %2403 = vmatpush1.bf16.msra.mxu1 %v2402_v30  ;;  %2213 = vmatprep.subr.bf16.mxu0 %v2212_v31  ;;  %v231_v30 = vld [vmem:[#allocation2 + $0x630] sm:$0xff]  ;;  %v2424_v31 = vpack.c.bf16 %v240_v24, %v232_v23  ;;  %v2234_v37 = vpack.c.bf16 %v237_v29, %v229_v28  ;;  %v2252_v23 = vpack.c.bf16 %v318_v18, %v310_v17  ;;  %v309_v24 = vld [vmem:[#allocation2 + $0x8a0] sm:$0xff]  ;;  %v326_v29 = vld [vmem:[#allocation2 + $0x928] sm:$0xff] }
  0xf1   :  { %2405 = vmatprep.subr.bf16.mxu1 %v2404_v35  ;;  %v248_v35 = vld [vmem:[#allocation2 + $0x6b8] sm:$0xff]  ;;  %v2426_v38 = vpack.c.bf16 %v239_v32, %v231_v30  ;;  %v319_v28 = vld [vmem:[#allocation2 + $0x8f0] sm:$0xff]  ;;  %v334_v30 = vld [vmem:[#allocation2 + $0x968] sm:$0xff] }
  0xf2   :  { %v328_v32 = vld [vmem:[#allocation2 + $0x938] sm:$0xff] }
  0xf3   :  { %2215 = vmatpush1.bf16.msra.mxu0 %v2214_v41  ;;  %v253_v41 = vld [vmem:[#allocation2 + $0x6e0] sm:$0xff]  ;;  %v368_v58 = vld [vmem:[#allocation2 + $0xa78] sm:$0xff] }
  0xf4   :  { %2407 = vmatpush1.bf16.msra.mxu1 %v2406_v42  ;;  %2217 = vmatprep.subr.bf16.mxu0 %v2216_v43  ;;  %v247_v42 = vld [vmem:[#allocation2 + $0x6b0] sm:$0xff]  ;;  %v2428_v43 = vpack.c.bf16 %v256_v36, %v248_v35  ;;  %v2238_v49 = vpack.c.bf16 %v253_v41, %v245_v40  ;;  %v2256_v36 = vpack.c.bf16 %v334_v30, %v326_v29  ;;  %v376_v5 = vld [vmem:[#allocation2 + $0xab8] sm:$0xff] }
  0xf5   :  { %2409 = vmatprep.subr.bf16.mxu1 %v2408_v47  ;;  %v264_v47 = vld [vmem:[#allocation2 + $0x738] sm:$0xff]  ;;  %v2430_v50 = vpack.c.bf16 %v255_v44, %v247_v42  ;;  %v2448_v40 = vpack.c.bf16 %v336_v33, %v328_v32  ;;  %v335_v41 = vld [vmem:[#allocation2 + $0x970] sm:$0xff]  ;;  %v342_v42 = vld [vmem:[#allocation2 + $0x9a8] sm:$0xff] }
  0xf6   :  { %v2589_v44 = vld [vmem:[%s2752_s0 + $0x18] sm:$0xff] }
  0xf7   :  { %2219 = vmatpush1.bf16.msra.mxu0 %v2218_v53  ;;  %v269_v53 = vld [vmem:[#allocation2 + $0x760] sm:$0xff]  ;;  %v384_v6 = vld [vmem:[#allocation2 + $0xaf8] sm:$0xff] }
  0xf8   :  { %2411 = vmatpush1.bf16.msra.mxu1 %v2410_v54  ;;  %2221 = vmatprep.subr.bf16.mxu0 %v2220_v55  ;;  %v263_v54 = vld [vmem:[#allocation2 + $0x730] sm:$0xff]  ;;  %v2432_v55 = vpack.c.bf16 %v272_v48, %v264_v47  ;;  %v2242_v61 = vpack.c.bf16 %v269_v53, %v261_v52  ;;  %v2452_v53 = vpack.c.bf16 %v352_v46, %v344_v45  ;;  %v392_v17 = vld [vmem:[#allocation2 + $0xb38] sm:$0xff]  ;;  %v421_v46 = vld [vmem:[#allocation2 + $0xc20] sm:$0xff] }
  0xf9   :  { %2413 = vmatprep.subr.bf16.mxu1 %v2412_v59  ;;  %v280_v59 = vld [vmem:[#allocation2 + $0x7b8] sm:$0xff]  ;;  %v2434_v62 = vpack.c.bf16 %v271_v56, %v263_v54  ;;  %v343_v52 = vld [vmem:[#allocation2 + $0x9b0] sm:$0xff]  ;;  %v366_v56 = vld [vmem:[#allocation2 + $0xa68] sm:$0xff] }
  0xfa   :  { %v351_v54 = vld [vmem:[#allocation2 + $0x9f0] sm:$0xff]  ;;  %v400_v18 = vld [vmem:[#allocation2 + $0xb78] sm:$0xff] }
  0xfb   :  { %2223 = vmatpush1.bf16.msra.mxu0 %v2222_v1  ;;  %v285_v1 = vld [vmem:[#allocation2 + $0x7e0] sm:$0xff]  ;;  %v408_v29 = vld [vmem:[#allocation2 + $0xbb8] sm:$0xff] }
  0xfc   :  { %2415 = vmatpush1.bf16.msra.mxu1 %v2414_v2  ;;  %2225 = vmatprep.subr.bf16.mxu0 %v2224_v3  ;;  %v279_v2 = vld [vmem:[#allocation2 + $0x7b0] sm:$0xff]  ;;  %v2436_v3 = vpack.c.bf16 %v288_v60, %v280_v59  ;;  %v2246_v9 = vpack.c.bf16 %v285_v1, %v277_v0  ;;  %v2454_v60 = vpack.c.bf16 %v351_v54, %v343_v52  ;;  %v416_v30 = vld [vmem:[#allocation2 + $0xbf8] sm:$0xff]  ;;  %v446_v52 = vld [vmem:[#allocation2 + $0xce8] sm:$0xff] }
  0xfd   :  { %2417 = vmatprep.subr.bf16.mxu1 %v2416_v7  ;;  %v296_v7 = vld [vmem:[#allocation2 + $0x838] sm:$0xff]  ;;  %v2438_v10 = vpack.c.bf16 %v287_v4, %v279_v2  ;;  %v359_v0 = vld [vmem:[#allocation2 + $0xa30] sm:$0xff]  ;;  %v2456_v1 = vpack.c.bf16 %v368_v58, %v360_v57  ;;  %v382_v4 = vld [vmem:[#allocation2 + $0xae8] sm:$0xff] }
  0xfe   :  { %v367_v2 = vld [vmem:[#allocation2 + $0xa70] sm:$0xff]  ;;  %v448_v54 = vld [vmem:[#allocation2 + $0xcf8] sm:$0xff]  ;;  %v437_v58 = vld [vmem:[#allocation2 + $0xca0] sm:$0xff] }
  0xff   :  { %2227 = vmatpush1.bf16.msra.mxu0 %v2226_v13  ;;  %v301_v13 = vld [vmem:[#allocation2 + $0x860] sm:$0xff] }
 0x100   :  { %2419 = vmatpush1.bf16.msra.mxu1 %v2418_v14  ;;  %2229 = vmatprep.subr.bf16.mxu0 %v2228_v15  ;;  %v295_v14 = vld [vmem:[#allocation2 + $0x830] sm:$0xff]  ;;  %v2440_v15 = vpack.c.bf16 %v304_v8, %v296_v7  ;;  %v2250_v21 = vpack.c.bf16 %v301_v13, %v293_v12  ;;  %v2458_v8 = vpack.c.bf16 %v367_v2, %v359_v0  ;;  %v462_v0 = vld [vmem:[#allocation2 + $0xd68] sm:$0xff]  ;;  %v464_v2 = vld [vmem:[#allocation2 + $0xd78] sm:$0xff] }
 0x101   :  { %2421 = vmatprep.subr.bf16.mxu1 %v2420_v19  ;;  %v312_v19 = vld [vmem:[#allocation2 + $0x8b8] sm:$0xff]  ;;  %v2442_v22 = vpack.c.bf16 %v303_v16, %v295_v14  ;;  %v375_v12 = vld [vmem:[#allocation2 + $0xab0] sm:$0xff]  ;;  %v2460_v13 = vpack.c.bf16 %v384_v6, %v376_v5  ;;  %v398_v16 = vld [vmem:[#allocation2 + $0xb68] sm:$0xff] }
 0x102   :  { %v383_v14 = vld [vmem:[#allocation2 + $0xaf0] sm:$0xff]  ;;  %v453_v6 = vld [vmem:[#allocation2 + $0xd20] sm:$0xff] }
 0x103   :  { %2231 = vmatpush1.bf16.msra.mxu0 %v2230_v25  ;;  %v317_v25 = vld [vmem:[#allocation2 + $0x8e0] sm:$0xff] }
 0x104   :  { %2423 = vmatpush1.bf16.msra.mxu1 %v2422_v26  ;;  %2233 = vmatprep.subr.bf16.mxu0 %v2232_v27  ;;  %v311_v26 = vld [vmem:[#allocation2 + $0x8b0] sm:$0xff]  ;;  %v2444_v27 = vpack.c.bf16 %v320_v20, %v312_v19  ;;  %v2254_v34 = vpack.c.bf16 %v317_v25, %v309_v24  ;;  %v2462_v20 = vpack.c.bf16 %v383_v14, %v375_v12  ;;  %v478_v12 = vld [vmem:[#allocation2 + $0xde8] sm:$0xff]  ;;  %v480_v14 = vld [vmem:[#allocation2 + $0xdf8] sm:$0xff] }
 0x105   :  { %2425 = vmatprep.subr.bf16.mxu1 %v2424_v31  ;;  %v2588_v31 = vld [vmem:[%s2752_s0] sm:$0xff]  ;;  %v2446_v35 = vpack.c.bf16 %v319_v28, %v311_v26  ;;  %v391_v24 = vld [vmem:[#allocation2 + $0xb30] sm:$0xff]  ;;  %v2464_v25 = vpack.c.bf16 %v400_v18, %v392_v17  ;;  %v414_v28 = vld [vmem:[#allocation2 + $0xbe8] sm:$0xff] }
 0x106   :  { %v399_v26 = vld [vmem:[#allocation2 + $0xb70] sm:$0xff]  ;;  %v469_v18 = vld [vmem:[#allocation2 + $0xda0] sm:$0xff] }
 0x107   :  { %2235 = vmatpush1.bf16.msra.mxu0 %v2234_v37  ;;  %v325_v37 = vld [vmem:[#allocation2 + $0x920] sm:$0xff]  ;;  %v2466_v32 = vpack.c.bf16 %v399_v26, %v391_v24  ;;  %v494_v24 = vld [vmem:[#allocation2 + $0xe68] sm:$0xff]  ;;  %v496_v26 = vld [vmem:[#allocation2 + $0xe78] sm:$0xff] }
 0x108   :  { %2427 = vmatpush1.bf16.msra.mxu1 %v2426_v38  ;;  %2237 = vmatprep.subr.bf16.mxu0 %v2236_v39  ;;  %v333_v38 = vld [vmem:[#allocation2 + $0x960] sm:$0xff]  ;;  %v327_v39 = vld [vmem:[#allocation2 + $0x930] sm:$0xff] }
 0x109   :  { %2429 = vmatprep.subr.bf16.mxu1 %v2428_v43  ;;  %v350_v43 = vld [vmem:[#allocation2 + $0x9e8] sm:$0xff]  ;;  %v2258_v47 = vpack.c.bf16 %v333_v38, %v325_v37  ;;  %v2450_v48 = vpack.c.bf16 %v335_v41, %v327_v39  ;;  %v2468_v37 = vpack.c.bf16 %v416_v30, %v408_v29  ;;  %v415_v38 = vld [vmem:[#allocation2 + $0xbf0] sm:$0xff]  ;;  %v424_v41 = vld [vmem:[#allocation2 + $0xc38] sm:$0xff] }
 0x10a   :  { %v422_v39 = vld [vmem:[#allocation2 + $0xc28] sm:$0xff]  ;;  %v485_v30 = vld [vmem:[#allocation2 + $0xe20] sm:$0xff] }
 0x10b   :  { %2239 = vmatpush1.bf16.msra.mxu0 %v2238_v49  ;;  %v2260_v49 = vpack.c.bf16 %v350_v43, %v342_v42  ;;  %v432_v42 = vld [vmem:[#allocation2 + $0xc78] sm:$0xff] }
 0x10c   :  { %2431 = vmatpush1.bf16.msra.mxu1 %v2430_v50  ;;  %2241 = vmatprep.subr.bf16.mxu0 %v2240_v51  ;;  %v341_v50 = vld [vmem:[#allocation2 + $0x9a0] sm:$0xff] }
 0x10d   :  { %2433 = vmatprep.subr.bf16.mxu1 %v2432_v55  ;;  %v349_v51 = vld [vmem:[#allocation2 + $0x9e0] sm:$0xff]  ;;  %v358_v55 = vld [vmem:[#allocation2 + $0xa28] sm:$0xff] }
 0x10e   :  { %v2262_v59 = vpack.c.bf16 %v349_v51, %v341_v50  ;;  %v431_v50 = vld [vmem:[#allocation2 + $0xc70] sm:$0xff]  ;;  %v438_v51 = vld [vmem:[#allocation2 + $0xca8] sm:$0xff] }
 0x10f   :  { %2243 = vmatpush1.bf16.msra.mxu0 %v2242_v61  ;;  %v2264_v61 = vpack.c.bf16 %v366_v56, %v358_v55  ;;  %v2284_v57 = vpack.c.bf16 %v446_v52, %v438_v51 }
 0x110   :  { %2435 = vmatpush1.bf16.msra.mxu1 %v2434_v62  ;;  %2245 = vmatprep.subr.bf16.mxu0 %v2244_v63  ;;  %v357_v62 = vld [vmem:[#allocation2 + $0xa20] sm:$0xff] }
 0x111   :  { %2437 = vmatprep.subr.bf16.mxu1 %v2436_v3  ;;  %v365_v63 = vld [vmem:[#allocation2 + $0xa60] sm:$0xff]  ;;  %v374_v3 = vld [vmem:[#allocation2 + $0xaa8] sm:$0xff] }
 0x112   :  { %v2266_v7 = vpack.c.bf16 %v365_v63, %v357_v62  ;;  %v447_v62 = vld [vmem:[#allocation2 + $0xcf0] sm:$0xff]  ;;  %v454_v63 = vld [vmem:[#allocation2 + $0xd28] sm:$0xff] }
 0x113   :  { %2247 = vmatpush1.bf16.msra.mxu0 %v2246_v9  ;;  %v2268_v9 = vpack.c.bf16 %v382_v4, %v374_v3  ;;  %v2288_v5 = vpack.c.bf16 %v462_v0, %v454_v63 }
 0x114   :  { %2439 = vmatpush1.bf16.msra.mxu1 %v2438_v10  ;;  %2249 = vmatprep.subr.bf16.mxu0 %v2248_v11  ;;  %v373_v10 = vld [vmem:[#allocation2 + $0xaa0] sm:$0xff] }
 0x115   :  { %2441 = vmatprep.subr.bf16.mxu1 %v2440_v15  ;;  %v381_v11 = vld [vmem:[#allocation2 + $0xae0] sm:$0xff]  ;;  %v390_v15 = vld [vmem:[#allocation2 + $0xb28] sm:$0xff] }
 0x116   :  { %1292 = vmatmul.mubr.f32.vlgmr.msra.gmra.mrb[2].mxu0 %v2588_v31  ;;  %v2270_v19 = vpack.c.bf16 %v381_v11, %v373_v10  ;;  %v463_v10 = vld [vmem:[#allocation2 + $0xd70] sm:$0xff]  ;;  %v470_v11 = vld [vmem:[#allocation2 + $0xda8] sm:$0xff] }
 0x117   :  { %2251 = vmatpush1.bf16.msra.mxu0 %v2250_v21  ;;  %1505 = vmatmul.mubr.f32.vlgmr.msra.gmra.mrb[2].mxu1 %v2588_v31  ;;  %v2272_v21 = vpack.c.bf16 %v398_v16, %v390_v15  ;;  %v2292_v17 = vpack.c.bf16 %v478_v12, %v470_v11 }
 0x118   :  { %2443 = vmatpush1.bf16.msra.mxu1 %v2442_v22  ;;  %2253 = vmatprep.subr.bf16.mxu0 %v2252_v23  ;;  %v389_v22 = vld [vmem:[#allocation2 + $0xb20] sm:$0xff] }
 0x119   :  { %2445 = vmatprep.subr.bf16.mxu1 %v2444_v27  ;;  %1362 = vmatprep.mubr.f32.mxu0 %v2589_v44  ;;  %v397_v23 = vld [vmem:[#allocation2 + $0xb60] sm:$0xff]  ;;  %v406_v27 = vld [vmem:[#allocation2 + $0xba8] sm:$0xff] }
 0x11a   :  { %1575 = vmatprep.mubr.f32.mxu1 %v2589_v44  ;;  %v2274_v31 = vpack.c.bf16 %v397_v23, %v389_v22  ;;  %v2276_v33 = vpack.c.bf16 %v414_v28, %v406_v27  ;;  %v479_v22 = vld [vmem:[#allocation2 + $0xdf0] sm:$0xff]  ;;  %v486_v23 = vld [vmem:[#allocation2 + $0xe28] sm:$0xff] }
 0x11b   :  { %2255 = vmatpush1.bf16.msra.mxu0 %v2254_v34  ;;  %v405_v34 = vld [vmem:[#allocation2 + $0xba0] sm:$0xff]  ;;  %v2296_v29 = vpack.c.bf16 %v494_v24, %v486_v23 }
 0x11c   :  { %2447 = vmatpush1.bf16.msra.mxu1 %v2446_v35  ;;  %2257 = vmatprep.subr.bf16.mxu0 %v2256_v36  ;;  %v413_v35 = vld [vmem:[#allocation2 + $0xbe0] sm:$0xff]  ;;  %v407_v36 = vld [vmem:[#allocation2 + $0xbb0] sm:$0xff] }
 0x11d   :  { %2449 = vmatprep.subr.bf16.mxu1 %v2448_v40  ;;  %v430_v40 = vld [vmem:[#allocation2 + $0xc68] sm:$0xff]  ;;  %v2278_v43 = vpack.c.bf16 %v413_v35, %v405_v34  ;;  %v2470_v44 = vpack.c.bf16 %v415_v38, %v407_v36  ;;  %v495_v34 = vld [vmem:[#allocation2 + $0xe70] sm:$0xff]  ;;  %v512_v38 = vld [vmem:[#allocation2 + $0xef8] sm:$0xff] }
 0x11e   :  { %v2280_v45 = vpack.c.bf16 %v430_v40, %v422_v39  ;;  %v502_v35 = vld [vmem:[#allocation2 + $0xea8] sm:$0xff] }
 0x11f   :  { %2259 = vmatpush1.bf16.msra.mxu0 %v2258_v47  ;;  %v429_v47 = vld [vmem:[#allocation2 + $0xc60] sm:$0xff]  ;;  %v510_v36 = vld [vmem:[#allocation2 + $0xee8] sm:$0xff] }
 0x120   :  { %2451 = vmatpush1.bf16.msra.mxu1 %v2450_v48  ;;  %2261 = vmatprep.subr.bf16.mxu0 %v2260_v49  ;;  %v423_v48 = vld [vmem:[#allocation2 + $0xc30] sm:$0xff]  ;;  %v2472_v49 = vpack.c.bf16 %v432_v42, %v424_v41  ;;  %v2282_v55 = vpack.c.bf16 %v429_v47, %v421_v46  ;;  %v2300_v41 = vpack.c.bf16 %v510_v36, %v502_v35  ;;  %v501_v42 = vld [vmem:[#allocation2 + $0xea0] sm:$0xff]  ;;  %v518_v47 = vld [vmem:[#allocation2 + $0xf28] sm:$0xff] }
 0x121   :  { %2453 = vmatprep.subr.bf16.mxu1 %v2452_v53  ;;  %v440_v53 = vld [vmem:[#allocation2 + $0xcb8] sm:$0xff]  ;;  %v2474_v56 = vpack.c.bf16 %v431_v50, %v423_v48  ;;  %v511_v46 = vld [vmem:[#allocation2 + $0xef0] sm:$0xff]  ;;  %v526_v48 = vld [vmem:[#allocation2 + $0xf68] sm:$0xff] }
 0x122   :  { %v528_v50 = vld [vmem:[#allocation2 + $0xf78] sm:$0xff] }
 0x123   :  { %2263 = vmatpush1.bf16.msra.mxu0 %v2262_v59  ;;  %v445_v59 = vld [vmem:[#allocation2 + $0xce0] sm:$0xff]  ;;  %v592_v35 = vld [vmem:[#allocation2 + $0x1178] sm:$0xff] }
 0x124   :  { %2455 = vmatpush1.bf16.msra.mxu1 %v2454_v60  ;;  %2265 = vmatprep.subr.bf16.mxu0 %v2264_v61  ;;  %v439_v60 = vld [vmem:[#allocation2 + $0xcb0] sm:$0xff]  ;;  %v2476_v61 = vpack.c.bf16 %v448_v54, %v440_v53  ;;  %v2286_v3 = vpack.c.bf16 %v445_v59, %v437_v58  ;;  %v2304_v53 = vpack.c.bf16 %v526_v48, %v518_v47  ;;  %v517_v54 = vld [vmem:[#allocation2 + $0xf20] sm:$0xff]  ;;  %v534_v59 = vld [vmem:[#allocation2 + $0xfa8] sm:$0xff] }
 0x125   :  { %2457 = vmatprep.subr.bf16.mxu1 %v2456_v1  ;;  %v456_v1 = vld [vmem:[#allocation2 + $0xd38] sm:$0xff]  ;;  %v2478_v4 = vpack.c.bf16 %v447_v62, %v439_v60  ;;  %v527_v58 = vld [vmem:[#allocation2 + $0xf70] sm:$0xff]  ;;  %v542_v60 = vld [vmem:[#allocation2 + $0xfe8] sm:$0xff] }
 0x126   :  { %v544_v62 = vld [vmem:[#allocation2 + $0xff8] sm:$0xff] }
 0x127   :  { %2267 = vmatpush1.bf16.msra.mxu0 %v2266_v7  ;;  %v461_v7 = vld [vmem:[#allocation2 + $0xd60] sm:$0xff]  ;;  %v600_v47 = vld [vmem:[#allocation2 + $0x11b8] sm:$0xff] }
 0x128   :  { %2459 = vmatpush1.bf16.msra.mxu1 %v2458_v8  ;;  %2269 = vmatprep.subr.bf16.mxu0 %v2268_v9  ;;  %v455_v8 = vld [vmem:[#allocation2 + $0xd30] sm:$0xff]  ;;  %v2480_v9 = vpack.c.bf16 %v464_v2, %v456_v1  ;;  %v2290_v15 = vpack.c.bf16 %v461_v7, %v453_v6  ;;  %v2308_v1 = vpack.c.bf16 %v542_v60, %v534_v59  ;;  %v533_v2 = vld [vmem:[#allocation2 + $0xfa0] sm:$0xff]  ;;  %v550_v7 = vld [vmem:[#allocation2 + $0x1028] sm:$0xff] }
 0x129   :  { %2461 = vmatprep.subr.bf16.mxu1 %v2460_v13  ;;  %v472_v13 = vld [vmem:[#allocation2 + $0xdb8] sm:$0xff]  ;;  %v2482_v16 = vpack.c.bf16 %v463_v10, %v455_v8  ;;  %v543_v6 = vld [vmem:[#allocation2 + $0xff0] sm:$0xff]  ;;  %v558_v8 = vld [vmem:[#allocation2 + $0x1068] sm:$0xff] }
 0x12a   :  { %v560_v10 = vld [vmem:[#allocation2 + $0x1078] sm:$0xff] }
 0x12b   :  { %2271 = vmatpush1.bf16.msra.mxu0 %v2270_v19  ;;  %v477_v19 = vld [vmem:[#allocation2 + $0xde0] sm:$0xff]  ;;  %v608_v48 = vld [vmem:[#allocation2 + $0x11f8] sm:$0xff] }
 0x12c   :  { %2463 = vmatpush1.bf16.msra.mxu1 %v2462_v20  ;;  %2273 = vmatprep.subr.bf16.mxu0 %v2272_v21  ;;  %v471_v20 = vld [vmem:[#allocation2 + $0xdb0] sm:$0xff]  ;;  %v2484_v21 = vpack.c.bf16 %v480_v14, %v472_v13  ;;  %v2294_v27 = vpack.c.bf16 %v477_v19, %v469_v18  ;;  %v2312_v13 = vpack.c.bf16 %v558_v8, %v550_v7  ;;  %v549_v14 = vld [vmem:[#allocation2 + $0x1020] sm:$0xff]  ;;  %v566_v19 = vld [vmem:[#allocation2 + $0x10a8] sm:$0xff] }
 0x12d   :  { %2465 = vmatprep.subr.bf16.mxu1 %v2464_v25  ;;  %v488_v25 = vld [vmem:[#allocation2 + $0xe38] sm:$0xff]  ;;  %v2486_v28 = vpack.c.bf16 %v479_v22, %v471_v20  ;;  %v559_v18 = vld [vmem:[#allocation2 + $0x1070] sm:$0xff]  ;;  %v574_v20 = vld [vmem:[#allocation2 + $0x10e8] sm:$0xff] }
 0x12e   :  { %v576_v22 = vld [vmem:[#allocation2 + $0x10f8] sm:$0xff] }
 0x12f   :  { %2275 = vmatpush1.bf16.msra.mxu0 %v2274_v31  ;;  %v493_v31 = vld [vmem:[#allocation2 + $0xe60] sm:$0xff]  ;;  %v616_v59 = vld [vmem:[#allocation2 + $0x1238] sm:$0xff] }
 0x130   :  { %2467 = vmatpush1.bf16.msra.mxu1 %v2466_v32  ;;  %2277 = vmatprep.subr.bf16.mxu0 %v2276_v33  ;;  %v487_v32 = vld [vmem:[#allocation2 + $0xe30] sm:$0xff]  ;;  %v2488_v33 = vpack.c.bf16 %v496_v26, %v488_v25  ;;  %v2298_v39 = vpack.c.bf16 %v493_v31, %v485_v30  ;;  %v2316_v25 = vpack.c.bf16 %v574_v20, %v566_v19  ;;  %v565_v26 = vld [vmem:[#allocation2 + $0x10a0] sm:$0xff]  ;;  %v582_v31 = vld [vmem:[#allocation2 + $0x1128] sm:$0xff] }
 0x131   :  { %2469 = vmatprep.subr.bf16.mxu1 %v2468_v37  ;;  %v504_v37 = vld [vmem:[#allocation2 + $0xeb8] sm:$0xff]  ;;  %v2490_v40 = vpack.c.bf16 %v495_v34, %v487_v32  ;;  %v575_v30 = vld [vmem:[#allocation2 + $0x10f0] sm:$0xff]  ;;  %v590_v32 = vld [vmem:[#allocation2 + $0x1168] sm:$0xff] }
 0x132   :  { %v584_v34 = vld [vmem:[#allocation2 + $0x1138] sm:$0xff] }
 0x133   :  { %2279 = vmatpush1.bf16.msra.mxu0 %v2278_v43  ;;  %v509_v43 = vld [vmem:[#allocation2 + $0xee0] sm:$0xff]  ;;  %v624_v60 = vld [vmem:[#allocation2 + $0x1278] sm:$0xff] }
 0x134   :  { %2471 = vmatpush1.bf16.msra.mxu1 %v2470_v44  ;;  %2281 = vmatprep.subr.bf16.mxu0 %v2280_v45  ;;  %v503_v44 = vld [vmem:[#allocation2 + $0xeb0] sm:$0xff]  ;;  %v2492_v45 = vpack.c.bf16 %v512_v38, %v504_v37  ;;  %v2302_v51 = vpack.c.bf16 %v509_v43, %v501_v42  ;;  %v2320_v38 = vpack.c.bf16 %v590_v32, %v582_v31  ;;  %v632_v7 = vld [vmem:[#allocation2 + $0x12b8] sm:$0xff] }
 0x135   :  { %2473 = vmatprep.subr.bf16.mxu1 %v2472_v49  ;;  %v520_v49 = vld [vmem:[#allocation2 + $0xf38] sm:$0xff]  ;;  %v2494_v52 = vpack.c.bf16 %v511_v46, %v503_v44  ;;  %v2512_v42 = vpack.c.bf16 %v592_v35, %v584_v34  ;;  %v591_v43 = vld [vmem:[#allocation2 + $0x1170] sm:$0xff]  ;;  %v598_v44 = vld [vmem:[#allocation2 + $0x11a8] sm:$0xff] }
 0x136   :  { %v2591_v46 = vld [vmem:[%s2752_s0 + $0x28] sm:$0xff]  ;;  %v640_v8 = vld [vmem:[#allocation2 + $0x12f8] sm:$0xff] }
 0x137   :  { %2283 = vmatpush1.bf16.msra.mxu0 %v2282_v55  ;;  %v525_v55 = vld [vmem:[#allocation2 + $0xf60] sm:$0xff]  ;;  %v648_v19 = vld [vmem:[#allocation2 + $0x1338] sm:$0xff] }
 0x138   :  { %2475 = vmatpush1.bf16.msra.mxu1 %v2474_v56  ;;  %2285 = vmatprep.subr.bf16.mxu0 %v2284_v57  ;;  %v519_v56 = vld [vmem:[#allocation2 + $0xf30] sm:$0xff]  ;;  %v2496_v57 = vpack.c.bf16 %v528_v50, %v520_v49  ;;  %v2306_v63 = vpack.c.bf16 %v525_v55, %v517_v54  ;;  %v2516_v55 = vpack.c.bf16 %v608_v48, %v600_v47  ;;  %v656_v20 = vld [vmem:[#allocation2 + $0x1378] sm:$0xff]  ;;  %v677_v48 = vld [vmem:[#allocation2 + $0x1420] sm:$0xff] }
 0x139   :  { %2477 = vmatprep.subr.bf16.mxu1 %v2476_v61  ;;  %v536_v61 = vld [vmem:[#allocation2 + $0xfb8] sm:$0xff]  ;;  %v2498_v0 = vpack.c.bf16 %v527_v58, %v519_v56  ;;  %v599_v54 = vld [vmem:[#allocation2 + $0x11b0] sm:$0xff]  ;;  %v622_v58 = vld [vmem:[#allocation2 + $0x1268] sm:$0xff] }
 0x13a   :  { %v607_v56 = vld [vmem:[#allocation2 + $0x11f0] sm:$0xff]  ;;  %v664_v31 = vld [vmem:[#allocation2 + $0x13b8] sm:$0xff] }
 0x13b   :  { %2287 = vmatpush1.bf16.msra.mxu0 %v2286_v3  ;;  %v541_v3 = vld [vmem:[#allocation2 + $0xfe0] sm:$0xff]  ;;  %v672_v32 = vld [vmem:[#allocation2 + $0x13f8] sm:$0xff] }
 0x13c   :  { %2479 = vmatpush1.bf16.msra.mxu1 %v2478_v4  ;;  %2289 = vmatprep.subr.bf16.mxu0 %v2288_v5  ;;  %v535_v4 = vld [vmem:[#allocation2 + $0xfb0] sm:$0xff]  ;;  %v2500_v5 = vpack.c.bf16 %v544_v62, %v536_v61  ;;  %v2310_v11 = vpack.c.bf16 %v541_v3, %v533_v2  ;;  %v2518_v62 = vpack.c.bf16 %v607_v56, %v599_v54  ;;  %v702_v54 = vld [vmem:[#allocation2 + $0x14e8] sm:$0xff]  ;;  %v704_v56 = vld [vmem:[#allocation2 + $0x14f8] sm:$0xff] }
 0x13d   :  { %2481 = vmatprep.subr.bf16.mxu1 %v2480_v9  ;;  %v552_v9 = vld [vmem:[#allocation2 + $0x1038] sm:$0xff]  ;;  %v2502_v12 = vpack.c.bf16 %v543_v6, %v535_v4  ;;  %v615_v2 = vld [vmem:[#allocation2 + $0x1230] sm:$0xff]  ;;  %v2520_v3 = vpack.c.bf16 %v624_v60, %v616_v59  ;;  %v638_v6 = vld [vmem:[#allocation2 + $0x12e8] sm:$0xff] }
 0x13e   :  { %v623_v4 = vld [vmem:[#allocation2 + $0x1270] sm:$0xff]  ;;  %v693_v60 = vld [vmem:[#allocation2 + $0x14a0] sm:$0xff] }
 0x13f   :  { %2291 = vmatpush1.bf16.msra.mxu0 %v2290_v15  ;;  %v557_v15 = vld [vmem:[#allocation2 + $0x1060] sm:$0xff] }
 0x140   :  { %2483 = vmatpush1.bf16.msra.mxu1 %v2482_v16  ;;  %2293 = vmatprep.subr.bf16.mxu0 %v2292_v17  ;;  %v551_v16 = vld [vmem:[#allocation2 + $0x1030] sm:$0xff]  ;;  %v2504_v17 = vpack.c.bf16 %v560_v10, %v552_v9  ;;  %v2314_v23 = vpack.c.bf16 %v557_v15, %v549_v14  ;;  %v2522_v10 = vpack.c.bf16 %v623_v4, %v615_v2  ;;  %v718_v2 = vld [vmem:[#allocation2 + $0x1568] sm:$0xff]  ;;  %v720_v4 = vld [vmem:[#allocation2 + $0x1578] sm:$0xff] }
 0x141   :  { %2485 = vmatprep.subr.bf16.mxu1 %v2484_v21  ;;  %v568_v21 = vld [vmem:[#allocation2 + $0x10b8] sm:$0xff]  ;;  %v2506_v24 = vpack.c.bf16 %v559_v18, %v551_v16  ;;  %v631_v14 = vld [vmem:[#allocation2 + $0x12b0] sm:$0xff]  ;;  %v2524_v15 = vpack.c.bf16 %v640_v8, %v632_v7  ;;  %v654_v18 = vld [vmem:[#allocation2 + $0x1368] sm:$0xff] }
 0x142   :  { %v639_v16 = vld [vmem:[#allocation2 + $0x12f0] sm:$0xff]  ;;  %v709_v8 = vld [vmem:[#allocation2 + $0x1520] sm:$0xff] }
 0x143   :  { %2295 = vmatpush1.bf16.msra.mxu0 %v2294_v27  ;;  %v573_v27 = vld [vmem:[#allocation2 + $0x10e0] sm:$0xff] }
 0x144   :  { %2487 = vmatpush1.bf16.msra.mxu1 %v2486_v28  ;;  %2297 = vmatprep.subr.bf16.mxu0 %v2296_v29  ;;  %v567_v28 = vld [vmem:[#allocation2 + $0x10b0] sm:$0xff]  ;;  %v2508_v29 = vpack.c.bf16 %v576_v22, %v568_v21  ;;  %v2318_v36 = vpack.c.bf16 %v573_v27, %v565_v26  ;;  %v2526_v22 = vpack.c.bf16 %v639_v16, %v631_v14  ;;  %v734_v14 = vld [vmem:[#allocation2 + $0x15e8] sm:$0xff]  ;;  %v736_v16 = vld [vmem:[#allocation2 + $0x15f8] sm:$0xff] }
 0x145   :  { %2489 = vmatprep.subr.bf16.mxu1 %v2488_v33  ;;  %v2590_v33 = vld [vmem:[%s2752_s0 + $0x10] sm:$0xff]  ;;  %v2510_v37 = vpack.c.bf16 %v575_v30, %v567_v28  ;;  %v2528_v27 = vpack.c.bf16 %v656_v20, %v648_v19  ;;  %v670_v30 = vld [vmem:[#allocation2 + $0x13e8] sm:$0xff]  ;;  %v725_v20 = vld [vmem:[#allocation2 + $0x15a0] sm:$0xff] }
 0x146   :  { %v647_v26 = vld [vmem:[#allocation2 + $0x1330] sm:$0xff] }
 0x147   :  { %2299 = vmatpush1.bf16.msra.mxu0 %v2298_v39  ;;  %v581_v39 = vld [vmem:[#allocation2 + $0x1120] sm:$0xff]  ;;  %v655_v28 = vld [vmem:[#allocation2 + $0x1370] sm:$0xff] }
 0x148   :  { %2491 = vmatpush1.bf16.msra.mxu1 %v2490_v40  ;;  %2301 = vmatprep.subr.bf16.mxu0 %v2300_v41  ;;  %v589_v40 = vld [vmem:[#allocation2 + $0x1160] sm:$0xff]  ;;  %v583_v41 = vld [vmem:[#allocation2 + $0x1130] sm:$0xff]  ;;  %v2530_v34 = vpack.c.bf16 %v655_v28, %v647_v26  ;;  %v750_v26 = vld [vmem:[#allocation2 + $0x1668] sm:$0xff] }
 0x149   :  { %2493 = vmatprep.subr.bf16.mxu1 %v2492_v45  ;;  %v606_v45 = vld [vmem:[#allocation2 + $0x11e8] sm:$0xff]  ;;  %v2322_v49 = vpack.c.bf16 %v589_v40, %v581_v39  ;;  %v2514_v50 = vpack.c.bf16 %v591_v43, %v583_v41  ;;  %v2532_v39 = vpack.c.bf16 %v672_v32, %v664_v31  ;;  %v671_v40 = vld [vmem:[#allocation2 + $0x13f0] sm:$0xff]  ;;  %v680_v43 = vld [vmem:[#allocation2 + $0x1438] sm:$0xff] }
 0x14a   :  { %v678_v41 = vld [vmem:[#allocation2 + $0x1428] sm:$0xff]  ;;  %v752_v28 = vld [vmem:[#allocation2 + $0x1678] sm:$0xff]  ;;  %v741_v32 = vld [vmem:[#allocation2 + $0x1620] sm:$0xff] }
 0x14b   :  { %2303 = vmatpush1.bf16.msra.mxu0 %v2302_v51  ;;  %v2324_v51 = vpack.c.bf16 %v606_v45, %v598_v44  ;;  %v688_v44 = vld [vmem:[#allocation2 + $0x1478] sm:$0xff] }
 0x14c   :  { %2495 = vmatpush1.bf16.msra.mxu1 %v2494_v52  ;;  %2305 = vmatprep.subr.bf16.mxu0 %v2304_v53  ;;  %v597_v52 = vld [vmem:[#allocation2 + $0x11a0] sm:$0xff] }
 0x14d   :  { %2497 = vmatprep.subr.bf16.mxu1 %v2496_v57  ;;  %v605_v53 = vld [vmem:[#allocation2 + $0x11e0] sm:$0xff]  ;;  %v614_v57 = vld [vmem:[#allocation2 + $0x1228] sm:$0xff] }
 0x14e   :  { %v2326_v61 = vpack.c.bf16 %v605_v53, %v597_v52  ;;  %v687_v52 = vld [vmem:[#allocation2 + $0x1470] sm:$0xff]  ;;  %v694_v53 = vld [vmem:[#allocation2 + $0x14a8] sm:$0xff] }
 0x14f   :  { %2307 = vmatpush1.bf16.msra.mxu0 %v2306_v63  ;;  %v2328_v63 = vpack.c.bf16 %v622_v58, %v614_v57  ;;  %v2348_v59 = vpack.c.bf16 %v702_v54, %v694_v53 }
 0x150   :  { %2499 = vmatpush1.bf16.msra.mxu1 %v2498_v0  ;;  %2309 = vmatprep.subr.bf16.mxu0 %v2308_v1  ;;  %v613_v0 = vld [vmem:[#allocation2 + $0x1220] sm:$0xff] }
 0x151   :  { %2501 = vmatprep.subr.bf16.mxu1 %v2500_v5  ;;  %v621_v1 = vld [vmem:[#allocation2 + $0x1260] sm:$0xff]  ;;  %v630_v5 = vld [vmem:[#allocation2 + $0x12a8] sm:$0xff] }
 0x152   :  { %v2330_v9 = vpack.c.bf16 %v621_v1, %v613_v0  ;;  %v703_v0 = vld [vmem:[#allocation2 + $0x14f0] sm:$0xff]  ;;  %v710_v1 = vld [vmem:[#allocation2 + $0x1528] sm:$0xff] }
 0x153   :  { %2311 = vmatpush1.bf16.msra.mxu0 %v2310_v11  ;;  %v2332_v11 = vpack.c.bf16 %v638_v6, %v630_v5  ;;  %v2352_v7 = vpack.c.bf16 %v718_v2, %v710_v1 }
 0x154   :  { %2503 = vmatpush1.bf16.msra.mxu1 %v2502_v12  ;;  %2313 = vmatprep.subr.bf16.mxu0 %v2312_v13  ;;  %v629_v12 = vld [vmem:[#allocation2 + $0x12a0] sm:$0xff] }
 0x155   :  { %2505 = vmatprep.subr.bf16.mxu1 %v2504_v17  ;;  %v637_v13 = vld [vmem:[#allocation2 + $0x12e0] sm:$0xff]  ;;  %v646_v17 = vld [vmem:[#allocation2 + $0x1328] sm:$0xff] }
 0x156   :  { %1363 = vmatmul.mubr.f32.vlgmr.msra.gmra.mrb[2].mxu0 %v2590_v33  ;;  %v2334_v21 = vpack.c.bf16 %v637_v13, %v629_v12  ;;  %v719_v12 = vld [vmem:[#allocation2 + $0x1570] sm:$0xff]  ;;  %v726_v13 = vld [vmem:[#allocation2 + $0x15a8] sm:$0xff] }
 0x157   :  { %2315 = vmatpush1.bf16.msra.mxu0 %v2314_v23  ;;  %1576 = vmatmul.mubr.f32.vlgmr.msra.gmra.mrb[2].mxu1 %v2590_v33  ;;  %v2336_v23 = vpack.c.bf16 %v654_v18, %v646_v17  ;;  %v2356_v19 = vpack.c.bf16 %v734_v14, %v726_v13 }
 0x158   :  { %2507 = vmatpush1.bf16.msra.mxu1 %v2506_v24  ;;  %2317 = vmatprep.subr.bf16.mxu0 %v2316_v25  ;;  %v645_v24 = vld [vmem:[#allocation2 + $0x1320] sm:$0xff] }
 0x159   :  { %2509 = vmatprep.subr.bf16.mxu1 %v2508_v29  ;;  %1433 = vmatprep.mubr.f32.mxu0 %v2591_v46  ;;  %v653_v25 = vld [vmem:[#allocation2 + $0x1360] sm:$0xff]  ;;  %v662_v29 = vld [vmem:[#allocation2 + $0x13a8] sm:$0xff] }
 0x15a   :  { %1646 = vmatprep.mubr.f32.mxu1 %v2591_v46  ;;  %v2338_v33 = vpack.c.bf16 %v653_v25, %v645_v24  ;;  %v2340_v35 = vpack.c.bf16 %v670_v30, %v662_v29  ;;  %v735_v24 = vld [vmem:[#allocation2 + $0x15f0] sm:$0xff]  ;;  %v742_v25 = vld [vmem:[#allocation2 + $0x1628] sm:$0xff] }
 0x15b   :  { %2319 = vmatpush1.bf16.msra.mxu0 %v2318_v36  ;;  %v661_v36 = vld [vmem:[#allocation2 + $0x13a0] sm:$0xff]  ;;  %v2360_v31 = vpack.c.bf16 %v750_v26, %v742_v25 }
 0x15c   :  { %2511 = vmatpush1.bf16.msra.mxu1 %v2510_v37  ;;  %2321 = vmatprep.subr.bf16.mxu0 %v2320_v38  ;;  %v669_v37 = vld [vmem:[#allocation2 + $0x13e0] sm:$0xff]  ;;  %v663_v38 = vld [vmem:[#allocation2 + $0x13b0] sm:$0xff] }
 0x15d   :  { %2513 = vmatprep.subr.bf16.mxu1 %v2512_v42  ;;  %v686_v42 = vld [vmem:[#allocation2 + $0x1468] sm:$0xff]  ;;  %v2342_v45 = vpack.c.bf16 %v669_v37, %v661_v36  ;;  %v2534_v46 = vpack.c.bf16 %v671_v40, %v663_v38  ;;  %v751_v36 = vld [vmem:[#allocation2 + $0x1670] sm:$0xff]  ;;  %v768_v40 = vld [vmem:[#allocation2 + $0x16f8] sm:$0xff] }
 0x15e   :  { %v2344_v47 = vpack.c.bf16 %v686_v42, %v678_v41  ;;  %v758_v37 = vld [vmem:[#allocation2 + $0x16a8] sm:$0xff] }
 0x15f   :  { %2323 = vmatpush1.bf16.msra.mxu0 %v2322_v49  ;;  %v685_v49 = vld [vmem:[#allocation2 + $0x1460] sm:$0xff]  ;;  %v766_v38 = vld [vmem:[#allocation2 + $0x16e8] sm:$0xff] }
 0x160   :  { %2515 = vmatpush1.bf16.msra.mxu1 %v2514_v50  ;;  %2325 = vmatprep.subr.bf16.mxu0 %v2324_v51  ;;  %v679_v50 = vld [vmem:[#allocation2 + $0x1430] sm:$0xff]  ;;  %v2536_v51 = vpack.c.bf16 %v688_v44, %v680_v43  ;;  %v2346_v57 = vpack.c.bf16 %v685_v49, %v677_v48  ;;  %v2364_v43 = vpack.c.bf16 %v766_v38, %v758_v37  ;;  %v757_v44 = vld [vmem:[#allocation2 + $0x16a0] sm:$0xff]  ;;  %v774_v49 = vld [vmem:[#allocation2 + $0x1728] sm:$0xff] }
 0x161   :  { %2517 = vmatprep.subr.bf16.mxu1 %v2516_v55  ;;  %v696_v55 = vld [vmem:[#allocation2 + $0x14b8] sm:$0xff]  ;;  %v2538_v58 = vpack.c.bf16 %v687_v52, %v679_v50  ;;  %v767_v48 = vld [vmem:[#allocation2 + $0x16f0] sm:$0xff]  ;;  %v782_v50 = vld [vmem:[#allocation2 + $0x1768] sm:$0xff] }
 0x162   :  { %v784_v52 = vld [vmem:[#allocation2 + $0x1778] sm:$0xff] }
 0x163   :  { %2327 = vmatpush1.bf16.msra.mxu0 %v2326_v61  ;;  %v701_v61 = vld [vmem:[#allocation2 + $0x14e0] sm:$0xff] }
 0x164   :  { %2519 = vmatpush1.bf16.msra.mxu1 %v2518_v62  ;;  %2329 = vmatprep.subr.bf16.mxu0 %v2328_v63  ;;  %v695_v62 = vld [vmem:[#allocation2 + $0x14b0] sm:$0xff]  ;;  %v2540_v63 = vpack.c.bf16 %v704_v56, %v696_v55  ;;  %v2350_v5 = vpack.c.bf16 %v701_v61, %v693_v60  ;;  %v2368_v55 = vpack.c.bf16 %v782_v50, %v774_v49  ;;  %v773_v56 = vld [vmem:[#allocation2 + $0x1720] sm:$0xff]  ;;  %v790_v61 = vld [vmem:[#allocation2 + $0x17a8] sm:$0xff] }
 0x165   :  { %2521 = vmatprep.subr.bf16.mxu1 %v2520_v3  ;;  %v712_v3 = vld [vmem:[#allocation2 + $0x1538] sm:$0xff]  ;;  %v2542_v6 = vpack.c.bf16 %v703_v0, %v695_v62  ;;  %v783_v60 = vld [vmem:[#allocation2 + $0x1770] sm:$0xff]  ;;  %v798_v62 = vld [vmem:[#allocation2 + $0x17e8] sm:$0xff] }
 0x166   :  { %v800_v0 = vld [vmem:[#allocation2 + $0x17f8] sm:$0xff] }
 0x167   :  { %2331 = vmatpush1.bf16.msra.mxu0 %v2330_v9  ;;  %v717_v9 = vld [vmem:[#allocation2 + $0x1560] sm:$0xff] }
 0x168   :  { %2523 = vmatpush1.bf16.msra.mxu1 %v2522_v10  ;;  %2333 = vmatprep.subr.bf16.mxu0 %v2332_v11  ;;  %v711_v10 = vld [vmem:[#allocation2 + $0x1530] sm:$0xff]  ;;  %v2544_v11 = vpack.c.bf16 %v720_v4, %v712_v3  ;;  %v2354_v17 = vpack.c.bf16 %v717_v9, %v709_v8  ;;  %v2372_v3 = vpack.c.bf16 %v798_v62, %v790_v61  ;;  %v789_v4 = vld [vmem:[#allocation2 + $0x17a0] sm:$0xff] }
 0x169   :  { %2525 = vmatprep.subr.bf16.mxu1 %v2524_v15  ;;  %v728_v15 = vld [vmem:[#allocation2 + $0x15b8] sm:$0xff]  ;;  %v2546_v18 = vpack.c.bf16 %v719_v12, %v711_v10  ;;  %v799_v8 = vld [vmem:[#allocation2 + $0x17f0] sm:$0xff] }
 0x16b   :  { %2335 = vmatpush1.bf16.msra.mxu0 %v2334_v21  ;;  %v733_v21 = vld [vmem:[#allocation2 + $0x15e0] sm:$0xff] }
 0x16c   :  { %2527 = vmatpush1.bf16.msra.mxu1 %v2526_v22  ;;  %2337 = vmatprep.subr.bf16.mxu0 %v2336_v23  ;;  %v727_v22 = vld [vmem:[#allocation2 + $0x15b0] sm:$0xff]  ;;  %v2548_v23 = vpack.c.bf16 %v736_v16, %v728_v15  ;;  %v2358_v29 = vpack.c.bf16 %v733_v21, %v725_v20 }
 0x16d   :  { %2529 = vmatprep.subr.bf16.mxu1 %v2528_v27  ;;  %v744_v27 = vld [vmem:[#allocation2 + $0x1638] sm:$0xff]  ;;  %v2550_v30 = vpack.c.bf16 %v735_v24, %v727_v22 }
 0x16f   :  { %2339 = vmatpush1.bf16.msra.mxu0 %v2338_v33  ;;  %v749_v33 = vld [vmem:[#allocation2 + $0x1660] sm:$0xff] }
 0x170   :  { %2531 = vmatpush1.bf16.msra.mxu1 %v2530_v34  ;;  %2341 = vmatprep.subr.bf16.mxu0 %v2340_v35  ;;  %v743_v34 = vld [vmem:[#allocation2 + $0x1630] sm:$0xff]  ;;  %v2552_v35 = vpack.c.bf16 %v752_v28, %v744_v27  ;;  %v2362_v41 = vpack.c.bf16 %v749_v33, %v741_v32 }
 0x171   :  { %2533 = vmatprep.subr.bf16.mxu1 %v2532_v39  ;;  %v760_v39 = vld [vmem:[#allocation2 + $0x16b8] sm:$0xff]  ;;  %v2554_v42 = vpack.c.bf16 %v751_v36, %v743_v34 }
 0x173   :  { %2343 = vmatpush1.bf16.msra.mxu0 %v2342_v45  ;;  %v765_v45 = vld [vmem:[#allocation2 + $0x16e0] sm:$0xff] }
 0x174   :  { %2535 = vmatpush1.bf16.msra.mxu1 %v2534_v46  ;;  %2345 = vmatprep.subr.bf16.mxu0 %v2344_v47  ;;  %v759_v46 = vld [vmem:[#allocation2 + $0x16b0] sm:$0xff]  ;;  %v2556_v47 = vpack.c.bf16 %v768_v40, %v760_v39  ;;  %v2366_v53 = vpack.c.bf16 %v765_v45, %v757_v44 }
 0x175   :  { %2537 = vmatprep.subr.bf16.mxu1 %v2536_v51  ;;  %v776_v51 = vld [vmem:[#allocation2 + $0x1738] sm:$0xff]  ;;  %v2558_v54 = vpack.c.bf16 %v767_v48, %v759_v46 }
 0x177   :  { %2347 = vmatpush1.bf16.msra.mxu0 %v2346_v57  ;;  %v781_v57 = vld [vmem:[#allocation2 + $0x1760] sm:$0xff] }
 0x178   :  { %2539 = vmatpush1.bf16.msra.mxu1 %v2538_v58  ;;  %2349 = vmatprep.subr.bf16.mxu0 %v2348_v59  ;;  %v775_v58 = vld [vmem:[#allocation2 + $0x1730] sm:$0xff]  ;;  %v2560_v59 = vpack.c.bf16 %v784_v52, %v776_v51  ;;  %v2370_v1 = vpack.c.bf16 %v781_v57, %v773_v56 }
 0x179   :  { %2541 = vmatprep.subr.bf16.mxu1 %v2540_v63  ;;  %v792_v63 = vld [vmem:[#allocation2 + $0x17b8] sm:$0xff]  ;;  %v2562_v2 = vpack.c.bf16 %v783_v60, %v775_v58 }
 0x17b   :  { %2351 = vmatpush1.bf16.msra.mxu0 %v2350_v5  ;;  %v797_v5 = vld [vmem:[#allocation2 + $0x17e0] sm:$0xff] }
 0x17c   :  { %2543 = vmatpush1.bf16.msra.mxu1 %v2542_v6  ;;  %2353 = vmatprep.subr.bf16.mxu0 %v2352_v7  ;;  %v2564_v6 = vpack.c.bf16 %v800_v0, %v792_v63  ;;  %v791_v7 = vld [vmem:[#allocation2 + $0x17b0] sm:$0xff]  ;;  %v2374_v9 = vpack.c.bf16 %v797_v5, %v789_v4 }
 0x17d   :  { %2545 = vmatprep.subr.bf16.mxu1 %v2544_v11  ;;  %v2566_v10 = vpack.c.bf16 %v799_v8, %v791_v7  ;;  %v2592_v11 = vld [vmem:[%s2752_s0 + $0x20] sm:$0xff] }
 0x17f   :  { %2355 = vmatpush1.bf16.msra.mxu0 %v2354_v17 }
 0x180   :  { %2547 = vmatpush1.bf16.msra.mxu1 %v2546_v18  ;;  %2357 = vmatprep.subr.bf16.mxu0 %v2356_v19 }
 0x181   :  { %2549 = vmatprep.subr.bf16.mxu1 %v2548_v23 }
 0x183   :  { %2359 = vmatpush1.bf16.msra.mxu0 %v2358_v29 }
 0x184   :  { %2551 = vmatpush1.bf16.msra.mxu1 %v2550_v30  ;;  %2361 = vmatprep.subr.bf16.mxu0 %v2360_v31 }
 0x185   :  { %2553 = vmatprep.subr.bf16.mxu1 %v2552_v35 }
 0x187   :  { %2363 = vmatpush1.bf16.msra.mxu0 %v2362_v41 }
 0x188   :  { %2555 = vmatpush1.bf16.msra.mxu1 %v2554_v42  ;;  %2365 = vmatprep.subr.bf16.mxu0 %v2364_v43 }
 0x189   :  { %2557 = vmatprep.subr.bf16.mxu1 %v2556_v47 }
 0x18b   :  { %2367 = vmatpush1.bf16.msra.mxu0 %v2366_v53 }
 0x18c   :  { %2559 = vmatpush1.bf16.msra.mxu1 %v2558_v54  ;;  %2369 = vmatprep.subr.bf16.mxu0 %v2368_v55 }
 0x18d   :  { %2561 = vmatprep.subr.bf16.mxu1 %v2560_v59 }
 0x18f   :  { %2371 = vmatpush1.bf16.msra.mxu0 %v2370_v1 }
 0x190   :  { %2563 = vmatpush1.bf16.msra.mxu1 %v2562_v2  ;;  %2373 = vmatprep.subr.bf16.mxu0 %v2372_v3 }
 0x191   :  { %2565 = vmatprep.subr.bf16.mxu1 %v2564_v6 }
 0x193   :  { %2375 = vmatpush1.bf16.msra.mxu0 %v2374_v9 }
 0x194   :  { %2567 = vmatpush1.bf16.msra.mxu1 %v2566_v10 }
 0x196   :  { %1434 = vmatmul.mubr.f32.vlgmr.msra.gmra.mrb[2].mxu0 %v2592_v11 }
 0x197   :  { %1647 = vmatmul.mubr.f32.vlgmr.msra.gmra.mrb[2].mxu1 %v2592_v11 }
 0x1a9   :  { %v1009_v12 = vpop.f32.mrb[0].mxu0 }
 0x1aa   :  { %1653 = vst [vmem:[%s2754_s2] sm:$0xff] %v1009_v12  ;;  %v1661_v13 = vrot.slane %v1009_v12, 4  ;;  %v1709_v14 = vmul.f32 %v1009_v12, %v1009_v12  ;;  %v1222_v15 = vpop.f32.mrb[0].mxu1  ;;  %v1011_v16 = vpop.f32.mrb[1].mxu0 }
 0x1ab   :  { %1655 = vst [vmem:[%s2754_s2 + $0x10] sm:$0xff] %v1222_v15  ;;  %v1673_v17 = vrot.slane %v1222_v15, 4  ;;  %v1711_v18 = vmul.f32 %v1222_v15, %v1222_v15  ;;  %1654 = vst [vmem:[%s2754_s2 + $0x8] sm:$0xff] %v1011_v16  ;;  %v1667_v19 = vrot.slane %v1011_v16, 4  ;;  %v1710_v20 = vmul.f32 %v1011_v16, %v1011_v16  ;;  %v1224_v21 = vpop.f32.mrb[1].mxu1 }
 0x1ac   :  { %v1662_v22 = vadd.f32 %v1661_v13, %v1009_v12  ;;  %v1717_v23 = vrot.slane %v1709_v14, 4  ;;  %1656 = vst [vmem:[%s2754_s2 + $0x18] sm:$0xff] %v1224_v21  ;;  %v1679_v24 = vrot.slane %v1224_v21, 4  ;;  %v1712_v25 = vmul.f32 %v1224_v21, %v1224_v21 }
 0x1ad   :  { %v1674_v26 = vadd.f32 %v1673_v17, %v1222_v15  ;;  %v1729_v27 = vrot.slane %v1711_v18, 4  ;;  %v1668_v28 = vadd.f32 %v1667_v19, %v1011_v16  ;;  %v1723_v29 = vrot.slane %v1710_v20, 4 }
 0x1ae   :  { %v1663_v30 = vrot.slane %v1662_v22, 2  ;;  %v1718_v31 = vadd.f32 %v1717_v23, %v1709_v14  ;;  %v1680_v32 = vadd.f32 %v1679_v24, %v1224_v21  ;;  %v1735_v33 = vrot.slane %v1712_v25, 4 }
 0x1af   :  { %v1675_v34 = vrot.slane %v1674_v26, 2  ;;  %v1730_v35 = vadd.f32 %v1729_v27, %v1711_v18  ;;  %v1669_v36 = vrot.slane %v1668_v28, 2  ;;  %v1724_v37 = vadd.f32 %v1723_v29, %v1710_v20 }
 0x1b0   :  { %v1664_v38 = vadd.f32 %v1663_v30, %v1662_v22  ;;  %v1719_v39 = vrot.slane %v1718_v31, 2  ;;  %v1681_v40 = vrot.slane %v1680_v32, 2  ;;  %v1736_v41 = vadd.f32 %v1735_v33, %v1712_v25 }
 0x1b1   :  { %v1676_v42 = vadd.f32 %v1675_v34, %v1674_v26  ;;  %v1731_v43 = vrot.slane %v1730_v35, 2  ;;  %v1670_v44 = vadd.f32 %v1669_v36, %v1668_v28  ;;  %v1725_v45 = vrot.slane %v1724_v37, 2 }
 0x1b2   :  { %v1665_v46 = vrot.slane %v1664_v38, 1  ;;  %v1720_v47 = vadd.f32 %v1719_v39, %v1718_v31  ;;  %v1682_v48 = vadd.f32 %v1681_v40, %v1680_v32  ;;  %v1737_v49 = vrot.slane %v1736_v41, 2 }
 0x1b3   :  { %v1677_v50 = vrot.slane %v1676_v42, 1  ;;  %v1732_v51 = vadd.f32 %v1731_v43, %v1730_v35  ;;  %v1671_v52 = vrot.slane %v1670_v44, 1  ;;  %v1726_v53 = vadd.f32 %v1725_v45, %v1724_v37 }
 0x1b4   :  { %v1721_v54 = vrot.slane %v1720_v47, 1  ;;  %v1683_v55 = vrot.slane %v1682_v48, 1  ;;  %v1738_v56 = vadd.f32 %v1737_v49, %v1736_v41  ;;  %v1666_v59 = vadd.f32 %v1665_v46, %v1664_v38 }
 0x1b5   :  { %v1733_v57 = vrot.slane %v1732_v51, 1  ;;  %v1727_v58 = vrot.slane %v1726_v53, 1  ;;  %v1678_v62 = vadd.f32 %v1677_v50, %v1676_v42  ;;  %v1672_v0 = vadd.f32 %v1671_v52, %v1670_v44 }
 0x1b6   :  { %v1722_v60 = vadd.f32 %v1721_v54, %v1720_v47  ;;  %v1739_v61 = vrot.slane %v1738_v56, 1  ;;  %v1684_v3 = vadd.f32 %v1683_v55, %v1682_v48 }
 0x1b7   :  { %v1734_v63 = vadd.f32 %v1733_v57, %v1732_v51  ;;  %v1728_v1 = vadd.f32 %v1727_v58, %v1726_v53 }
 0x1b8   :  { %v1766_v2 = vsel %vm1765_vm0, %v1666_v59, %v1722_v60  ;;  %v1740_v4 = vadd.f32 %v1739_v61, %v1738_v56 }
 0x1b9   :  { %v1775_v5 = vsel %vm1774_vm1, %v1766_v2, 0.0  ;;  %v1768_v6 = vsel %vm1765_vm0, %v1678_v62, %v1734_v63  ;;  %v1767_v7 = vsel %vm1765_vm0, %v1672_v0, %v1728_v1 }
 0x1ba   :  { %1783 = vst [vmem:[%s2755_s3] sm:$0xff] %v1775_v5  ;;  %v1777_v8 = vsel %vm1774_vm1, %v1768_v6, 0.0  ;;  %v1776_v9 = vsel %vm1774_vm1, %v1767_v7, 0.0  ;;  %v1769_v10 = vsel %vm1765_vm0, %v1684_v3, %v1740_v4 }
 0x1bb   :  { %1785 = vst [vmem:[%s2755_s3 + $0x10] sm:$0xff] %v1777_v8  ;;  %1784 = vst [vmem:[%s2755_s3 + $0x8] sm:$0xff] %v1776_v9  ;;  %v1778_v11 = vsel %vm1774_vm1, %v1769_v10, 0.0 }
 0x1bc   :  { %1786 = vst [vmem:[%s2755_s3 + $0x18] sm:$0xff] %v1778_v11 }
 0x269   :  { %v1435_v12 = vpop.f32.mrb[2].mxu0 }
 0x26a   :  { %1657 = vst [vmem:[%s2754_s2 + $0x20] sm:$0xff] %v1435_v12  ;;  %v1685_v13 = vrot.slane %v1435_v12, 4  ;;  %v1713_v14 = vmul.f32 %v1435_v12, %v1435_v12  ;;  %v1648_v15 = vpop.f32.mrb[2].mxu1  ;;  %v1437_v16 = vpop.f32.mrb[3].mxu0 }
 0x26b   :  { %1659 = vst [vmem:[%s2754_s2 + $0x30] sm:$0xff] %v1648_v15  ;;  %v1697_v17 = vrot.slane %v1648_v15, 4  ;;  %v1715_v18 = vmul.f32 %v1648_v15, %v1648_v15  ;;  %1658 = vst [vmem:[%s2754_s2 + $0x28] sm:$0xff] %v1437_v16  ;;  %v1691_v19 = vrot.slane %v1437_v16, 4  ;;  %v1714_v20 = vmul.f32 %v1437_v16, %v1437_v16  ;;  %v1650_v21 = vpop.f32.mrb[3].mxu1 }
 0x26c   :  { %v1686_v22 = vadd.f32 %v1685_v13, %v1435_v12  ;;  %v1741_v23 = vrot.slane %v1713_v14, 4  ;;  %1660 = vst [vmem:[%s2754_s2 + $0x38] sm:$0xff] %v1650_v21  ;;  %v1703_v24 = vrot.slane %v1650_v21, 4  ;;  %v1716_v25 = vmul.f32 %v1650_v21, %v1650_v21 }
 0x26d   :  { %v1698_v26 = vadd.f32 %v1697_v17, %v1648_v15  ;;  %v1753_v27 = vrot.slane %v1715_v18, 4  ;;  %v1692_v28 = vadd.f32 %v1691_v19, %v1437_v16  ;;  %v1747_v29 = vrot.slane %v1714_v20, 4 }
 0x26e   :  { %v1687_v30 = vrot.slane %v1686_v22, 2  ;;  %v1742_v31 = vadd.f32 %v1741_v23, %v1713_v14  ;;  %v1704_v32 = vadd.f32 %v1703_v24, %v1650_v21  ;;  %v1759_v33 = vrot.slane %v1716_v25, 4 }
 0x26f   :  { %v1699_v34 = vrot.slane %v1698_v26, 2  ;;  %v1754_v35 = vadd.f32 %v1753_v27, %v1715_v18  ;;  %v1693_v36 = vrot.slane %v1692_v28, 2  ;;  %v1748_v37 = vadd.f32 %v1747_v29, %v1714_v20 }
 0x270   :  { %v1688_v38 = vadd.f32 %v1687_v30, %v1686_v22  ;;  %v1743_v39 = vrot.slane %v1742_v31, 2  ;;  %v1705_v40 = vrot.slane %v1704_v32, 2  ;;  %v1760_v41 = vadd.f32 %v1759_v33, %v1716_v25 }
 0x271   :  { %v1700_v42 = vadd.f32 %v1699_v34, %v1698_v26  ;;  %v1755_v43 = vrot.slane %v1754_v35, 2  ;;  %v1694_v44 = vadd.f32 %v1693_v36, %v1692_v28  ;;  %v1749_v45 = vrot.slane %v1748_v37, 2 }
 0x272   :  { %v1689_v46 = vrot.slane %v1688_v38, 1  ;;  %v1744_v47 = vadd.f32 %v1743_v39, %v1742_v31  ;;  %v1706_v48 = vadd.f32 %v1705_v40, %v1704_v32  ;;  %v1761_v49 = vrot.slane %v1760_v41, 2 }
 0x273   :  { %v1701_v50 = vrot.slane %v1700_v42, 1  ;;  %v1756_v51 = vadd.f32 %v1755_v43, %v1754_v35  ;;  %v1695_v52 = vrot.slane %v1694_v44, 1  ;;  %v1750_v53 = vadd.f32 %v1749_v45, %v1748_v37 }
 0x274   :  { %v1745_v54 = vrot.slane %v1744_v47, 1  ;;  %v1707_v55 = vrot.slane %v1706_v48, 1  ;;  %v1762_v56 = vadd.f32 %v1761_v49, %v1760_v41  ;;  %v1690_v59 = vadd.f32 %v1689_v46, %v1688_v38 }
 0x275   :  { %v1757_v57 = vrot.slane %v1756_v51, 1  ;;  %v1751_v58 = vrot.slane %v1750_v53, 1  ;;  %v1702_v62 = vadd.f32 %v1701_v50, %v1700_v42  ;;  %v1696_v0 = vadd.f32 %v1695_v52, %v1694_v44 }
 0x276   :  { %v1746_v60 = vadd.f32 %v1745_v54, %v1744_v47  ;;  %v1763_v61 = vrot.slane %v1762_v56, 1  ;;  %v1708_v3 = vadd.f32 %v1707_v55, %v1706_v48 }
 0x277   :  { %v1758_v63 = vadd.f32 %v1757_v57, %v1756_v51  ;;  %v1752_v1 = vadd.f32 %v1751_v58, %v1750_v53 }
 0x278   :  { %v1770_v2 = vsel %vm1765_vm0, %v1690_v59, %v1746_v60  ;;  %v1764_v4 = vadd.f32 %v1763_v61, %v1762_v56 }
 0x279   :  { %v1779_v5 = vsel %vm1774_vm1, %v1770_v2, 0.0  ;;  %v1772_v6 = vsel %vm1765_vm0, %v1702_v62, %v1758_v63  ;;  %v1771_v7 = vsel %vm1765_vm0, %v1696_v0, %v1752_v1 }
 0x27a   :  { %1787 = vst [vmem:[%s2755_s3 + $0x20] sm:$0xff] %v1779_v5  ;;  %v1781_v8 = vsel %vm1774_vm1, %v1772_v6, 0.0  ;;  %v1780_v9 = vsel %vm1774_vm1, %v1771_v7, 0.0  ;;  %v1773_v10 = vsel %vm1765_vm0, %v1708_v3, %v1764_v4 }
 0x27b   :  { %1789 = vst [vmem:[%s2755_s3 + $0x30] sm:$0xff] %v1781_v8  ;;  %1788 = vst [vmem:[%s2755_s3 + $0x28] sm:$0xff] %v1780_v9  ;;  %v1782_v11 = vsel %vm1774_vm1, %v1773_v10, 0.0 }
 0x27c   :  { %1790 = vst [vmem:[%s2755_s3 + $0x38] sm:$0xff] %v1782_v11 }
 0x27d   :  { %1799 = vsyncpa [#allocation3], 1 }

</bundles_post_ra>
